<compile_context>
chip_gen: v6e
topology: v6e:2x2x1
jax: 0.10.0
libtpu: 0.0.40
codegen_flags: <defaults>
</compile_context>

<pallas_src>
import jax
import jax.numpy as jnp
import numpy as np
from jax.experimental import pallas as pl
from jax.experimental.pallas import tpu as pltpu

_VMEM = pl.BlockSpec(memory_space=pltpu.MemorySpace.VMEM)
_CONV_CHANNELS = ((3, 4), (4, 8), (8, 16), (16, 32))


def _round_up(n, m):
    return (n + m - 1) // m * m


def _layer_specs(kernel_size, data_size):
    """Static per-layer geometry for the uniform polyphase decomposition."""
    assert kernel_size % 2 == 0 and kernel_size >= 8, \
        "CNNEncoder requires an even kernel_size >= 8"
    s = data_size // 16 + 1            # positions held per phase per batch
    specs = []
    length, n = data_size, 16
    for i, (cin, cout) in enumerate(_CONV_CHANNELS):
        k = kernel_size - 2 * i
        pad = k // 2
        l_conv = length + 2 * pad - k + 1
        l_pool = l_conv // 2
        n_half = n // 2
        # static validity checks for the polyphase scheme
        assert pad <= n and k - pad - 1 <= n
        assert n * s >= length
        assert n_half * s >= l_pool
        assert n_half * (s - 1) <= l_pool
        specs.append(dict(cin=cin, cout=cout,
                          cin_p=_round_up(cin, 8), cout_p=_round_up(cout, 8),
                          k=k, pad=pad, n=n, l_in=length, l_pool=l_pool))
        length, n = l_pool, n_half
    assert n == 1 and length == s
    for a, b in zip(specs[:-1], specs[1:]):
        assert a['cout_p'] == b['cin_p']
    assert specs[-1]['cout_p'] == specs[-1]['cout'] == 32
    return specs, s


def init_params(key, kernel_size=8, embed_size=32, data_size=1000):
    """Deterministic synthetic weights (torch layout), U(-1/sqrt(fan_in), ...)."""
    params = {'kernel_size': kernel_size, 'embed_size': embed_size,
              'data_size': data_size}
    conv_specs = [('conv1', 3, 4, kernel_size),
                  ('conv2', 4, 8, kernel_size - 2),
                  ('conv3', 8, 16, kernel_size - 4),
                  ('conv4', 16, 32, kernel_size - 6)]
    for name, cin, cout, k in conv_specs:
        key, kw, kb = jax.random.split(key, 3)
        bound = float((cin * k) ** -0.5)
        params[name] = {
            'w': jax.random.uniform(kw, (cout, cin, k), jnp.float32, -bound, bound),
            'b': jax.random.uniform(kb, (cout,), jnp.float32, -bound, bound)}
    feat = 32 * (data_size // 16 + 1)
    key, kw, kb = jax.random.split(key, 3)
    bound = float(feat ** -0.5)
    params['embed'] = {
        'w': jax.random.uniform(kw, (embed_size, feat), jnp.float32, -bound, bound),
        'b': jax.random.uniform(kb, (embed_size,), jnp.float32, -bound, bound)}
    return params


def prepare_params(params):
    """One-time (hoisted) weight transforms into the kernel's layouts."""
    ks, emb, dsz = params['kernel_size'], params['embed_size'], params['data_size']
    specs, s = _layer_specs(ks, dsz)

    conv_arrays = []
    for spec, name in zip(specs, ('conv1', 'conv2', 'conv3', 'conv4')):
        w = np.asarray(params[name]['w'], np.float32)   # (cout, cin, k)
        b = np.asarray(params[name]['b'], np.float32)   # (cout,)
        cout, cin, k = w.shape
        n, cin_p, cout_p = spec['n'], spec['cin_p'], spec['cout_p']
        n_taps = n + k - 1
        # Banded weight matrix: one MXU dot computes every tap of every conv
        # output phase of the layer (channel blocks padded to 8 sublanes).
        wb = np.zeros((n * cout_p, n_taps * cin_p), np.float32)
        bb = np.zeros((n * cout_p, 1), np.float32)
        for q in range(n):
            bb[q * cout_p:q * cout_p + cout, 0] = b
            for kk in range(k):
                m = q + kk
                wb[q * cout_p:q * cout_p + cout,
                   m * cin_p:m * cin_p + cin] = w[:, :, kk]
        conv_arrays.append(jnp.asarray(wb))
        conv_arrays.append(jnp.asarray(bb))

    # Embed: out[b,e] = b_e[e] + sum_{c,j} W[e, c*s + j] * act4[b, c, j].
    # Reshaped once so the flatten/contraction runs fully in VMEM in-kernel.
    c_last = specs[-1]['cout']                           # 32
    we = np.asarray(params['embed']['w'], np.float32)    # (emb, c_last*s)
    be = np.asarray(params['embed']['b'], np.float32)
    w_sc = we.reshape(emb, c_last, s).transpose(2, 0, 1).reshape(s, emb * c_last)
    blocksum = np.kron(np.eye(emb, dtype=np.float32),
                       np.ones((c_last, 1), np.float32))  # (emb*c_last, emb)

    return dict(conv_arrays=tuple(conv_arrays),
                embed_arrays=(jnp.asarray(w_sc), jnp.asarray(blocksum),
                              jnp.asarray(be.reshape(1, emb))),
                specs=specs, s=s, embed_size=emb, data_size=dsz)


def _build_kernel(specs, s, emb, batch):
    lw = batch * s                       # lane width (batch folded into lanes)
    n_layers = len(specs)
    c_last = specs[-1]['cout']

    def kernel(*refs):
        x_ref = refs[0]
        conv_refs = refs[1:1 + 2 * n_layers]
        wsc_ref, bsum_ref, be_ref = refs[1 + 2 * n_layers:1 + 2 * n_layers + 3]
        o_ref = refs[-1]

        lane = jax.lax.broadcasted_iota(jnp.int32, (1, lw), 1)
        pos = lane % s
        at_start = pos == 0
        at_end = pos == (s - 1)

        def shift_within_batch(blk, sigma):
            # blk[:, b*s + j] -> value at j + sigma within the same batch chunk,
            # zero filled at chunk boundaries (sigma in {-1, 0, +1}).
            if sigma == 0:
                return blk
            zcol = jnp.zeros((blk.shape[0], 1), jnp.float32)
            if sigma == -1:
                moved = jnp.concatenate([zcol, blk[:, :lw - 1]], axis=1)
                return jnp.where(at_start, 0.0, moved)
            moved = jnp.concatenate([blk[:, 1:], zcol], axis=1)
            return jnp.where(at_end, 0.0, moved)

        # Phase-blocked activations: (n * cin_p, batch * s); padded channel rows
        # and out-of-range positions are kept exactly zero.
        pb = x_ref[...]
        for li, spec in enumerate(specs):
            cin_p, cout_p = spec['cin_p'], spec['cout_p']
            n, k, pad, l_pool = spec['n'], spec['k'], spec['pad'], spec['l_pool']
            w_ref, b_ref = conv_refs[2 * li], conv_refs[2 * li + 1]

            # im2col along sublanes: every (phase, tap) window becomes a row
            # block; one MXU dot then computes the whole conv layer.
            pieces = []
            for m in range(n + k - 1):
                sigma, rho = divmod(m - pad, n)
                assert -1 <= sigma <= 1
                pieces.append(shift_within_batch(
                    pb[rho * cin_p:(rho + 1) * cin_p, :], sigma))
            im2col = jnp.concatenate(pieces, axis=0) if len(pieces) > 1 else pieces[0]

            act = jnp.dot(w_ref[...], im2col, preferred_element_type=jnp.float32)
            act = jnp.maximum(act + b_ref[...], 0.0)  # bias + ReLU (+ eval dropout)

            # MaxPool1d(2, 2): conv phases (2r, 2r+1) -> pooled phase r.
            n2 = n // 2
            pooled = []
            for rho in range(n2):
                lo = act[(2 * rho) * cout_p:(2 * rho + 1) * cout_p, :]
                hi = act[(2 * rho + 1) * cout_p:(2 * rho + 2) * cout_p, :]
                p = jnp.maximum(lo, hi)
                if n2 * (s - 1) + rho >= l_pool:      # zero invalid tail column
                    p = jnp.where(at_end, 0.0, p)
                pooled.append(p)
            pb = jnp.concatenate(pooled, axis=0) if len(pooled) > 1 else pooled[0]

        # Final Linear (embed) on the VMEM-resident activations.
        # pb: (32, batch*s) with pb[c, b*s + j] == act4[b, c, j]; the torch
        # flatten order (feature = c*s + j) was folded into w_sc at prep time.
        w_sc = wsc_ref[...]              # (s, emb*32): [j, e*32 + c]
        bsum = bsum_ref[...]             # (emb*32, emb)
        be = be_ref[...]                 # (1, emb)
        row_c = jax.lax.broadcasted_iota(jnp.int32, (c_last, emb * c_last), 0)
        col_c = jax.lax.broadcasted_iota(jnp.int32, (c_last, emb * c_last), 1) % c_last
        diag = row_c == col_c
        rows = []
        for b in range(batch):
            chunk = pb[:, b * s:(b + 1) * s]                              # (32, s)
            t = jnp.dot(chunk, w_sc, preferred_element_type=jnp.float32)  # (32, emb*32)
            t = jnp.where(diag, t, 0.0)
            t = jnp.sum(t, axis=0, keepdims=True)                         # (1, emb*32)
            rows.append(jnp.dot(t, bsum, preferred_element_type=jnp.float32) + be)
        o_ref[...] = jnp.concatenate(rows, axis=0) if batch > 1 else rows[0]

    return kernel


def make_forward(prepped):
    specs, s = prepped['specs'], prepped['s']
    emb = prepped['embed_size']
    conv_arrays = prepped['conv_arrays']
    embed_arrays = prepped['embed_arrays']
    cin0, cin0_p = specs[0]['cin'], specs[0]['cin_p']
    n0, l0 = specs[0]['n'], specs[0]['l_in']

    @jax.jit
    def forward(x):
        batch = x.shape[0]
        x = x.astype(jnp.float32)
        # One-time per-forward glue on the raw input only: phase-blocked layout
        # (n0 * cin0_p, batch * s).  Everything downstream stays in VMEM.
        xp = jnp.pad(x, ((0, 0), (0, cin0_p - cin0), (0, n0 * s - l0)))
        x0 = jnp.transpose(xp.reshape(batch, cin0_p, s, n0),
                           (3, 1, 0, 2)).reshape(n0 * cin0_p, batch * s)
        operands = (x0,) + conv_arrays + embed_arrays
        return pl.pallas_call(
            _build_kernel(specs, s, emb, batch),
            out_shape=jax.ShapeDtypeStruct((batch, emb), jnp.float32),
            in_specs=[_VMEM] * len(operands),
            out_specs=_VMEM,
        )(*operands)

    return forward


def reference_forward(params, x):
    """Pure-JAX (XLA) reference for the same forward pass."""
    out = x.astype(jnp.float32)
    for name in ('conv1', 'conv2', 'conv3', 'conv4'):
        w, b = params[name]['w'], params[name]['b']
        k = w.shape[-1]
        out = jax.lax.conv_general_dilated(
            out, w, window_strides=(1,), padding=[(k // 2, k // 2)],
            dimension_numbers=('NCH', 'OIH', 'NCH'),
            precision=jax.lax.Precision.HIGHEST) + b[None, :, None]
        out = jnp.maximum(out, 0.0)
        out = jax.lax.reduce_window(out, -jnp.inf, jax.lax.max,
                                    (1, 1, 2), (1, 1, 2), 'VALID')
    feat = 32 * (params['data_size'] // 16 + 1)
    out = out.reshape(-1, feat)
    return (jnp.dot(out, params['embed']['w'].T,
                    precision=jax.lax.Precision.HIGHEST)
            + params['embed']['b'])


if __name__ == "__main__":
    key = jax.random.PRNGKey(0)
    pkey, xkey = jax.random.split(key)
    params = init_params(pkey, kernel_size=8, embed_size=32, data_size=1000)
    x = jax.random.normal(xkey, (2, 3, 1000), dtype=jnp.float32)  # NCL, like torch

    prepped = prepare_params(params)          # hoisted, one-time weight prep
    forward = make_forward(prepped)

    out = jax.block_until_ready(forward(x))
    assert out.shape == (2, params['embed_size']), out.shape

    ref = reference_forward(params, x)
    max_err = float(jnp.max(jnp.abs(out - ref)))
    assert jnp.allclose(out, ref, rtol=2e-2, atol=2e-2), max_err

    print("KERNEL_OK")
</pallas_src>

<mosaic_0001>
module attributes {stable_mosaic.version = 11 : i64} {
  func.func @kernel(%arg0: memref<128x126xf32, #tpu.memory_space<vmem>>, %arg1: memref<128x184xf32, #tpu.memory_space<vmem>>, %arg2: memref<128x1xf32, #tpu.memory_space<vmem>>, %arg3: memref<64x104xf32, #tpu.memory_space<vmem>>, %arg4: memref<64x1xf32, #tpu.memory_space<vmem>>, %arg5: memref<64x56xf32, #tpu.memory_space<vmem>>, %arg6: memref<64x1xf32, #tpu.memory_space<vmem>>, %arg7: memref<64x48xf32, #tpu.memory_space<vmem>>, %arg8: memref<64x1xf32, #tpu.memory_space<vmem>>, %arg9: memref<63x1024xf32, #tpu.memory_space<vmem>>, %arg10: memref<1024x32xf32, #tpu.memory_space<vmem>>, %arg11: memref<1x32xf32, #tpu.memory_space<vmem>>, %arg12: memref<2x32xf32, #tpu.memory_space<vmem>>) attributes {dimension_semantics = [], scalar_prefetch = 0 : i64, scratch_operands = 0 : i64, tpu.core_type = #tpu.core_type<tc>} {
    %0 = tpu.iota {dimensions = array<i32: 1>} : vector<1x126xi32>
    %c63_i32 = arith.constant 63 : i32
    %c0_i32 = arith.constant 0 : i32
    %1 = arith.cmpi eq, %c63_i32, %c0_i32 : i32
    %c1_i32 = arith.constant 1 : i32
    %2 = arith.select %1, %c1_i32, %c63_i32 : i32
    %3 = vector.broadcast %2 : i32 to vector<1x126xi32>
    %4 = arith.remsi %0, %3 : vector<1x126xi32>
    %c0_i32_0 = arith.constant 0 : i32
    %5 = vector.broadcast %c0_i32_0 : i32 to vector<1x126xi32>
    %6 = arith.cmpi ne, %4, %5 : vector<1x126xi32>
    %c0_i32_1 = arith.constant 0 : i32
    %7 = vector.broadcast %c0_i32_1 : i32 to vector<1x126xi32>
    %8 = arith.cmpi slt, %4, %7 : vector<1x126xi32>
    %c0_i32_2 = arith.constant 0 : i32
    %9 = arith.cmpi slt, %2, %c0_i32_2 : i32
    %10 = vector.broadcast %9 : i1 to vector<1x126xi1>
    %11 = vector.broadcast %10 : vector<1x126xi1> to vector<1x126xi1>
    %12 = arith.xori %8, %11 : vector<1x126xi1>
    %13 = arith.andi %12, %6 : vector<1x126xi1>
    %14 = vector.broadcast %2 : i32 to vector<1x126xi32>
    %15 = arith.addi %4, %14 : vector<1x126xi32>
    %16 = arith.select %13, %15, %4 : vector<1x126xi1>, vector<1x126xi32>
    %c0_i32_3 = arith.constant 0 : i32
    %17 = vector.broadcast %c0_i32_3 : i32 to vector<1x126xi32>
    %18 = arith.cmpi eq, %16, %17 : vector<1x126xi32>
    %c62_i32 = arith.constant 62 : i32
    %19 = vector.broadcast %c62_i32 : i32 to vector<1x126xi32>
    %20 = arith.cmpi eq, %16, %19 : vector<1x126xi32>
    %c0 = arith.constant 0 : index
    %c0_4 = arith.constant 0 : index
    %21 = vector.load %arg0[%c0, %c0_4] : memref<128x126xf32, #tpu.memory_space<vmem>>, vector<128x126xf32>
    %22 = vector.extract_strided_slice %21 {offsets = [96, 0], sizes = [8, 126], strides = [1, 1]} : vector<128x126xf32> to vector<8x126xf32>
    %cst = arith.constant 0.000000e+00 : f32
    %23 = vector.broadcast %cst : f32 to vector<8x1xf32>
    %24 = vector.extract_strided_slice %22 {offsets = [0, 0], sizes = [8, 125], strides = [1, 1]} : vector<8x126xf32> to vector<8x125xf32>
    %25 = tpu.concatenate %23, %24 in 1 : vector<8x1xf32>, vector<8x125xf32> -> vector<8x126xf32>
    %cst_5 = arith.constant 0.000000e+00 : f32
    %26 = vector.shape_cast %18 : vector<1x126xi1> to vector<1x126xi1>
    %27 = vector.broadcast %26 : vector<1x126xi1> to vector<8x126xi1>
    %28 = vector.broadcast %cst_5 : f32 to vector<8x126xf32>
    %29 = arith.select %27, %28, %25 : vector<8x126xi1>, vector<8x126xf32>
    %30 = vector.extract_strided_slice %21 {offsets = [104, 0], sizes = [8, 126], strides = [1, 1]} : vector<128x126xf32> to vector<8x126xf32>
    %cst_6 = arith.constant 0.000000e+00 : f32
    %31 = vector.broadcast %cst_6 : f32 to vector<8x1xf32>
    %32 = vector.extract_strided_slice %30 {offsets = [0, 0], sizes = [8, 125], strides = [1, 1]} : vector<8x126xf32> to vector<8x125xf32>
    %33 = tpu.concatenate %31, %32 in 1 : vector<8x1xf32>, vector<8x125xf32> -> vector<8x126xf32>
    %cst_7 = arith.constant 0.000000e+00 : f32
    %34 = vector.shape_cast %18 : vector<1x126xi1> to vector<1x126xi1>
    %35 = vector.broadcast %34 : vector<1x126xi1> to vector<8x126xi1>
    %36 = vector.broadcast %cst_7 : f32 to vector<8x126xf32>
    %37 = arith.select %35, %36, %33 : vector<8x126xi1>, vector<8x126xf32>
    %38 = vector.extract_strided_slice %21 {offsets = [112, 0], sizes = [8, 126], strides = [1, 1]} : vector<128x126xf32> to vector<8x126xf32>
    %cst_8 = arith.constant 0.000000e+00 : f32
    %39 = vector.broadcast %cst_8 : f32 to vector<8x1xf32>
    %40 = vector.extract_strided_slice %38 {offsets = [0, 0], sizes = [8, 125], strides = [1, 1]} : vector<8x126xf32> to vector<8x125xf32>
    %41 = tpu.concatenate %39, %40 in 1 : vector<8x1xf32>, vector<8x125xf32> -> vector<8x126xf32>
    %cst_9 = arith.constant 0.000000e+00 : f32
    %42 = vector.shape_cast %18 : vector<1x126xi1> to vector<1x126xi1>
    %43 = vector.broadcast %42 : vector<1x126xi1> to vector<8x126xi1>
    %44 = vector.broadcast %cst_9 : f32 to vector<8x126xf32>
    %45 = arith.select %43, %44, %41 : vector<8x126xi1>, vector<8x126xf32>
    %46 = vector.extract_strided_slice %21 {offsets = [120, 0], sizes = [8, 126], strides = [1, 1]} : vector<128x126xf32> to vector<8x126xf32>
    %cst_10 = arith.constant 0.000000e+00 : f32
    %47 = vector.broadcast %cst_10 : f32 to vector<8x1xf32>
    %48 = vector.extract_strided_slice %46 {offsets = [0, 0], sizes = [8, 125], strides = [1, 1]} : vector<8x126xf32> to vector<8x125xf32>
    %49 = tpu.concatenate %47, %48 in 1 : vector<8x1xf32>, vector<8x125xf32> -> vector<8x126xf32>
    %cst_11 = arith.constant 0.000000e+00 : f32
    %50 = vector.shape_cast %18 : vector<1x126xi1> to vector<1x126xi1>
    %51 = vector.broadcast %50 : vector<1x126xi1> to vector<8x126xi1>
    %52 = vector.broadcast %cst_11 : f32 to vector<8x126xf32>
    %53 = arith.select %51, %52, %49 : vector<8x126xi1>, vector<8x126xf32>
    %54 = vector.extract_strided_slice %21 {offsets = [0, 0], sizes = [8, 126], strides = [1, 1]} : vector<128x126xf32> to vector<8x126xf32>
    %55 = vector.extract_strided_slice %21 {offsets = [8, 0], sizes = [8, 126], strides = [1, 1]} : vector<128x126xf32> to vector<8x126xf32>
    %56 = vector.extract_strided_slice %21 {offsets = [16, 0], sizes = [8, 126], strides = [1, 1]} : vector<128x126xf32> to vector<8x126xf32>
    %57 = vector.extract_strided_slice %21 {offsets = [24, 0], sizes = [8, 126], strides = [1, 1]} : vector<128x126xf32> to vector<8x126xf32>
    %58 = vector.extract_strided_slice %21 {offsets = [32, 0], sizes = [8, 126], strides = [1, 1]} : vector<128x126xf32> to vector<8x126xf32>
    %59 = vector.extract_strided_slice %21 {offsets = [40, 0], sizes = [8, 126], strides = [1, 1]} : vector<128x126xf32> to vector<8x126xf32>
    %60 = vector.extract_strided_slice %21 {offsets = [48, 0], sizes = [8, 126], strides = [1, 1]} : vector<128x126xf32> to vector<8x126xf32>
    %61 = vector.extract_strided_slice %21 {offsets = [56, 0], sizes = [8, 126], strides = [1, 1]} : vector<128x126xf32> to vector<8x126xf32>
    %62 = vector.extract_strided_slice %21 {offsets = [64, 0], sizes = [8, 126], strides = [1, 1]} : vector<128x126xf32> to vector<8x126xf32>
    %63 = vector.extract_strided_slice %21 {offsets = [72, 0], sizes = [8, 126], strides = [1, 1]} : vector<128x126xf32> to vector<8x126xf32>
    %64 = vector.extract_strided_slice %21 {offsets = [80, 0], sizes = [8, 126], strides = [1, 1]} : vector<128x126xf32> to vector<8x126xf32>
    %65 = vector.extract_strided_slice %21 {offsets = [88, 0], sizes = [8, 126], strides = [1, 1]} : vector<128x126xf32> to vector<8x126xf32>
    %66 = vector.extract_strided_slice %21 {offsets = [96, 0], sizes = [8, 126], strides = [1, 1]} : vector<128x126xf32> to vector<8x126xf32>
    %67 = vector.extract_strided_slice %21 {offsets = [104, 0], sizes = [8, 126], strides = [1, 1]} : vector<128x126xf32> to vector<8x126xf32>
    %68 = vector.extract_strided_slice %21 {offsets = [112, 0], sizes = [8, 126], strides = [1, 1]} : vector<128x126xf32> to vector<8x126xf32>
    %69 = vector.extract_strided_slice %21 {offsets = [120, 0], sizes = [8, 126], strides = [1, 1]} : vector<128x126xf32> to vector<8x126xf32>
    %70 = vector.extract_strided_slice %21 {offsets = [0, 0], sizes = [8, 126], strides = [1, 1]} : vector<128x126xf32> to vector<8x126xf32>
    %cst_12 = arith.constant 0.000000e+00 : f32
    %71 = vector.broadcast %cst_12 : f32 to vector<8x1xf32>
    %72 = vector.extract_strided_slice %70 {offsets = [0, 1], sizes = [8, 125], strides = [1, 1]} : vector<8x126xf32> to vector<8x125xf32>
    %73 = tpu.concatenate %72, %71 in 1 : vector<8x125xf32>, vector<8x1xf32> -> vector<8x126xf32>
    %cst_13 = arith.constant 0.000000e+00 : f32
    %74 = vector.shape_cast %20 : vector<1x126xi1> to vector<1x126xi1>
    %75 = vector.broadcast %74 : vector<1x126xi1> to vector<8x126xi1>
    %76 = vector.broadcast %cst_13 : f32 to vector<8x126xf32>
    %77 = arith.select %75, %76, %73 : vector<8x126xi1>, vector<8x126xf32>
    %78 = vector.extract_strided_slice %21 {offsets = [8, 0], sizes = [8, 126], strides = [1, 1]} : vector<128x126xf32> to vector<8x126xf32>
    %cst_14 = arith.constant 0.000000e+00 : f32
    %79 = vector.broadcast %cst_14 : f32 to vector<8x1xf32>
    %80 = vector.extract_strided_slice %78 {offsets = [0, 1], sizes = [8, 125], strides = [1, 1]} : vector<8x126xf32> to vector<8x125xf32>
    %81 = tpu.concatenate %80, %79 in 1 : vector<8x125xf32>, vector<8x1xf32> -> vector<8x126xf32>
    %cst_15 = arith.constant 0.000000e+00 : f32
    %82 = vector.shape_cast %20 : vector<1x126xi1> to vector<1x126xi1>
    %83 = vector.broadcast %82 : vector<1x126xi1> to vector<8x126xi1>
    %84 = vector.broadcast %cst_15 : f32 to vector<8x126xf32>
    %85 = arith.select %83, %84, %81 : vector<8x126xi1>, vector<8x126xf32>
    %86 = vector.extract_strided_slice %21 {offsets = [16, 0], sizes = [8, 126], strides = [1, 1]} : vector<128x126xf32> to vector<8x126xf32>
    %cst_16 = arith.constant 0.000000e+00 : f32
    %87 = vector.broadcast %cst_16 : f32 to vector<8x1xf32>
    %88 = vector.extract_strided_slice %86 {offsets = [0, 1], sizes = [8, 125], strides = [1, 1]} : vector<8x126xf32> to vector<8x125xf32>
    %89 = tpu.concatenate %88, %87 in 1 : vector<8x125xf32>, vector<8x1xf32> -> vector<8x126xf32>
    %cst_17 = arith.constant 0.000000e+00 : f32
    %90 = vector.shape_cast %20 : vector<1x126xi1> to vector<1x126xi1>
    %91 = vector.broadcast %90 : vector<1x126xi1> to vector<8x126xi1>
    %92 = vector.broadcast %cst_17 : f32 to vector<8x126xf32>
    %93 = arith.select %91, %92, %89 : vector<8x126xi1>, vector<8x126xf32>
    %94 = tpu.concatenate %29, %37, %45, %53, %54, %55, %56, %57, %58, %59, %60, %61, %62, %63, %64, %65 in 0 : vector<8x126xf32>, vector<8x126xf32>, vector<8x126xf32>, vector<8x126xf32>, vector<8x126xf32>, vector<8x126xf32>, vector<8x126xf32>, vector<8x126xf32>, vector<8x126xf32>, vector<8x126xf32>, vector<8x126xf32>, vector<8x126xf32>, vector<8x126xf32>, vector<8x126xf32>, vector<8x126xf32>, vector<8x126xf32> -> vector<128x126xf32>
    %95 = tpu.concatenate %66, %67, %68, %69, %77, %85, %93 in 0 : vector<8x126xf32>, vector<8x126xf32>, vector<8x126xf32>, vector<8x126xf32>, vector<8x126xf32>, vector<8x126xf32>, vector<8x126xf32> -> vector<56x126xf32>
    %96 = tpu.concatenate %94, %95 in 0 : vector<128x126xf32>, vector<56x126xf32> -> vector<184x126xf32>
    %c0_18 = arith.constant 0 : index
    %c0_19 = arith.constant 0 : index
    %97 = vector.load %arg1[%c0_18, %c0_19] : memref<128x184xf32, #tpu.memory_space<vmem>>, vector<128x184xf32>
    %cst_20 = arith.constant dense<0.000000e+00> : vector<128x126xf32>
    %98 = tpu.matmul %97, %96, %cst_20 {dimension_numbers = #tpu.dot_dimension_numbers<[1], [0], [0], [1], [0, 0, 1, 1], [], []>} : vector<128x184xf32>, vector<184x126xf32>, vector<128x126xf32> -> vector<128x126xf32>
    %c0_21 = arith.constant 0 : index
    %c0_22 = arith.constant 0 : index
    %99 = vector.load %arg2[%c0_21, %c0_22] : memref<128x1xf32, #tpu.memory_space<vmem>>, vector<128x1xf32>
    %100 = vector.broadcast %99 : vector<128x1xf32> to vector<128x126xf32>
    %101 = arith.addf %98, %100 : vector<128x126xf32>
    %cst_23 = arith.constant 0.000000e+00 : f32
    %102 = vector.broadcast %cst_23 : f32 to vector<128x126xf32>
    %103 = arith.maximumf %101, %102 : vector<128x126xf32>
    %104 = vector.extract_strided_slice %103 {offsets = [0, 0], sizes = [8, 126], strides = [1, 1]} : vector<128x126xf32> to vector<8x126xf32>
    %105 = vector.extract_strided_slice %103 {offsets = [8, 0], sizes = [8, 126], strides = [1, 1]} : vector<128x126xf32> to vector<8x126xf32>
    %106 = arith.maximumf %104, %105 : vector<8x126xf32>
    %107 = vector.extract_strided_slice %103 {offsets = [16, 0], sizes = [8, 126], strides = [1, 1]} : vector<128x126xf32> to vector<8x126xf32>
    %108 = vector.extract_strided_slice %103 {offsets = [24, 0], sizes = [8, 126], strides = [1, 1]} : vector<128x126xf32> to vector<8x126xf32>
    %109 = arith.maximumf %107, %108 : vector<8x126xf32>
    %110 = vector.extract_strided_slice %103 {offsets = [32, 0], sizes = [8, 126], strides = [1, 1]} : vector<128x126xf32> to vector<8x126xf32>
    %111 = vector.extract_strided_slice %103 {offsets = [40, 0], sizes = [8, 126], strides = [1, 1]} : vector<128x126xf32> to vector<8x126xf32>
    %112 = arith.maximumf %110, %111 : vector<8x126xf32>
    %113 = vector.extract_strided_slice %103 {offsets = [48, 0], sizes = [8, 126], strides = [1, 1]} : vector<128x126xf32> to vector<8x126xf32>
    %114 = vector.extract_strided_slice %103 {offsets = [56, 0], sizes = [8, 126], strides = [1, 1]} : vector<128x126xf32> to vector<8x126xf32>
    %115 = arith.maximumf %113, %114 : vector<8x126xf32>
    %116 = vector.extract_strided_slice %103 {offsets = [64, 0], sizes = [8, 126], strides = [1, 1]} : vector<128x126xf32> to vector<8x126xf32>
    %117 = vector.extract_strided_slice %103 {offsets = [72, 0], sizes = [8, 126], strides = [1, 1]} : vector<128x126xf32> to vector<8x126xf32>
    %118 = arith.maximumf %116, %117 : vector<8x126xf32>
    %cst_24 = arith.constant 0.000000e+00 : f32
    %119 = vector.shape_cast %20 : vector<1x126xi1> to vector<1x126xi1>
    %120 = vector.broadcast %119 : vector<1x126xi1> to vector<8x126xi1>
    %121 = vector.broadcast %cst_24 : f32 to vector<8x126xf32>
    %122 = arith.select %120, %121, %118 : vector<8x126xi1>, vector<8x126xf32>
    %123 = vector.extract_strided_slice %103 {offsets = [80, 0], sizes = [8, 126], strides = [1, 1]} : vector<128x126xf32> to vector<8x126xf32>
    %124 = vector.extract_strided_slice %103 {offsets = [88, 0], sizes = [8, 126], strides = [1, 1]} : vector<128x126xf32> to vector<8x126xf32>
    %125 = arith.maximumf %123, %124 : vector<8x126xf32>
    %cst_25 = arith.constant 0.000000e+00 : f32
    %126 = vector.shape_cast %20 : vector<1x126xi1> to vector<1x126xi1>
    %127 = vector.broadcast %126 : vector<1x126xi1> to vector<8x126xi1>
    %128 = vector.broadcast %cst_25 : f32 to vector<8x126xf32>
    %129 = arith.select %127, %128, %125 : vector<8x126xi1>, vector<8x126xf32>
    %130 = vector.extract_strided_slice %103 {offsets = [96, 0], sizes = [8, 126], strides = [1, 1]} : vector<128x126xf32> to vector<8x126xf32>
    %131 = vector.extract_strided_slice %103 {offsets = [104, 0], sizes = [8, 126], strides = [1, 1]} : vector<128x126xf32> to vector<8x126xf32>
    %132 = arith.maximumf %130, %131 : vector<8x126xf32>
    %cst_26 = arith.constant 0.000000e+00 : f32
    %133 = vector.shape_cast %20 : vector<1x126xi1> to vector<1x126xi1>
    %134 = vector.broadcast %133 : vector<1x126xi1> to vector<8x126xi1>
    %135 = vector.broadcast %cst_26 : f32 to vector<8x126xf32>
    %136 = arith.select %134, %135, %132 : vector<8x126xi1>, vector<8x126xf32>
    %137 = vector.extract_strided_slice %103 {offsets = [112, 0], sizes = [8, 126], strides = [1, 1]} : vector<128x126xf32> to vector<8x126xf32>
    %138 = vector.extract_strided_slice %103 {offsets = [120, 0], sizes = [8, 126], strides = [1, 1]} : vector<128x126xf32> to vector<8x126xf32>
    %139 = arith.maximumf %137, %138 : vector<8x126xf32>
    %cst_27 = arith.constant 0.000000e+00 : f32
    %140 = vector.shape_cast %20 : vector<1x126xi1> to vector<1x126xi1>
    %141 = vector.broadcast %140 : vector<1x126xi1> to vector<8x126xi1>
    %142 = vector.broadcast %cst_27 : f32 to vector<8x126xf32>
    %143 = arith.select %141, %142, %139 : vector<8x126xi1>, vector<8x126xf32>
    %144 = tpu.concatenate %106, %109, %112, %115, %122, %129, %136, %143 in 0 : vector<8x126xf32>, vector<8x126xf32>, vector<8x126xf32>, vector<8x126xf32>, vector<8x126xf32>, vector<8x126xf32>, vector<8x126xf32>, vector<8x126xf32> -> vector<64x126xf32>
    %145 = vector.extract_strided_slice %144 {offsets = [40, 0], sizes = [8, 126], strides = [1, 1]} : vector<64x126xf32> to vector<8x126xf32>
    %cst_28 = arith.constant 0.000000e+00 : f32
    %146 = vector.broadcast %cst_28 : f32 to vector<8x1xf32>
    %147 = vector.extract_strided_slice %145 {offsets = [0, 0], sizes = [8, 125], strides = [1, 1]} : vector<8x126xf32> to vector<8x125xf32>
    %148 = tpu.concatenate %146, %147 in 1 : vector<8x1xf32>, vector<8x125xf32> -> vector<8x126xf32>
    %cst_29 = arith.constant 0.000000e+00 : f32
    %149 = vector.shape_cast %18 : vector<1x126xi1> to vector<1x126xi1>
    %150 = vector.broadcast %149 : vector<1x126xi1> to vector<8x126xi1>
    %151 = vector.broadcast %cst_29 : f32 to vector<8x126xf32>
    %152 = arith.select %150, %151, %148 : vector<8x126xi1>, vector<8x126xf32>
    %153 = vector.extract_strided_slice %144 {offsets = [48, 0], sizes = [8, 126], strides = [1, 1]} : vector<64x126xf32> to vector<8x126xf32>
    %cst_30 = arith.constant 0.000000e+00 : f32
    %154 = vector.broadcast %cst_30 : f32 to vector<8x1xf32>
    %155 = vector.extract_strided_slice %153 {offsets = [0, 0], sizes = [8, 125], strides = [1, 1]} : vector<8x126xf32> to vector<8x125xf32>
    %156 = tpu.concatenate %154, %155 in 1 : vector<8x1xf32>, vector<8x125xf32> -> vector<8x126xf32>
    %cst_31 = arith.constant 0.000000e+00 : f32
    %157 = vector.shape_cast %18 : vector<1x126xi1> to vector<1x126xi1>
    %158 = vector.broadcast %157 : vector<1x126xi1> to vector<8x126xi1>
    %159 = vector.broadcast %cst_31 : f32 to vector<8x126xf32>
    %160 = arith.select %158, %159, %156 : vector<8x126xi1>, vector<8x126xf32>
    %161 = vector.extract_strided_slice %144 {offsets = [56, 0], sizes = [8, 126], strides = [1, 1]} : vector<64x126xf32> to vector<8x126xf32>
    %cst_32 = arith.constant 0.000000e+00 : f32
    %162 = vector.broadcast %cst_32 : f32 to vector<8x1xf32>
    %163 = vector.extract_strided_slice %161 {offsets = [0, 0], sizes = [8, 125], strides = [1, 1]} : vector<8x126xf32> to vector<8x125xf32>
    %164 = tpu.concatenate %162, %163 in 1 : vector<8x1xf32>, vector<8x125xf32> -> vector<8x126xf32>
    %cst_33 = arith.constant 0.000000e+00 : f32
    %165 = vector.shape_cast %18 : vector<1x126xi1> to vector<1x126xi1>
    %166 = vector.broadcast %165 : vector<1x126xi1> to vector<8x126xi1>
    %167 = vector.broadcast %cst_33 : f32 to vector<8x126xf32>
    %168 = arith.select %166, %167, %164 : vector<8x126xi1>, vector<8x126xf32>
    %169 = vector.extract_strided_slice %144 {offsets = [0, 0], sizes = [8, 126], strides = [1, 1]} : vector<64x126xf32> to vector<8x126xf32>
    %170 = vector.extract_strided_slice %144 {offsets = [8, 0], sizes = [8, 126], strides = [1, 1]} : vector<64x126xf32> to vector<8x126xf32>
    %171 = vector.extract_strided_slice %144 {offsets = [16, 0], sizes = [8, 126], strides = [1, 1]} : vector<64x126xf32> to vector<8x126xf32>
    %172 = vector.extract_strided_slice %144 {offsets = [24, 0], sizes = [8, 126], strides = [1, 1]} : vector<64x126xf32> to vector<8x126xf32>
    %173 = vector.extract_strided_slice %144 {offsets = [32, 0], sizes = [8, 126], strides = [1, 1]} : vector<64x126xf32> to vector<8x126xf32>
    %174 = vector.extract_strided_slice %144 {offsets = [40, 0], sizes = [8, 126], strides = [1, 1]} : vector<64x126xf32> to vector<8x126xf32>
    %175 = vector.extract_strided_slice %144 {offsets = [48, 0], sizes = [8, 126], strides = [1, 1]} : vector<64x126xf32> to vector<8x126xf32>
    %176 = vector.extract_strided_slice %144 {offsets = [56, 0], sizes = [8, 126], strides = [1, 1]} : vector<64x126xf32> to vector<8x126xf32>
    %177 = vector.extract_strided_slice %144 {offsets = [0, 0], sizes = [8, 126], strides = [1, 1]} : vector<64x126xf32> to vector<8x126xf32>
    %cst_34 = arith.constant 0.000000e+00 : f32
    %178 = vector.broadcast %cst_34 : f32 to vector<8x1xf32>
    %179 = vector.extract_strided_slice %177 {offsets = [0, 1], sizes = [8, 125], strides = [1, 1]} : vector<8x126xf32> to vector<8x125xf32>
    %180 = tpu.concatenate %179, %178 in 1 : vector<8x125xf32>, vector<8x1xf32> -> vector<8x126xf32>
    %cst_35 = arith.constant 0.000000e+00 : f32
    %181 = vector.shape_cast %20 : vector<1x126xi1> to vector<1x126xi1>
    %182 = vector.broadcast %181 : vector<1x126xi1> to vector<8x126xi1>
    %183 = vector.broadcast %cst_35 : f32 to vector<8x126xf32>
    %184 = arith.select %182, %183, %180 : vector<8x126xi1>, vector<8x126xf32>
    %185 = vector.extract_strided_slice %144 {offsets = [8, 0], sizes = [8, 126], strides = [1, 1]} : vector<64x126xf32> to vector<8x126xf32>
    %cst_36 = arith.constant 0.000000e+00 : f32
    %186 = vector.broadcast %cst_36 : f32 to vector<8x1xf32>
    %187 = vector.extract_strided_slice %185 {offsets = [0, 1], sizes = [8, 125], strides = [1, 1]} : vector<8x126xf32> to vector<8x125xf32>
    %188 = tpu.concatenate %187, %186 in 1 : vector<8x125xf32>, vector<8x1xf32> -> vector<8x126xf32>
    %cst_37 = arith.constant 0.000000e+00 : f32
    %189 = vector.shape_cast %20 : vector<1x126xi1> to vector<1x126xi1>
    %190 = vector.broadcast %189 : vector<1x126xi1> to vector<8x126xi1>
    %191 = vector.broadcast %cst_37 : f32 to vector<8x126xf32>
    %192 = arith.select %190, %191, %188 : vector<8x126xi1>, vector<8x126xf32>
    %193 = tpu.concatenate %152, %160, %168, %169, %170, %171, %172, %173, %174, %175, %176, %184, %192 in 0 : vector<8x126xf32>, vector<8x126xf32>, vector<8x126xf32>, vector<8x126xf32>, vector<8x126xf32>, vector<8x126xf32>, vector<8x126xf32>, vector<8x126xf32>, vector<8x126xf32>, vector<8x126xf32>, vector<8x126xf32>, vector<8x126xf32>, vector<8x126xf32> -> vector<104x126xf32>
    %c0_38 = arith.constant 0 : index
    %c0_39 = arith.constant 0 : index
    %194 = vector.load %arg3[%c0_38, %c0_39] : memref<64x104xf32, #tpu.memory_space<vmem>>, vector<64x104xf32>
    %cst_40 = arith.constant dense<0.000000e+00> : vector<64x126xf32>
    %195 = tpu.matmul %194, %193, %cst_40 {dimension_numbers = #tpu.dot_dimension_numbers<[1], [0], [0], [1], [0, 0, 1, 1], [], []>} : vector<64x104xf32>, vector<104x126xf32>, vector<64x126xf32> -> vector<64x126xf32>
    %c0_41 = arith.constant 0 : index
    %c0_42 = arith.constant 0 : index
    %196 = vector.load %arg4[%c0_41, %c0_42] : memref<64x1xf32, #tpu.memory_space<vmem>>, vector<64x1xf32>
    %197 = vector.broadcast %196 : vector<64x1xf32> to vector<64x126xf32>
    %198 = arith.addf %195, %197 : vector<64x126xf32>
    %cst_43 = arith.constant 0.000000e+00 : f32
    %199 = vector.broadcast %cst_43 : f32 to vector<64x126xf32>
    %200 = arith.maximumf %198, %199 : vector<64x126xf32>
    %201 = vector.extract_strided_slice %200 {offsets = [0, 0], sizes = [8, 126], strides = [1, 1]} : vector<64x126xf32> to vector<8x126xf32>
    %202 = vector.extract_strided_slice %200 {offsets = [8, 0], sizes = [8, 126], strides = [1, 1]} : vector<64x126xf32> to vector<8x126xf32>
    %203 = arith.maximumf %201, %202 : vector<8x126xf32>
    %204 = vector.extract_strided_slice %200 {offsets = [16, 0], sizes = [8, 126], strides = [1, 1]} : vector<64x126xf32> to vector<8x126xf32>
    %205 = vector.extract_strided_slice %200 {offsets = [24, 0], sizes = [8, 126], strides = [1, 1]} : vector<64x126xf32> to vector<8x126xf32>
    %206 = arith.maximumf %204, %205 : vector<8x126xf32>
    %207 = vector.extract_strided_slice %200 {offsets = [32, 0], sizes = [8, 126], strides = [1, 1]} : vector<64x126xf32> to vector<8x126xf32>
    %208 = vector.extract_strided_slice %200 {offsets = [40, 0], sizes = [8, 126], strides = [1, 1]} : vector<64x126xf32> to vector<8x126xf32>
    %209 = arith.maximumf %207, %208 : vector<8x126xf32>
    %cst_44 = arith.constant 0.000000e+00 : f32
    %210 = vector.shape_cast %20 : vector<1x126xi1> to vector<1x126xi1>
    %211 = vector.broadcast %210 : vector<1x126xi1> to vector<8x126xi1>
    %212 = vector.broadcast %cst_44 : f32 to vector<8x126xf32>
    %213 = arith.select %211, %212, %209 : vector<8x126xi1>, vector<8x126xf32>
    %214 = vector.extract_strided_slice %200 {offsets = [48, 0], sizes = [8, 126], strides = [1, 1]} : vector<64x126xf32> to vector<8x126xf32>
    %215 = vector.extract_strided_slice %200 {offsets = [56, 0], sizes = [8, 126], strides = [1, 1]} : vector<64x126xf32> to vector<8x126xf32>
    %216 = arith.maximumf %214, %215 : vector<8x126xf32>
    %cst_45 = arith.constant 0.000000e+00 : f32
    %217 = vector.shape_cast %20 : vector<1x126xi1> to vector<1x126xi1>
    %218 = vector.broadcast %217 : vector<1x126xi1> to vector<8x126xi1>
    %219 = vector.broadcast %cst_45 : f32 to vector<8x126xf32>
    %220 = arith.select %218, %219, %216 : vector<8x126xi1>, vector<8x126xf32>
    %221 = tpu.concatenate %203, %206, %213, %220 in 0 : vector<8x126xf32>, vector<8x126xf32>, vector<8x126xf32>, vector<8x126xf32> -> vector<32x126xf32>
    %222 = vector.extract_strided_slice %221 {offsets = [16, 0], sizes = [8, 126], strides = [1, 1]} : vector<32x126xf32> to vector<8x126xf32>
    %cst_46 = arith.constant 0.000000e+00 : f32
    %223 = vector.broadcast %cst_46 : f32 to vector<8x1xf32>
    %224 = vector.extract_strided_slice %222 {offsets = [0, 0], sizes = [8, 125], strides = [1, 1]} : vector<8x126xf32> to vector<8x125xf32>
    %225 = tpu.concatenate %223, %224 in 1 : vector<8x1xf32>, vector<8x125xf32> -> vector<8x126xf32>
    %cst_47 = arith.constant 0.000000e+00 : f32
    %226 = vector.shape_cast %18 : vector<1x126xi1> to vector<1x126xi1>
    %227 = vector.broadcast %226 : vector<1x126xi1> to vector<8x126xi1>
    %228 = vector.broadcast %cst_47 : f32 to vector<8x126xf32>
    %229 = arith.select %227, %228, %225 : vector<8x126xi1>, vector<8x126xf32>
    %230 = vector.extract_strided_slice %221 {offsets = [24, 0], sizes = [8, 126], strides = [1, 1]} : vector<32x126xf32> to vector<8x126xf32>
    %cst_48 = arith.constant 0.000000e+00 : f32
    %231 = vector.broadcast %cst_48 : f32 to vector<8x1xf32>
    %232 = vector.extract_strided_slice %230 {offsets = [0, 0], sizes = [8, 125], strides = [1, 1]} : vector<8x126xf32> to vector<8x125xf32>
    %233 = tpu.concatenate %231, %232 in 1 : vector<8x1xf32>, vector<8x125xf32> -> vector<8x126xf32>
    %cst_49 = arith.constant 0.000000e+00 : f32
    %234 = vector.shape_cast %18 : vector<1x126xi1> to vector<1x126xi1>
    %235 = vector.broadcast %234 : vector<1x126xi1> to vector<8x126xi1>
    %236 = vector.broadcast %cst_49 : f32 to vector<8x126xf32>
    %237 = arith.select %235, %236, %233 : vector<8x126xi1>, vector<8x126xf32>
    %238 = vector.extract_strided_slice %221 {offsets = [0, 0], sizes = [8, 126], strides = [1, 1]} : vector<32x126xf32> to vector<8x126xf32>
    %239 = vector.extract_strided_slice %221 {offsets = [8, 0], sizes = [8, 126], strides = [1, 1]} : vector<32x126xf32> to vector<8x126xf32>
    %240 = vector.extract_strided_slice %221 {offsets = [16, 0], sizes = [8, 126], strides = [1, 1]} : vector<32x126xf32> to vector<8x126xf32>
    %241 = vector.extract_strided_slice %221 {offsets = [24, 0], sizes = [8, 126], strides = [1, 1]} : vector<32x126xf32> to vector<8x126xf32>
    %242 = vector.extract_strided_slice %221 {offsets = [0, 0], sizes = [8, 126], strides = [1, 1]} : vector<32x126xf32> to vector<8x126xf32>
    %cst_50 = arith.constant 0.000000e+00 : f32
    %243 = vector.broadcast %cst_50 : f32 to vector<8x1xf32>
    %244 = vector.extract_strided_slice %242 {offsets = [0, 1], sizes = [8, 125], strides = [1, 1]} : vector<8x126xf32> to vector<8x125xf32>
    %245 = tpu.concatenate %244, %243 in 1 : vector<8x125xf32>, vector<8x1xf32> -> vector<8x126xf32>
    %cst_51 = arith.constant 0.000000e+00 : f32
    %246 = vector.shape_cast %20 : vector<1x126xi1> to vector<1x126xi1>
    %247 = vector.broadcast %246 : vector<1x126xi1> to vector<8x126xi1>
    %248 = vector.broadcast %cst_51 : f32 to vector<8x126xf32>
    %249 = arith.select %247, %248, %245 : vector<8x126xi1>, vector<8x126xf32>
    %250 = tpu.concatenate %229, %237, %238, %239, %240, %241, %249 in 0 : vector<8x126xf32>, vector<8x126xf32>, vector<8x126xf32>, vector<8x126xf32>, vector<8x126xf32>, vector<8x126xf32>, vector<8x126xf32> -> vector<56x126xf32>
    %c0_52 = arith.constant 0 : index
    %c0_53 = arith.constant 0 : index
    %251 = vector.load %arg5[%c0_52, %c0_53] : memref<64x56xf32, #tpu.memory_space<vmem>>, vector<64x56xf32>
    %cst_54 = arith.constant dense<0.000000e+00> : vector<64x126xf32>
    %252 = tpu.matmul %251, %250, %cst_54 {dimension_numbers = #tpu.dot_dimension_numbers<[1], [0], [0], [1], [0, 0, 1, 1], [], []>} : vector<64x56xf32>, vector<56x126xf32>, vector<64x126xf32> -> vector<64x126xf32>
    %c0_55 = arith.constant 0 : index
    %c0_56 = arith.constant 0 : index
    %253 = vector.load %arg6[%c0_55, %c0_56] : memref<64x1xf32, #tpu.memory_space<vmem>>, vector<64x1xf32>
    %254 = vector.broadcast %253 : vector<64x1xf32> to vector<64x126xf32>
    %255 = arith.addf %252, %254 : vector<64x126xf32>
    %cst_57 = arith.constant 0.000000e+00 : f32
    %256 = vector.broadcast %cst_57 : f32 to vector<64x126xf32>
    %257 = arith.maximumf %255, %256 : vector<64x126xf32>
    %258 = vector.extract_strided_slice %257 {offsets = [0, 0], sizes = [16, 126], strides = [1, 1]} : vector<64x126xf32> to vector<16x126xf32>
    %259 = vector.extract_strided_slice %257 {offsets = [16, 0], sizes = [16, 126], strides = [1, 1]} : vector<64x126xf32> to vector<16x126xf32>
    %260 = arith.maximumf %258, %259 : vector<16x126xf32>
    %261 = vector.extract_strided_slice %257 {offsets = [32, 0], sizes = [16, 126], strides = [1, 1]} : vector<64x126xf32> to vector<16x126xf32>
    %262 = vector.extract_strided_slice %257 {offsets = [48, 0], sizes = [16, 126], strides = [1, 1]} : vector<64x126xf32> to vector<16x126xf32>
    %263 = arith.maximumf %261, %262 : vector<16x126xf32>
    %cst_58 = arith.constant 0.000000e+00 : f32
    %264 = vector.shape_cast %20 : vector<1x126xi1> to vector<1x126xi1>
    %265 = vector.broadcast %264 : vector<1x126xi1> to vector<16x126xi1>
    %266 = vector.broadcast %cst_58 : f32 to vector<16x126xf32>
    %267 = arith.select %265, %266, %263 : vector<16x126xi1>, vector<16x126xf32>
    %268 = tpu.concatenate %260, %267 in 0 : vector<16x126xf32>, vector<16x126xf32> -> vector<32x126xf32>
    %269 = vector.extract_strided_slice %268 {offsets = [16, 0], sizes = [16, 126], strides = [1, 1]} : vector<32x126xf32> to vector<16x126xf32>
    %cst_59 = arith.constant 0.000000e+00 : f32
    %270 = vector.broadcast %cst_59 : f32 to vector<16x1xf32>
    %271 = vector.extract_strided_slice %269 {offsets = [0, 0], sizes = [16, 125], strides = [1, 1]} : vector<16x126xf32> to vector<16x125xf32>
    %272 = tpu.concatenate %270, %271 in 1 : vector<16x1xf32>, vector<16x125xf32> -> vector<16x126xf32>
    %cst_60 = arith.constant 0.000000e+00 : f32
    %273 = vector.shape_cast %18 : vector<1x126xi1> to vector<1x126xi1>
    %274 = vector.broadcast %273 : vector<1x126xi1> to vector<16x126xi1>
    %275 = vector.broadcast %cst_60 : f32 to vector<16x126xf32>
    %276 = arith.select %274, %275, %272 : vector<16x126xi1>, vector<16x126xf32>
    %277 = vector.extract_strided_slice %268 {offsets = [0, 0], sizes = [16, 126], strides = [1, 1]} : vector<32x126xf32> to vector<16x126xf32>
    %278 = vector.extract_strided_slice %268 {offsets = [16, 0], sizes = [16, 126], strides = [1, 1]} : vector<32x126xf32> to vector<16x126xf32>
    %279 = tpu.concatenate %276, %277, %278 in 0 : vector<16x126xf32>, vector<16x126xf32>, vector<16x126xf32> -> vector<48x126xf32>
    %c0_61 = arith.constant 0 : index
    %c0_62 = arith.constant 0 : index
    %280 = vector.load %arg7[%c0_61, %c0_62] : memref<64x48xf32, #tpu.memory_space<vmem>>, vector<64x48xf32>
    %cst_63 = arith.constant dense<0.000000e+00> : vector<64x126xf32>
    %281 = tpu.matmul %280, %279, %cst_63 {dimension_numbers = #tpu.dot_dimension_numbers<[1], [0], [0], [1], [0, 0, 1, 1], [], []>} : vector<64x48xf32>, vector<48x126xf32>, vector<64x126xf32> -> vector<64x126xf32>
    %c0_64 = arith.constant 0 : index
    %c0_65 = arith.constant 0 : index
    %282 = vector.load %arg8[%c0_64, %c0_65] : memref<64x1xf32, #tpu.memory_space<vmem>>, vector<64x1xf32>
    %283 = vector.broadcast %282 : vector<64x1xf32> to vector<64x126xf32>
    %284 = arith.addf %281, %283 : vector<64x126xf32>
    %cst_66 = arith.constant 0.000000e+00 : f32
    %285 = vector.broadcast %cst_66 : f32 to vector<64x126xf32>
    %286 = arith.maximumf %284, %285 : vector<64x126xf32>
    %287 = vector.extract_strided_slice %286 {offsets = [0, 0], sizes = [32, 126], strides = [1, 1]} : vector<64x126xf32> to vector<32x126xf32>
    %288 = vector.extract_strided_slice %286 {offsets = [32, 0], sizes = [32, 126], strides = [1, 1]} : vector<64x126xf32> to vector<32x126xf32>
    %289 = arith.maximumf %287, %288 : vector<32x126xf32>
    %c0_67 = arith.constant 0 : index
    %c0_68 = arith.constant 0 : index
    %290 = vector.load %arg9[%c0_67, %c0_68] : memref<63x1024xf32, #tpu.memory_space<vmem>>, vector<63x1024xf32>
    %c0_69 = arith.constant 0 : index
    %c0_70 = arith.constant 0 : index
    %291 = vector.load %arg10[%c0_69, %c0_70] : memref<1024x32xf32, #tpu.memory_space<vmem>>, vector<1024x32xf32>
    %c0_71 = arith.constant 0 : index
    %c0_72 = arith.constant 0 : index
    %292 = vector.load %arg11[%c0_71, %c0_72] : memref<1x32xf32, #tpu.memory_space<vmem>>, vector<1x32xf32>
    %293 = tpu.iota {dimensions = array<i32: 0>} : vector<32x1024xi32>
    %294 = tpu.iota {dimensions = array<i32: 1>} : vector<32x1024xi32>
    %c32_i32 = arith.constant 32 : i32
    %c0_i32_73 = arith.constant 0 : i32
    %295 = arith.cmpi eq, %c32_i32, %c0_i32_73 : i32
    %c1_i32_74 = arith.constant 1 : i32
    %296 = arith.select %295, %c1_i32_74, %c32_i32 : i32
    %297 = vector.broadcast %296 : i32 to vector<32x1024xi32>
    %298 = arith.remsi %294, %297 : vector<32x1024xi32>
    %c0_i32_75 = arith.constant 0 : i32
    %299 = vector.broadcast %c0_i32_75 : i32 to vector<32x1024xi32>
    %300 = arith.cmpi ne, %298, %299 : vector<32x1024xi32>
    %c0_i32_76 = arith.constant 0 : i32
    %301 = vector.broadcast %c0_i32_76 : i32 to vector<32x1024xi32>
    %302 = arith.cmpi slt, %298, %301 : vector<32x1024xi32>
    %c0_i32_77 = arith.constant 0 : i32
    %303 = arith.cmpi slt, %296, %c0_i32_77 : i32
    %304 = vector.broadcast %303 : i1 to vector<32x1024xi1>
    %305 = vector.broadcast %304 : vector<32x1024xi1> to vector<32x1024xi1>
    %306 = arith.xori %302, %305 : vector<32x1024xi1>
    %307 = arith.andi %306, %300 : vector<32x1024xi1>
    %308 = vector.broadcast %296 : i32 to vector<32x1024xi32>
    %309 = arith.addi %298, %308 : vector<32x1024xi32>
    %310 = arith.select %307, %309, %298 : vector<32x1024xi1>, vector<32x1024xi32>
    %311 = arith.cmpi eq, %293, %310 : vector<32x1024xi32>
    %312 = vector.extract_strided_slice %289 {offsets = [0, 0], sizes = [32, 63], strides = [1, 1]} : vector<32x126xf32> to vector<32x63xf32>
    %cst_78 = arith.constant dense<0.000000e+00> : vector<32x1024xf32>
    %313 = tpu.matmul %312, %290, %cst_78 {dimension_numbers = #tpu.dot_dimension_numbers<[1], [0], [0], [1], [0, 0, 1, 1], [], []>} : vector<32x63xf32>, vector<63x1024xf32>, vector<32x1024xf32> -> vector<32x1024xf32>
    %cst_79 = arith.constant 0.000000e+00 : f32
    %314 = vector.broadcast %cst_79 : f32 to vector<32x1024xf32>
    %315 = arith.select %311, %313, %314 : vector<32x1024xi1>, vector<32x1024xf32>
    %cst_80 = arith.constant dense<0.000000e+00> : vector<1024xf32>
    %316 = vector.multi_reduction <add>, %315, %cst_80 [0] : vector<32x1024xf32> to vector<1024xf32>
    %317 = vector.shape_cast %316 : vector<1024xf32> to vector<1x1024xf32>
    %cst_81 = arith.constant dense<0.000000e+00> : vector<1x32xf32>
    %318 = tpu.matmul %317, %291, %cst_81 {dimension_numbers = #tpu.dot_dimension_numbers<[1], [0], [0], [1], [0, 0, 1, 1], [], []>} : vector<1x1024xf32>, vector<1024x32xf32>, vector<1x32xf32> -> vector<1x32xf32>
    %319 = arith.addf %318, %292 : vector<1x32xf32>
    %320 = vector.extract_strided_slice %289 {offsets = [0, 63], sizes = [32, 63], strides = [1, 1]} : vector<32x126xf32> to vector<32x63xf32>
    %cst_82 = arith.constant dense<0.000000e+00> : vector<32x1024xf32>
    %321 = tpu.matmul %320, %290, %cst_82 {dimension_numbers = #tpu.dot_dimension_numbers<[1], [0], [0], [1], [0, 0, 1, 1], [], []>} : vector<32x63xf32>, vector<63x1024xf32>, vector<32x1024xf32> -> vector<32x1024xf32>
    %cst_83 = arith.constant 0.000000e+00 : f32
    %322 = vector.broadcast %cst_83 : f32 to vector<32x1024xf32>
    %323 = arith.select %311, %321, %322 : vector<32x1024xi1>, vector<32x1024xf32>
    %cst_84 = arith.constant dense<0.000000e+00> : vector<1024xf32>
    %324 = vector.multi_reduction <add>, %323, %cst_84 [0] : vector<32x1024xf32> to vector<1024xf32>
    %325 = vector.shape_cast %324 : vector<1024xf32> to vector<1x1024xf32>
    %cst_85 = arith.constant dense<0.000000e+00> : vector<1x32xf32>
    %326 = tpu.matmul %325, %291, %cst_85 {dimension_numbers = #tpu.dot_dimension_numbers<[1], [0], [0], [1], [0, 0, 1, 1], [], []>} : vector<1x1024xf32>, vector<1024x32xf32>, vector<1x32xf32> -> vector<1x32xf32>
    %327 = arith.addf %326, %292 : vector<1x32xf32>
    %328 = tpu.concatenate %319, %327 in 0 : vector<1x32xf32>, vector<1x32xf32> -> vector<2x32xf32>
    %c0_86 = arith.constant 0 : index
    %c0_87 = arith.constant 0 : index
    %329 = vector.load %arg12[%c0_86, %c0_87] : memref<2x32xf32, #tpu.memory_space<vmem>>, vector<2x32xf32>
    tpu.vector_store %arg12[%c0_86, %c0_87], %328 {strides = array<i32>} : memref<2x32xf32, #tpu.memory_space<vmem>>, vector<2x32xf32>,
    return
  }
}

</mosaic_0001>

<bundles_post_ra>
// kernel: forward.1
= control target key start
LH: loop header
LB: loop body
LE: loop exit
PB: predicated region body
PF: predicated region fallthrough
CT: control target
= control target key end

     0   :  { %s3717_s25 = smov 1   ;;  %v6101_v4 = vmov 0.0   ;;  %v3719_v6 = vmov 0   ;;  %s6078_s0 = inlined_call_operand.vmem [shape: f32[128,126], index: 0, kind: input, shape index: {}]   ;;  %s6079_s1 = inlined_call_operand.vmem [shape: f32[128,184], index: 1, kind: input, shape index: {}]   ;;  %s6080_s2 = inlined_call_operand.vmem [shape: f32[128,1], index: 2, kind: input, shape index: {}]   ;;  %s6081_s3 = inlined_call_operand.vmem [shape: f32[64,104], index: 3, kind: input, shape index: {}]   ;;  %s6082_s4 = inlined_call_operand.vmem [shape: f32[64,1], index: 4, kind: input, shape index: {}]   ;;  %s6083_s5 = inlined_call_operand.vmem [shape: f32[64,56], index: 5, kind: input, shape index: {}]   ;;  %s6084_s6 = inlined_call_operand.vmem [shape: f32[64,1], index: 6, kind: input, shape index: {}]   ;;  %s6085_s7 = inlined_call_operand.vmem [shape: f32[64,48], index: 7, kind: input, shape index: {}]   ;;  %s6086_s8 = inlined_call_operand.vmem [shape: f32[64,1], index: 8, kind: input, shape index: {}]   ;;  %s6087_s9 = inlined_call_operand.vmem [shape: f32[63,1024], index: 9, kind: input, shape index: {}]   ;;  %s6088_s10 = inlined_call_operand.vmem [shape: f32[1024,32], index: 10, kind: input, shape index: {}]   ;;  %s6089_s11 = inlined_call_operand.vmem [shape: f32[1,32], index: 11, kind: input, shape index: {}]   ;;  %s6090_s12 = inlined_call_operand.hbm [shape: f32[2,32], index: 12, kind: output, shape index: {}]  }
   0x1   :  { %v3791_v0 = vld [vmem:[%s6078_s0 + $0x78] sm:$0xff]  ;;  %v3796_v1 = vld [vmem:[%s6078_s0 + $0x68] sm:$0xff]  ;;  %v3805_v2 = vld [vmem:[%s6078_s0 + $0x70] sm:$0xff]  ;;  %306 = vmatprep.subr.mxu0 %v6101_v4  ;;  %3589 = vset.pattern.permute.xlu1 %v3719_v6 }
   0x2   :  { %103 = vrot.lane.b32.xlu0 %v3791_v0, %s3717_s25  ;;  %91 = vrot.lane.b32.xlu1 %v3796_v1, %s3717_s25  ;;  %v3810_v3 = vld [vmem:[%s6078_s0 + $0x60] sm:$0xff]  ;;  %v76_v5 = vld [vmem:[%s6078_s0 + $0x58] sm:$0xff] }
   0x3   :  { %307 = vmatpush1.msra.mxu0 %v76_v5  ;;  %v75_v7 = vld [vmem:[%s6078_s0 + $0x50] sm:$0xff]  ;;  %3590 = vset.pattern.permute.xlu0 %v3719_v6  ;;  %v74_v8 = vld [vmem:[%s6078_s0 + $0x48] sm:$0xff] }
   0x4   :  { %308 = vmatprep.subr.mxu0 %v6101_v4  ;;  %v67_v9 = vld [vmem:[%s6078_s0 + $0x10] sm:$0xff]  ;;  %v66_v10 = vld [vmem:[%s6078_s0 + $0x8] sm:$0xff] }
   0x5   :  { %309 = vmatpush1.msra.mxu0 %v75_v7 }
   0x6   :  { %97 = vrot.lane.b32.xlu0 %v3805_v2, %s3717_s25  ;;  %82 = vrot.lane.b32.xlu1 %v3810_v3, %s3717_s25 }
   0x7   :  { %17 = vsyncpa [#allocation3], 0  ;;  %310 = vmatprep.subr.mxu0 %v6101_v4  ;;  %v73_v11 = vld [vmem:[%s6078_s0 + $0x40] sm:$0xff]  ;;  %s3720_s24 = smov 127   ;;  %v72_v13 = vld [vmem:[%s6078_s0 + $0x38] sm:$0xff]  ;;  %vm257_vm0 = vcmask 457728   ;;  %v42_v19 = vlaneseq }
   0x8   :  { %311 = vmatpush1.msra.mxu0 %v74_v8  ;;  %v65_v12 = vld [vmem:[%s6078_s0] sm:$0xff]  ;;  %v130_v14 = vld [vmem:[%s6079_s1 + $0x8] sm:$0xff]  ;;  %v71_v15 = vld [vmem:[%s6078_s0 + $0x30] sm:$0xff]  ;;  %vm85_vm5 = vcmask 7168   ;;  %vm112_vm8 = vcmask 1022976   ;;  %vm565_vm10 = vcmask 850944  }
   0x9   :  { %312 = vmatprep.subr.mxu0 %v6101_v4  ;;  %3038 = vmatprep.mubr.msk.f32.mxu0 %vm257_vm0, %v130_v14  ;;  %v70_v16 = vld [vmem:[%s6078_s0 + $0x28] sm:$0xff]  ;;  %v69_v17 = vld [vmem:[%s6078_s0 + $0x20] sm:$0xff]  ;;  %v68_v18 = vld [vmem:[%s6078_s0 + $0x18] sm:$0xff]  ;;  %v3884_v23 = vand.u32 127, %v42_v19  ;;  %vm994_vm11 = vcmask 392192   ;;  %vm1482_vm12 = vcmask 1046528  }
   0xa   :  { %124 = vrot.lane.b32.xlu0 %v67_v9, %s3720_s24  ;;  %118 = vrot.lane.b32.xlu1 %v66_v10, %s3720_s24  ;;  %v163_v20 = vld [vmem:[%s6080_s2 + $0x10] sm:$0xff]  ;;  %v164_v21 = vld [vmem:[%s6080_s2 + $0x18] sm:$0xff]  ;;  %vm1469_vm13 = vcmask 515072   ;;  %s3721_s0 = smov 65  }
   0xb   :  { %313 = vmatpush1.msra.mxu0 %v73_v11  ;;  %v161_v22 = vld [vmem:[%s6080_s2] sm:$0xff]  ;;  %v175_v24 = vld [vmem:[%s6080_s2 + $0x70] sm:$0xff]  ;;  %v162_v25 = vld [vmem:[%s6080_s2 + $0x8] sm:$0xff]  ;;  %v3893_v26 = vmul.u32.u64.low 2181570690, %v3884_v23  ;;  %v3894_v27 = vmul.u32.u64.high 2181570690, %v3884_v23, %v3893_v26 }
   0xc   :  { %314 = vmatprep.subr.mxu0 %v6101_v4  ;;  %v173_v28 = vld [vmem:[%s6080_s2 + $0x60] sm:$0xff]  ;;  %v176_v29 = vld [vmem:[%s6080_s2 + $0x78] sm:$0xff]  ;;  %v171_v30 = vld [vmem:[%s6080_s2 + $0x50] sm:$0xff] }
   0xd   :  { %315 = vmatpush1.msra.mxu0 %v72_v13  ;;  %vm50_vm1 = vc.u32 %v3893_v26, 2181570690  ;;  %v174_v32 = vld [vmem:[%s6080_s2 + $0x68] sm:$0xff]  ;;  %v169_v33 = vld [vmem:[%s6080_s2 + $0x40] sm:$0xff]  ;;  %v172_v35 = vld [vmem:[%s6080_s2 + $0x58] sm:$0xff] }
   0xe   :  { %109 = vrot.lane.b32.xlu0 %v65_v12, %s3720_s24  ;;  %316 = vmatprep.subr.mxu0 %v6101_v4  ;;  %v51_v31 = vsel %vm50_vm1, 1, %v3719_v6  ;;  %v168_v36 = vld [vmem:[%s6080_s2 + $0x38] sm:$0xff]  ;;  %v170_v38 = vld [vmem:[%s6080_s2 + $0x48] sm:$0xff]  ;;  %v167_v40 = vld [vmem:[%s6080_s2 + $0x30] sm:$0xff] }
   0xf   :  { %317 = vmatpush1.msra.mxu0 %v71_v15  ;;  %189 = vperm.xlu1 %3589, %v163_v20   ;;  %v52_v34 = vadd.s32 %v3894_v27, %v51_v31  ;;  %v129_v59 = vld [vmem:[%s6079_s1] sm:$0xff]  ;;  %v132_v60 = vld [vmem:[%s6079_s1 + $0x18] sm:$0xff]  ;;  %v131_v61 = vld [vmem:[%s6079_s1 + $0x10] sm:$0xff] }
  0x10   :  { %318 = vmatprep.subr.mxu0 %v6101_v4  ;;  %v134_v62 = vld [vmem:[%s6079_s1 + $0x28] sm:$0xff]  ;;  %v133_v63 = vld [vmem:[%s6079_s1 + $0x20] sm:$0xff]  ;;  %v140_v5 = vld [vmem:[%s6079_s1 + $0x58] sm:$0xff] }
  0x11   :  { %319 = vmatpush1.msra.mxu0 %v70_v16  ;;  %v53_v37 = vshrl.u32 %v52_v34, 5  ;;  %v139_v6 = vld [vmem:[%s6079_s1 + $0x50] sm:$0xff]  ;;  %v142_v7 = vld [vmem:[%s6079_s1 + $0x68] sm:$0xff]  ;;  %v141_v8 = vld [vmem:[%s6079_s1 + $0x60] sm:$0xff] }
  0x12   :  { %320 = vmatprep.subr.mxu0 %v6101_v4  ;;  %194 = vperm.xlu0 %3590, %v164_v21   ;;  %v146_v11 = vld [vmem:[%s6079_s1 + $0x88] sm:$0xff]  ;;  %v148_v13 = vld [vmem:[%s6079_s1 + $0x98] sm:$0xff]  ;;  %v147_v14 = vld [vmem:[%s6079_s1 + $0x90] sm:$0xff] }
  0x13   :  { %321 = vmatpush1.msra.mxu0 %v69_v17  ;;  %179 = vperm.xlu1 %3589, %v161_v22   ;;  %v54_v39 = vmul.u32 63, %v53_v37  ;;  %v150_v15 = vld [vmem:[%s6079_s1 + $0xa8] sm:$0xff]  ;;  %v149_v16 = vld [vmem:[%s6079_s1 + $0xa0] sm:$0xff]  ;;  %v152_v17 = vld [vmem:[%s6079_s1 + $0xb8] sm:$0xff] }
  0x14   :  { %322 = vmatprep.subr.mxu0 %v6101_v4  ;;  %v154_v20 = vld [vmem:[%s6079_s1 + $0xc8] sm:$0xff]  ;;  %v153_v21 = vld [vmem:[%s6079_s1 + $0xc0] sm:$0xff]  ;;  %v156_v22 = vld [vmem:[%s6079_s1 + $0xd8] sm:$0xff] }
  0x15   :  { %323 = vmatpush1.msra.mxu0 %v68_v18  ;;  %v55_v41 = vsub.s32 %v3884_v23, %v54_v39  ;;  %v151_v18 = vld [vmem:[%s6079_s1 + $0xb0] sm:$0xff]  ;;  %v157_v26 = vld [vmem:[%s6079_s1 + $0xe0] sm:$0xff]  ;;  %v160_v27 = vld [vmem:[%s6079_s1 + $0xf8] sm:$0xff] }
  0x16   :  { %324 = vmatprep.subr.mxu0 %v6101_v4  ;;  %249 = vperm.xlu0 %3590, %v175_v24   ;;  %v155_v24 = vld [vmem:[%s6079_s1 + $0xd0] sm:$0xff]  ;;  %v951_v54 = vld [vmem:[%s6086_s8 + $0x28] sm:$0xff] }
  0x17   :  { %325 = vmatpush1.msra.mxu0 %v67_v9  ;;  %184 = vperm.xlu1 %3589, %v162_v25   ;;  %vm58_vm2 = vcmp.ne.s32.totalorder %v55_v41, 0  ;;  %vm59_vm3 = vcmp.lt.s32.totalorder %v55_v41, 0  ;;  %v61_v42 = vadd.s32 63, %v55_v41  ;;  %v144_v9 = vld [vmem:[%s6079_s1 + $0x78] sm:$0xff]  ;;  %v158_v25 = vld [vmem:[%s6079_s1 + $0xe8] sm:$0xff] }
  0x18   :  { %326 = vmatprep.subr.mxu0 %v6101_v4  ;;  %vm60_vm4 = vmand %vm59_vm3, %vm58_vm2 }
  0x19   :  { %327 = vmatpush1.msra.mxu0 %v66_v10  ;;  %v3926_v43 = vsel %vm60_vm4, %v61_v42, %v55_v41  ;;  %v143_v10 = vld [vmem:[%s6079_s1 + $0x70] sm:$0xff] }
  0x1a   :  { %328 = vmatprep.subr.mxu0 %v6101_v4  ;;  %239 = vperm.xlu0 %3590, %v173_v28   ;;  %vm3162_vm6 = vcmp.ne.s32.totalorder %v3926_v43, 0  ;;  %vm64_vm7 = vcmp.eq.s32.totalorder %v3926_v43, 62  ;;  %v159_v28 = vld [vmem:[%s6079_s1 + $0xf0] sm:$0xff]  ;;  %v943_v43 = vld [vmem:[%s6085_s7 + $0x28] sm:$0xff] }
  0x1b   :  { %329 = vmatpush1.msra.mxu0 %v65_v12  ;;  %254 = vperm.xlu1 %3589, %v176_v29   ;;  %vm3944_vm9 = vmneg %vm64_vm7  ;;  %v145_v12 = vld [vmem:[%s6079_s1 + $0x80] sm:$0xff] }
  0x1c   :  { %330 = vmatprep.subr.mxu0 %v6101_v4 }
  0x1e   :  { %229 = vperm.xlu0 %3590, %v171_v30  }
  0x1f   :  { %244 = vperm.xlu1 %3589, %v174_v32  }
  0x22   :  { %219 = vperm.xlu0 %3590, %v169_v33  }
  0x23   :  { %234 = vperm.xlu1 %3589, %v172_v35  }
  0x26   :  { %214 = vperm.xlu0 %3590, %v168_v36  }
  0x27   :  { %224 = vperm.xlu1 %3589, %v170_v38  }
  0x2b   :  { %209 = vperm.xlu1 %3589, %v167_v40  }
  0x74   :  { %v104_v44 = vpop.permute.xlu0 %103  ;;  %v92_v45 = vpop.permute.xlu1 %91 }
  0x75   :  { %v106_v46 = vsel %vm85_vm5, 0.0, %v104_v44  ;;  %v94_v50 = vsel %vm85_vm5, 0.0, %v92_v45 }
  0x76   :  { %3025 = vmatpush1.msk.msra.mxu0 %vm3162_vm6, %v106_v46 }
  0x77   :  { %332 = vmatprep.subr.mxu0 %v6101_v4 }
  0x78   :  { %v98_v47 = vpop.permute.xlu0 %97  ;;  %v83_v48 = vpop.permute.xlu1 %82 }
  0x79   :  { %v100_v49 = vsel %vm85_vm5, 0.0, %v98_v47  ;;  %v86_v51 = vsel %vm85_vm5, 0.0, %v83_v48 }
  0x7a   :  { %3027 = vmatpush1.msk.msra.mxu0 %vm3162_vm6, %v100_v49 }
  0x7b   :  { %334 = vmatprep.subr.mxu0 %v6101_v4 }
  0x7c   :  { %3029 = vmatpush1.msk.msra.mxu0 %vm3162_vm6, %v94_v50  ;;  %v125_v52 = vpop.permute.xlu0 %124  ;;  %v119_v53 = vpop.permute.xlu1 %118 }
  0x7d   :  { %336 = vmatprep.subr.mxu0 %v6101_v4  ;;  %v127_v55 = vsel %vm112_vm8, %v125_v52, 0.0  ;;  %v121_v56 = vsel %vm112_vm8, %v119_v53, 0.0 }
  0x7e   :  { %3031 = vmatpush1.msk.msra.mxu0 %vm3162_vm6, %v86_v51  ;;  %v166_v51 = vld [vmem:[%s6080_s2 + $0x28] sm:$0xff] }
  0x7f   :  { %356 = vmatprep.subr.mxu0 %v6101_v4 }
  0x80   :  { %3033 = vmatpush2.msk.msra.mxu0 %vm3944_vm9, %v127_v55  ;;  %v110_v57 = vpop.permute.xlu0 %109 }
  0x81   :  { %358 = vmatprep.subr.mxu0 %v6101_v4  ;;  %v113_v58 = vsel %vm112_vm8, %v110_v57, 0.0 }
  0x82   :  { %3035 = vmatpush2.msk.msra.mxu0 %vm3944_vm9, %v121_v56 }
  0x83   :  { %360 = vmatprep.subr.mxu0 %v6101_v4 }
  0x84   :  { %3037 = vmatpush2.msk.msra.mxu0 %vm3944_vm9, %v113_v58 }
  0x85   :  { %362 = vmatprep.subr.mxu0 %v6101_v4 }
  0x86   :  { %363 = vmatpush2.msra.mxu0 %v3791_v0  ;;  %v136_v0 = vld [vmem:[%s6079_s1 + $0x38] sm:$0xff] }
  0x87   :  { %364 = vmatprep.subr.mxu0 %v6101_v4 }
  0x88   :  { %365 = vmatpush2.msra.mxu0 %v3805_v2  ;;  %v138_v2 = vld [vmem:[%s6079_s1 + $0x48] sm:$0xff] }
  0x89   :  { %366 = vmatprep.subr.mxu0 %v6101_v4 }
  0x8a   :  { %367 = vmatpush2.msra.mxu0 %v3796_v1  ;;  %v135_v1 = vld [vmem:[%s6079_s1 + $0x30] sm:$0xff]  ;;  %v190_v29 = vpop.permute.xlu1 %189 }
  0x8b   :  { %368 = vmatprep.subr.mxu0 %v6101_v4 }
  0x8c   :  { %369 = vmatpush2.msra.mxu0 %v3810_v3  ;;  %v137_v3 = vld [vmem:[%s6079_s1 + $0x40] sm:$0xff] }
  0x8d   :  { %371 = vmatmul.mubr.f32.vlgmr.msra.gmra.mxu0 %v129_v59  ;;  %v195_v32 = vpop.permute.xlu0 %194 }
  0x8e   :  { %3039 = vmatprep.mubr.msk.f32.mxu0 %vm257_vm0, %v132_v60  ;;  %v180_v30 = vpop.permute.xlu1 %179 }
  0x91   :  { %376 = vmatmul.mubr.f32.gmra.mxu0 %v131_v61  ;;  %v4082_v36 = vpop.permute.xlu0 %249 }
  0x92   :  { %3040 = vmatprep.mubr.msk.f32.mxu0 %vm257_vm0, %v134_v62  ;;  %v185_v31 = vpop.permute.xlu1 %184 }
  0x95   :  { %381 = vmatmul.mubr.f32.gmra.mxu0 %v133_v63  ;;  %v240_v46 = vpop.permute.xlu0 %239 }
  0x96   :  { %3041 = vmatprep.mubr.msk.f32.mxu0 %vm257_vm0, %v136_v0  ;;  %v4080_v34 = vpop.permute.xlu1 %254  ;;  %v165_v0 = vld [vmem:[%s6080_s2 + $0x20] sm:$0xff] }
  0x99   :  { %386 = vmatmul.mubr.f32.gmra.mxu0 %v135_v1  ;;  %v230_v56 = vpop.permute.xlu0 %229 }
  0x9a   :  { %3042 = vmatprep.mubr.msk.f32.mxu0 %vm257_vm0, %v138_v2  ;;  %v245_v41 = vpop.permute.xlu1 %244 }
  0x9d   :  { %391 = vmatmul.mubr.f32.gmra.mxu0 %v137_v3  ;;  %v220_v1 = vpop.permute.xlu0 %219 }
  0x9e   :  { %3043 = vmatprep.mubr.msk.f32.mxu0 %vm257_vm0, %v140_v5  ;;  %v235_v52 = vpop.permute.xlu1 %234 }
  0xa1   :  { %396 = vmatmul.mubr.f32.gmra.mxu0 %v139_v6 }
  0xa2   :  { %3044 = vmatprep.mubr.msk.f32.mxu0 %vm257_vm0, %v142_v7  ;;  %v225_v62 = vpop.permute.xlu1 %224  ;;  %v215_v7 = vpop.permute.xlu0 %214 }
  0xa5   :  { %401 = vmatmul.mubr.f32.gmra.mxu0 %v141_v8 }
  0xa6   :  { %3045 = vmatprep.mubr.msk.f32.mxu0 %vm257_vm0, %v144_v9  ;;  %v210_v3 = vpop.permute.xlu1 %209 }
  0xa9   :  { %406 = vmatmul.mubr.f32.gmra.mxu0 %v143_v10 }
  0xaa   :  { %3046 = vmatprep.mubr.msk.f32.mxu0 %vm257_vm0, %v146_v11 }
  0xad   :  { %411 = vmatmul.mubr.f32.gmra.mxu0 %v145_v12 }
  0xae   :  { %3047 = vmatprep.mubr.msk.f32.mxu0 %vm257_vm0, %v148_v13 }
  0xb1   :  { %416 = vmatmul.mubr.f32.gmra.mxu0 %v147_v14 }
  0xb2   :  { %3048 = vmatprep.mubr.msk.f32.mxu0 %vm257_vm0, %v150_v15 }
  0xb5   :  { %421 = vmatmul.mubr.f32.gmra.mxu0 %v149_v16 }
  0xb6   :  { %3049 = vmatprep.mubr.msk.f32.mxu0 %vm257_vm0, %v152_v17 }
  0xb9   :  { %426 = vmatmul.mubr.f32.gmra.mxu0 %v151_v18 }
  0xba   :  { %3050 = vmatprep.mubr.msk.f32.mxu0 %vm257_vm0, %v154_v20 }
  0xbd   :  { %431 = vmatmul.mubr.f32.gmra.mxu0 %v153_v21 }
  0xbe   :  { %3051 = vmatprep.mubr.msk.f32.mxu0 %vm257_vm0, %v156_v22 }
  0xc1   :  { %436 = vmatmul.mubr.f32.gmra.mxu0 %v155_v24 }
  0xc2   :  { %3052 = vmatprep.mubr.msk.f32.mxu0 %vm257_vm0, %v158_v25 }
  0xc5   :  { %441 = vmatmul.mubr.f32.gmra.mxu0 %v157_v26 }
  0xc6   :  { %3053 = vmatprep.mubr.msk.f32.mxu0 %vm257_vm0, %v160_v27 }
  0xc9   :  { %446 = vmatmul.mubr.f32.gmra.mxu0 %v159_v28 }
  0xca   :  { %1838 = vmatprep.mubr.f32.mxu0 %v6101_v4 }
 0x14d   :  { %v372_v33 = vpop.f32.mrf.mxu0 }
 0x14e   :  { %v373_v37 = vadd.f32 %v372_v33, %v180_v30 }
 0x14f   :  { %v374_v35 = vpop.f32.mrf.mxu0 }
 0x150   :  { %v451_v42 = vmax.f32 %v373_v37, 0.0 }
 0x151   :  { %v377_v38 = vpop.f32.mrf.mxu0 }
 0x152   :  { %v378_v39 = vadd.f32 %v377_v38, %v185_v31 }
 0x153   :  { %v379_v40 = vpop.f32.mrf.mxu0 }
 0x154   :  { %v452_v44 = vmax.f32 %v378_v39, 0.0 }
 0x155   :  { %v382_v45 = vpop.f32.mrf.mxu0 }
 0x156   :  { %v4084_v47 = vmax.f32 %v451_v42, %v452_v44  ;;  %v383_v49 = vadd.f32 %v382_v45, %v190_v29 }
 0x157   :  { %v384_v48 = vpop.f32.mrf.mxu0 }
 0x158   :  { %498 = vrot.lane.b32.xlu1 %v4084_v47, %s3720_s24  ;;  %v453_v57 = vmax.f32 %v383_v49, 0.0 }
 0x159   :  { %v387_v50 = vpop.f32.mrf.mxu0 }
 0x15a   :  { %v388_v53 = vadd.f32 %v387_v50, %v195_v32 }
 0x15b   :  { %v389_v55 = vpop.f32.mrf.mxu0 }
 0x15c   :  { %v454_v58 = vmax.f32 %v388_v53, 0.0  ;;  %204 = vperm.xlu1 %3589, %v166_v51  }
 0x15d   :  { %v4091_v59 = vpop.f32.mrf.mxu0 }
 0x15e   :  { %v4093_v60 = vmax.f32 %v453_v57, %v454_v58 }
 0x15f   :  { %v394_v61 = vpop.f32.mrf.mxu0 }
 0x160   :  { %504 = vrot.lane.b32.xlu0 %v4093_v60, %s3720_s24 }
 0x161   :  { %v4097_v63 = vpop.f32.mrf.mxu0 }
 0x163   :  { %v399_v2 = vpop.f32.mrf.mxu0 }
 0x164   :  { %199 = vperm.xlu0 %3590, %v165_v0   ;;  %v521_v0 = vld [vmem:[%s6082_s4 + $0x20] sm:$0xff]  ;;  %v518_v2 = vld [vmem:[%s6082_s4 + $0x8] sm:$0xff] }
 0x165   :  { %v402_v5 = vpop.f32.mrf.mxu0 }
 0x166   :  { %v403_v8 = vadd.f32 %v402_v5, %v210_v3  ;;  %v519_v3 = vld [vmem:[%s6082_s4 + $0x10] sm:$0xff]  ;;  %v524_v5 = vld [vmem:[%s6082_s4 + $0x38] sm:$0xff] }
 0x167   :  { %v404_v6 = vpop.f32.mrf.mxu0 }
 0x168   :  { %v457_v12 = vmax.f32 %v403_v8, 0.0  ;;  %v522_v6 = vld [vmem:[%s6082_s4 + $0x28] sm:$0xff] }
 0x169   :  { %v407_v9 = vpop.f32.mrf.mxu0 }
 0x16a   :  { %v408_v10 = vadd.f32 %v407_v9, %v215_v7  ;;  %v520_v7 = vld [vmem:[%s6082_s4 + $0x18] sm:$0xff] }
 0x16b   :  { %v409_v11 = vpop.f32.mrf.mxu0 }
 0x16c   :  { %v458_v13 = vmax.f32 %v408_v10, 0.0 }
 0x16d   :  { %v412_v14 = vpop.f32.mrf.mxu0 }
 0x16e   :  { %v4102_v15 = vmax.f32 %v457_v12, %v458_v13  ;;  %v413_v17 = vadd.f32 %v412_v14, %v220_v1 }
 0x16f   :  { %v414_v16 = vpop.f32.mrf.mxu0 }
 0x170   :  { %v459_v22 = vmax.f32 %v413_v17, 0.0 }
 0x171   :  { %v417_v18 = vpop.f32.mrf.mxu0 }
 0x172   :  { %v418_v20 = vadd.f32 %v417_v18, %v225_v62  ;;  %v523_v62 = vld [vmem:[%s6082_s4 + $0x30] sm:$0xff] }
 0x173   :  { %v419_v21 = vpop.f32.mrf.mxu0 }
 0x174   :  { %v460_v24 = vmax.f32 %v418_v20, 0.0 }
 0x175   :  { %v422_v25 = vpop.f32.mrf.mxu0 }
 0x176   :  { %v4104_v26 = vmax.f32 %v459_v22, %v460_v24  ;;  %v511_v24 = vld [vmem:[%s6081_s3 + $0x10] sm:$0xff] }
 0x177   :  { %v424_v27 = vpop.f32.mrf.mxu0 }
 0x178   :  { %v514_v27 = vld [vmem:[%s6081_s3 + $0x28] sm:$0xff] }
 0x179   :  { %v427_v28 = vpop.f32.mrf.mxu0 }
 0x17a   :  { %v428_v45 = vadd.f32 %v427_v28, %v235_v52  ;;  %v517_v52 = vld [vmem:[%s6082_s4] sm:$0xff]  ;;  %v515_v28 = vld [vmem:[%s6081_s3 + $0x30] sm:$0xff] }
 0x17b   :  { %v429_v29 = vpop.f32.mrf.mxu0 }
 0x17c   :  { %v462_v53 = vmax.f32 %v428_v45, 0.0  ;;  %v516_v29 = vld [vmem:[%s6081_s3 + $0x38] sm:$0xff] }
 0x17d   :  { %v432_v30 = vpop.f32.mrf.mxu0 }
 0x17e   :  { %v433_v32 = vadd.f32 %v432_v30, %v240_v46  ;;  %v509_v46 = vld [vmem:[%s6081_s3] sm:$0xff] }
 0x17f   :  { %v434_v31 = vpop.f32.mrf.mxu0  ;;  %3519 = vmatprep.mubr.msk.f32.mxu1 %vm565_vm10, %v509_v46 }
 0x180   :  { %v463_v38 = vmax.f32 %v433_v32, 0.0 }
 0x181   :  { %v437_v33 = vpop.f32.mrf.mxu0 }
 0x182   :  { %v438_v35 = vadd.f32 %v437_v33, %v245_v41  ;;  %v423_v41 = vadd.f32 %v422_v25, %v230_v56  ;;  %v512_v25 = vld [vmem:[%s6081_s3 + $0x18] sm:$0xff] }
 0x183   :  { %v439_v37 = vpop.f32.mrf.mxu0 }
 0x184   :  { %v464_v39 = vmax.f32 %v438_v35, 0.0  ;;  %v461_v58 = vmax.f32 %v423_v41, 0.0 }
 0x185   :  { %v442_v40 = vpop.f32.mrf.mxu0 }
 0x186   :  { %v475_v42 = vmax.f32 %v463_v38, %v464_v39  ;;  %v443_v48 = vadd.f32 %v442_v40, %v4082_v36  ;;  %v473_v56 = vmax.f32 %v461_v58, %v462_v53 }
 0x187   :  { %v444_v44 = vpop.f32.mrf.mxu0 }
 0x188   :  { %v476_v49 = vsel %vm64_vm7, 0.0, %v475_v42  ;;  %v465_v55 = vmax.f32 %v443_v48, 0.0  ;;  %v474_v1 = vsel %vm64_vm7, 0.0, %v473_v56 }
 0x189   :  { %v447_v50 = vpop.f32.mrf.mxu0  ;;  %486 = vrot.lane.b32.xlu1 %v476_v49, %s3717_s25 }
 0x18a   :  { %v448_v51 = vadd.f32 %v447_v50, %v4080_v34 }
 0x18b   :  { %v449_v36 = vpop.f32.mrf.mxu0 }
 0x18c   :  { %v466_v57 = vmax.f32 %v448_v51, 0.0 }
 0x18d   :  { %527 = vperm.xlu1 %3589, %v517_v52  }
 0x18e   :  { %v477_v61 = vmax.f32 %v465_v55, %v466_v57 }
 0x190   :  { %v478_v34 = vsel %vm64_vm7, 0.0, %v477_v61 }
 0x191   :  { %492 = vrot.lane.b32.xlu0 %v478_v34, %s3717_s25  ;;  %557 = vperm.xlu1 %3589, %v523_v62   ;;  %v727_v34 = vld [vmem:[%s6083_s5] sm:$0xff] }
 0x195   :  { %480 = vrot.lane.b32.xlu0 %v474_v1, %s3717_s25  ;;  %547 = vperm.xlu1 %3589, %v521_v0  }
 0x199   :  { %532 = vperm.xlu0 %3590, %v518_v2   ;;  %537 = vperm.xlu1 %3589, %v519_v3  }
 0x19d   :  { %562 = vperm.xlu0 %3590, %v524_v5  }
 0x1a1   :  { %552 = vperm.xlu0 %3590, %v522_v6  }
 0x1a5   :  { %542 = vperm.xlu0 %3590, %v520_v7  }
 0x1ca   :  { %v499_v8 = vpop.permute.xlu1 %498 }
 0x1cb   :  { %v501_v11 = vsel %vm112_vm8, %v499_v8, 0.0 }
 0x1d2   :  { %v505_v9 = vpop.permute.xlu0 %504 }
 0x1d3   :  { %v507_v10 = vsel %vm112_vm8, %v505_v9, 0.0 }
 0x1d4   :  { %3493 = vmatprep.subr.msk.mxu1 %vm3944_vm9, %v507_v10 }
 0x1d5   :  { %3494 = vmatpush3.msk.msra.mxu1 %vm3944_vm9, %v507_v10 }
 0x1d6   :  { %3495 = vmatprep.subr.msk.mxu1 %vm3944_vm9, %v501_v11 }
 0x1d7   :  { %3496 = vmatpush3.msk.msra.mxu1 %vm3944_vm9, %v501_v11  ;;  %v205_v12 = vpop.permute.xlu1 %204  ;;  %v742_v11 = vld [vmem:[%s6084_s6 + $0x38] sm:$0xff] }
 0x1d8   :  { %3497 = vmatprep.subr.msk.mxu1 %vm3944_vm9, %v477_v61  ;;  %v398_v13 = vadd.f32 %v4097_v63, %v205_v12 }
 0x1d9   :  { %3498 = vmatpush3.msk.msra.mxu1 %vm3944_vm9, %v477_v61 }
 0x1da   :  { %3499 = vmatprep.subr.msk.mxu1 %vm3944_vm9, %v475_v42  ;;  %v456_v17 = vmax.f32 %v398_v13, 0.0  ;;  %v740_v13 = vld [vmem:[%s6084_s6 + $0x28] sm:$0xff] }
 0x1db   :  { %3500 = vmatpush3.msk.msra.mxu1 %vm3944_vm9, %v475_v42 }
 0x1dc   :  { %3501 = vmatprep.subr.msk.mxu1 %vm3944_vm9, %v473_v56 }
 0x1dd   :  { %3502 = vmatpush3.msk.msra.mxu1 %vm3944_vm9, %v473_v56 }
 0x1de   :  { %3503 = vmatprep.subr.msk.mxu1 %vm3944_vm9, %v4104_v26 }
 0x1df   :  { %v200_v14 = vpop.permute.xlu0 %199  ;;  %3504 = vmatpush3.msk.msra.mxu1 %vm3944_vm9, %v4104_v26  ;;  %v513_v26 = vld [vmem:[%s6081_s3 + $0x20] sm:$0xff] }
 0x1e0   :  { %v393_v16 = vadd.f32 %v4091_v59, %v200_v14  ;;  %3505 = vmatprep.subr.mxu1 %v4102_v15  ;;  %v741_v14 = vld [vmem:[%s6084_s6 + $0x30] sm:$0xff] }
 0x1e1   :  { %3506 = vmatpush3.msra.mxu1 %v4102_v15 }
 0x1e2   :  { %v455_v18 = vmax.f32 %v393_v16, 0.0  ;;  %v739_v16 = vld [vmem:[%s6084_s6 + $0x20] sm:$0xff] }
 0x1e4   :  { %v469_v20 = vmax.f32 %v455_v18, %v456_v17  ;;  %v738_v17 = vld [vmem:[%s6084_s6 + $0x18] sm:$0xff]  ;;  %v736_v18 = vld [vmem:[%s6084_s6 + $0x8] sm:$0xff] }
 0x1e6   :  { %3507 = vmatprep.subr.mxu1 %v469_v20 }
 0x1e7   :  { %3508 = vmatpush3.msra.mxu1 %v469_v20  ;;  %v737_v20 = vld [vmem:[%s6084_s6 + $0x10] sm:$0xff] }
 0x1e8   :  { %3509 = vmatprep.subr.mxu1 %v4093_v60 }
 0x1e9   :  { %3510 = vmatpush3.msra.mxu1 %v4093_v60 }
 0x1ea   :  { %3511 = vmatprep.subr.mxu1 %v4084_v47 }
 0x1eb   :  { %3512 = vmatpush3.msra.mxu1 %v4084_v47  ;;  %v510_v47 = vld [vmem:[%s6081_s3 + $0x8] sm:$0xff] }
 0x1fb   :  { %v487_v63 = vpop.permute.xlu1 %486 }
 0x1fc   :  { %v489_v15 = vsel %vm85_vm5, 0.0, %v487_v63  ;;  %v735_v63 = vld [vmem:[%s6084_s6] sm:$0xff] }
 0x203   :  { %v493_v21 = vpop.permute.xlu0 %492 }
 0x204   :  { %v495_v59 = vsel %vm85_vm5, 0.0, %v493_v21 }
 0x205   :  { %3513 = vmatprep.subr.msk.mxu1 %vm3162_vm6, %v495_v59 }
 0x206   :  { %3514 = vmatpush3.msk.msra.mxu1 %vm3162_vm6, %v495_v59 }
 0x207   :  { %v481_v22 = vpop.permute.xlu0 %480  ;;  %3515 = vmatprep.subr.msk.mxu1 %vm3162_vm6, %v489_v15 }
 0x208   :  { %v483_v60 = vsel %vm85_vm5, 0.0, %v481_v22  ;;  %3516 = vmatpush3.msk.msra.mxu1 %vm3162_vm6, %v489_v15  ;;  %v528_v31 = vpop.permute.xlu1 %527 }
 0x209   :  { %3517 = vmatprep.subr.msk.mxu1 %vm3162_vm6, %v483_v60 }
 0x20a   :  { %3518 = vmatpush3.msk.msra.mxu1 %vm3162_vm6, %v483_v60 }
 0x20b   :  { %3520 = vmatmul.mubr.msk.f32.vlgmr.msra.gmra.mxu1 %vm565_vm10, %v510_v47 }
 0x20c   :  { %3522 = vmatprep.mubr.msk.f32.mxu1 %vm565_vm10, %v511_v24  ;;  %v558_v33 = vpop.permute.xlu1 %557  ;;  %v728_v24 = vld [vmem:[%s6083_s5 + $0x8] sm:$0xff] }
 0x20f   :  { %3523 = vmatmul.mubr.msk.f32.gmra.mxu1 %vm565_vm10, %v512_v25  ;;  %v729_v25 = vld [vmem:[%s6083_s5 + $0x10] sm:$0xff] }
 0x210   :  { %3525 = vmatprep.mubr.msk.f32.mxu1 %vm565_vm10, %v513_v26  ;;  %v548_v37 = vpop.permute.xlu1 %547  ;;  %v730_v26 = vld [vmem:[%s6083_s5 + $0x18] sm:$0xff] }
 0x213   :  { %3526 = vmatmul.mubr.msk.f32.gmra.mxu1 %vm565_vm10, %v514_v27  ;;  %v731_v27 = vld [vmem:[%s6083_s5 + $0x20] sm:$0xff] }
 0x214   :  { %3528 = vmatprep.mubr.msk.f32.mxu1 %vm565_vm10, %v515_v28  ;;  %v533_v30 = vpop.permute.xlu0 %532  ;;  %v538_v46 = vpop.permute.xlu1 %537  ;;  %v732_v28 = vld [vmem:[%s6083_s5 + $0x28] sm:$0xff] }
 0x217   :  { %3529 = vmatmul.mubr.msk.f32.gmra.mxu1 %vm565_vm10, %v516_v29  ;;  %v733_v29 = vld [vmem:[%s6083_s5 + $0x30] sm:$0xff] }
 0x218   :  { %v563_v32 = vpop.permute.xlu0 %562  ;;  %3545 = vmatprep.mubr.msk.f32.mxu1 %vm257_vm0, %v727_v34 }
 0x21c   :  { %v553_v35 = vpop.permute.xlu0 %552 }
 0x220   :  { %v543_v44 = vpop.permute.xlu0 %542 }
 0x2cb   :  { %v3521_v38 = vpop.f32.mrf.mxu1 }
 0x2cc   :  { %v662_v39 = vadd.f32 %v3521_v38, %v533_v30  ;;  %v734_v30 = vld [vmem:[%s6083_s5 + $0x38] sm:$0xff] }
 0x2cd   :  { %v656_v40 = vpop.f32.mrf.mxu1 }
 0x2ce   :  { %v657_v42 = vadd.f32 %v656_v40, %v528_v31  ;;  %v696_v48 = vmax.f32 %v662_v39, 0.0 }
 0x2cf   :  { %v3524_v45 = vpop.f32.mrf.mxu1 }
 0x2d0   :  { %v695_v49 = vmax.f32 %v657_v42, 0.0  ;;  %v672_v50 = vadd.f32 %v3524_v45, %v543_v44 }
 0x2d1   :  { %v666_v41 = vpop.f32.mrf.mxu1 }
 0x2d2   :  { %v703_v51 = vmax.f32 %v695_v49, %v696_v48  ;;  %v667_v52 = vadd.f32 %v666_v41, %v538_v46  ;;  %v698_v53 = vmax.f32 %v672_v50, 0.0  ;;  %v938_v49 = vld [vmem:[%s6085_s7] sm:$0xff] }
 0x2d3   :  { %v3527_v36 = vpop.f32.mrf.mxu1 }
 0x2d4   :  { %v697_v55 = vmax.f32 %v667_v52, 0.0  ;;  %v682_v57 = vadd.f32 %v3527_v36, %v553_v35  ;;  %722 = vrot.lane.b32.xlu1 %v703_v51, %s3720_s24 }
 0x2d5   :  { %v676_v58 = vpop.f32.mrf.mxu1 }
 0x2d6   :  { %v704_v61 = vmax.f32 %v697_v55, %v698_v53  ;;  %v677_v62 = vadd.f32 %v676_v58, %v548_v37  ;;  %v700_v0 = vmax.f32 %v682_v57, 0.0 }
 0x2d7   :  { %v3530_v56 = vpop.f32.mrf.mxu1 }
 0x2d8   :  { %v699_v1 = vmax.f32 %v677_v62, 0.0  ;;  %v692_v2 = vadd.f32 %v3530_v56, %v563_v32 }
 0x2d9   :  { %v686_v3 = vpop.f32.mrf.mxu1 }
 0x2da   :  { %v705_v5 = vmax.f32 %v699_v1, %v700_v0  ;;  %v687_v6 = vadd.f32 %v686_v3, %v558_v33  ;;  %v702_v7 = vmax.f32 %v692_v2, 0.0 }
 0x2dc   :  { %v701_v8 = vmax.f32 %v687_v6, 0.0  ;;  %v706_v9 = vsel %vm64_vm7, 0.0, %v705_v5 }
 0x2dd   :  { %710 = vrot.lane.b32.xlu1 %v706_v9, %s3717_s25 }
 0x2de   :  { %v707_v10 = vmax.f32 %v701_v8, %v702_v7 }
 0x2e0   :  { %v708_v12 = vsel %vm64_vm7, 0.0, %v707_v10 }
 0x2e1   :  { %716 = vrot.lane.b32.xlu0 %v708_v12, %s3717_s25  ;;  %780 = vperm.xlu1 %3589, %v742_v11   ;;  %v946_v12 = vld [vmem:[%s6086_s8] sm:$0xff] }
 0x2e5   :  { %770 = vperm.xlu0 %3590, %v740_v13   ;;  %775 = vperm.xlu1 %3589, %v741_v14   ;;  %v950_v14 = vld [vmem:[%s6086_s8 + $0x20] sm:$0xff] }
 0x2e9   :  { %765 = vperm.xlu0 %3590, %v739_v16   ;;  %760 = vperm.xlu1 %3589, %v738_v17   ;;  %v947_v16 = vld [vmem:[%s6086_s8 + $0x8] sm:$0xff]  ;;  %v948_v17 = vld [vmem:[%s6086_s8 + $0x10] sm:$0xff] }
 0x2ed   :  { %750 = vperm.xlu0 %3590, %v736_v18   ;;  %755 = vperm.xlu1 %3589, %v737_v20   ;;  %v952_v18 = vld [vmem:[%s6086_s8 + $0x30] sm:$0xff]  ;;  %v949_v20 = vld [vmem:[%s6086_s8 + $0x18] sm:$0xff] }
 0x2f1   :  { %745 = vperm.xlu0 %3590, %v735_v63   ;;  %v953_v63 = vld [vmem:[%s6086_s8 + $0x38] sm:$0xff] }
 0x346   :  { %v723_v21 = vpop.permute.xlu1 %722 }
 0x347   :  { %v725_v59 = vsel %vm112_vm8, %v723_v21, 0.0 }
 0x348   :  { %3531 = vmatprep.subr.msk.mxu1 %vm3944_vm9, %v725_v59 }
 0x349   :  { %3532 = vmatpush3.msk.msra.mxu1 %vm3944_vm9, %v725_v59 }
 0x34a   :  { %3533 = vmatprep.subr.msk.mxu1 %vm3944_vm9, %v707_v10 }
 0x34b   :  { %3534 = vmatpush3.msk.msra.mxu1 %vm3944_vm9, %v707_v10 }
 0x34c   :  { %3535 = vmatprep.subr.msk.mxu1 %vm3944_vm9, %v705_v5 }
 0x34d   :  { %3536 = vmatpush3.msk.msra.mxu1 %vm3944_vm9, %v705_v5 }
 0x34e   :  { %3537 = vmatprep.subr.mxu1 %v704_v61 }
 0x34f   :  { %3538 = vmatpush3.msra.mxu1 %v704_v61  ;;  %v711_v15 = vpop.permute.xlu1 %710 }
 0x350   :  { %3539 = vmatprep.subr.mxu1 %v703_v51  ;;  %v713_v47 = vsel %vm85_vm5, 0.0, %v711_v15 }
 0x351   :  { %3540 = vmatpush3.msra.mxu1 %v703_v51 }
 0x353   :  { %v717_v22 = vpop.permute.xlu0 %716 }
 0x354   :  { %v719_v60 = vsel %vm85_vm5, 0.0, %v717_v22 }
 0x355   :  { %3541 = vmatprep.subr.msk.mxu1 %vm3162_vm6, %v719_v60 }
 0x356   :  { %3542 = vmatpush3.msk.msra.mxu1 %vm3162_vm6, %v719_v60  ;;  %v939_v60 = vld [vmem:[%s6085_s7 + $0x8] sm:$0xff] }
 0x357   :  { %3543 = vmatprep.subr.msk.mxu1 %vm3162_vm6, %v713_v47 }
 0x358   :  { %3544 = vmatpush3.msk.msra.mxu1 %vm3162_vm6, %v713_v47  ;;  %v940_v47 = vld [vmem:[%s6085_s7 + $0x10] sm:$0xff] }
 0x359   :  { %3546 = vmatmul.mubr.msk.f32.vlgmr.msra.gmra.mxu1 %vm257_vm0, %v728_v24  ;;  %v941_v24 = vld [vmem:[%s6085_s7 + $0x18] sm:$0xff] }
 0x35a   :  { %3548 = vmatprep.mubr.msk.f32.mxu1 %vm257_vm0, %v729_v25  ;;  %v942_v25 = vld [vmem:[%s6085_s7 + $0x20] sm:$0xff] }
 0x35c   :  { %v781_v31 = vpop.permute.xlu1 %780 }
 0x35d   :  { %3549 = vmatmul.mubr.msk.f32.gmra.mxu1 %vm257_vm0, %v730_v26  ;;  %v944_v26 = vld [vmem:[%s6085_s7 + $0x30] sm:$0xff] }
 0x35e   :  { %3551 = vmatprep.mubr.msk.f32.mxu1 %vm257_vm0, %v731_v27  ;;  %v945_v27 = vld [vmem:[%s6085_s7 + $0x38] sm:$0xff] }
 0x360   :  { %v771_v32 = vpop.permute.xlu0 %770  ;;  %v776_v35 = vpop.permute.xlu1 %775 }
 0x361   :  { %3552 = vmatmul.mubr.msk.f32.gmra.mxu1 %vm257_vm0, %v732_v28  ;;  %v1193_v28 = vld [vmem:[%s6087_s9 + $0x1c8] sm:$0x7f] }
 0x362   :  { %3554 = vmatprep.mubr.msk.f32.mxu1 %vm257_vm0, %v733_v29  ;;  %v1199_v29 = vld [vmem:[%s6087_s9 + $0x1f8] sm:$0x7f] }
 0x363   :  { %3132 = vmatprep.subr.msk.mxu0 %vm1482_vm12, %v1199_v29 }
 0x364   :  { %v766_v38 = vpop.permute.xlu0 %765  ;;  %v761_v42 = vpop.permute.xlu1 %760 }
 0x365   :  { %3555 = vmatmul.mubr.msk.f32.gmra.mxu1 %vm257_vm0, %v734_v30  ;;  %v1192_v30 = vld [vmem:[%s6087_s9 + $0x1c0] sm:$0x7f] }
 0x366   :  { %3569 = vmatprep.mubr.msk.f32.mxu1 %vm994_vm11, %v938_v49  ;;  %v1174_v49 = vld [vmem:[%s6087_s9 + $0x130] sm:$0xff] }
 0x368   :  { %v751_v45 = vpop.permute.xlu0 %750  ;;  %v756_v36 = vpop.permute.xlu1 %755 }
 0x36c   :  { %v746_v57 = vpop.permute.xlu0 %745 }
 0x419   :  { %v3547_v33 = vpop.f32.mrf.mxu1 }
 0x41a   :  { %v879_v53 = vadd.f32 %v3547_v33, %v751_v45  ;;  %v1191_v33 = vld [vmem:[%s6087_s9 + $0x1b8] sm:$0xff] }
 0x41b   :  { %v873_v37 = vpop.f32.mrf.mxu1  ;;  %v1175_v45 = vld [vmem:[%s6087_s9 + $0x138] sm:$0xff] }
 0x41c   :  { %v874_v34 = vadd.f32 %v873_v37, %v746_v57  ;;  %v913_v5 = vmax.f32 %v879_v53, 0.0  ;;  %v1190_v37 = vld [vmem:[%s6087_s9 + $0x1b0] sm:$0xff]  ;;  %v1152_v53 = vld [vmem:[%s6087_s9 + $0x80] sm:$0xff]  ;;  %v1145_v57 = vld [vmem:[%s6087_s9 + $0x48] sm:$0xff] }
 0x41d   :  { %v3550_v39 = vpop.f32.mrf.mxu1 }
 0x41e   :  { %v889_v41 = vadd.f32 %v3550_v39, %v761_v42  ;;  %v912_v9 = vmax.f32 %v874_v34, 0.0  ;;  %v1183_v39 = vld [vmem:[%s6087_s9 + $0x178] sm:$0xff]  ;;  %v1182_v42 = vld [vmem:[%s6087_s9 + $0x170] sm:$0xff] }
 0x41f   :  { %v883_v40 = vpop.f32.mrf.mxu1  ;;  %v1143_v34 = vld [vmem:[%s6087_s9 + $0x38] sm:$0xff] }
 0x420   :  { %v884_v58 = vadd.f32 %v883_v40, %v756_v36  ;;  %v915_v0 = vmax.f32 %v889_v41, 0.0  ;;  %v1176_v40 = vld [vmem:[%s6087_s9 + $0x140] sm:$0xff]  ;;  %v1159_v36 = vld [vmem:[%s6087_s9 + $0xb8] sm:$0xff] }
 0x421   :  { %v3553_v44 = vpop.f32.mrf.mxu1  ;;  %v1160_v41 = vld [vmem:[%s6087_s9 + $0xc0] sm:$0xff] }
 0x422   :  { %v899_v50 = vadd.f32 %v3553_v44, %v771_v32  ;;  %v914_v6 = vmax.f32 %v884_v58, 0.0  ;;  %v921_v10 = vmax.f32 %v913_v5, %v915_v0  ;;  %v1185_v32 = vld [vmem:[%s6087_s9 + $0x188] sm:$0xff]  ;;  %v1151_v58 = vld [vmem:[%s6087_s9 + $0x78] sm:$0xff]  ;;  %v1136_v0 = vld [vmem:[%s6087_s9] sm:$0xff] }
 0x423   :  { %v893_v48 = vpop.f32.mrf.mxu1  ;;  %v1169_v44 = vld [vmem:[%s6087_s9 + $0x108] sm:$0xff] }
 0x424   :  { %v894_v51 = vadd.f32 %v893_v48, %v766_v38  ;;  %v917_v61 = vmax.f32 %v899_v50, 0.0  ;;  %v920_v13 = vmax.f32 %v912_v9, %v914_v6  ;;  %v1177_v38 = vld [vmem:[%s6087_s9 + $0x148] sm:$0xff]  ;;  %v1168_v48 = vld [vmem:[%s6087_s9 + $0x100] sm:$0xff] }
 0x425   :  { %v3556_v46 = vpop.f32.mrf.mxu1  ;;  %v1161_v50 = vld [vmem:[%s6087_s9 + $0xc8] sm:$0xff] }
 0x426   :  { %v909_v52 = vadd.f32 %v3556_v46, %v781_v31  ;;  %v916_v1 = vmax.f32 %v894_v51, 0.0  ;;  %v1198_v31 = vld [vmem:[%s6087_s9 + $0x1f0] sm:$0x7f]  ;;  %v1167_v46 = vld [vmem:[%s6087_s9 + $0xf8] sm:$0xff] }
 0x427   :  { %v903_v55 = vpop.f32.mrf.mxu1  ;;  %3133 = vmatpush1.msk.msra.mxu0 %vm1482_vm12, %v1198_v31  ;;  %v1166_v51 = vld [vmem:[%s6087_s9 + $0xf0] sm:$0xff] }
 0x428   :  { %v919_v62 = vmax.f32 %v909_v52, 0.0  ;;  %v904_v56 = vadd.f32 %v903_v55, %v776_v35  ;;  %1792 = vmatprep.subr.mxu0 %v1191_v33  ;;  %v1184_v35 = vld [vmem:[%s6087_s9 + $0x180] sm:$0xff]  ;;  %v1153_v52 = vld [vmem:[%s6087_s9 + $0x88] sm:$0xff]  ;;  %v1158_v55 = vld [vmem:[%s6087_s9 + $0xb0] sm:$0xff] }
 0x429   :  { %1793 = vmatpush1.msra.mxu0 %v1190_v37  ;;  %v1187_v33 = vld [vmem:[%s6087_s9 + $0x198] sm:$0xff] }
 0x42a   :  { %v923_v2 = vmax.f32 %v917_v61, %v919_v62  ;;  %v918_v3 = vmax.f32 %v904_v56, 0.0  ;;  %1794 = vmatprep.subr.mxu0 %v1183_v39  ;;  %v1144_v61 = vld [vmem:[%s6087_s9 + $0x40] sm:$0xff]  ;;  %v1150_v62 = vld [vmem:[%s6087_s9 + $0x70] sm:$0xff]  ;;  %v1137_v56 = vld [vmem:[%s6087_s9 + $0x8] sm:$0xff] }
 0x42b   :  { %1795 = vmatpush1.msra.mxu0 %v1182_v42  ;;  %v1186_v39 = vld [vmem:[%s6087_s9 + $0x190] sm:$0xff]  ;;  %v1179_v42 = vld [vmem:[%s6087_s9 + $0x158] sm:$0xff] }
 0x42c   :  { %v922_v7 = vmax.f32 %v916_v1, %v918_v3  ;;  %3557 = vmatprep.subr.msk.mxu1 %vm3944_vm9, %v923_v2  ;;  %v925_v8 = vsel %vm64_vm7, 0.0, %v923_v2  ;;  %1796 = vmatprep.subr.mxu0 %v1175_v45  ;;  %v1142_v1 = vld [vmem:[%s6087_s9 + $0x30] sm:$0xff]  ;;  %v1171_v45 = vld [vmem:[%s6087_s9 + $0x118] sm:$0xff] }
 0x42d   :  { %3558 = vmatpush3.msk.msra.mxu1 %vm3944_vm9, %v923_v2  ;;  %930 = vrot.lane.b32.xlu0 %v925_v8, %s3717_s25  ;;  %v1195_v2 = vld [vmem:[%s6087_s9 + $0x1d8] sm:$0x7f] }
 0x42e   :  { %3559 = vmatprep.subr.msk.mxu1 %vm3944_vm9, %v922_v7  ;;  %v924_v11 = vsel %vm64_vm7, 0.0, %v922_v7  ;;  %1797 = vmatpush1.msra.mxu0 %v1174_v49  ;;  %v1163_v49 = vld [vmem:[%s6087_s9 + $0xd8] sm:$0xff] }
 0x42f   :  { %3560 = vmatpush3.msk.msra.mxu1 %vm3944_vm9, %v922_v7  ;;  %928 = vrot.lane.b32.xlu1 %v924_v11, %s3717_s25 }
 0x430   :  { %3561 = vmatprep.subr.mxu1 %v921_v10  ;;  %1798 = vmatprep.subr.mxu0 %v1167_v46  ;;  %v1155_v46 = vld [vmem:[%s6087_s9 + $0x98] sm:$0xff] }
 0x431   :  { %956 = vperm.xlu0 %3590, %v946_v12   ;;  %3562 = vmatpush3.msra.mxu1 %v921_v10 }
 0x432   :  { %3563 = vmatprep.subr.mxu1 %v920_v13  ;;  %1799 = vmatpush1.msra.mxu0 %v1166_v51  ;;  %v1147_v51 = vld [vmem:[%s6087_s9 + $0x58] sm:$0xff] }
 0x433   :  { %976 = vperm.xlu1 %3589, %v950_v14   ;;  %3564 = vmatpush3.msra.mxu1 %v920_v13 }
 0x434   :  { %1800 = vmatprep.subr.mxu0 %v1159_v36  ;;  %v1139_v36 = vld [vmem:[%s6087_s9 + $0x18] sm:$0xff] }
 0x435   :  { %961 = vperm.xlu0 %3590, %v947_v16   ;;  %1801 = vmatpush1.msra.mxu0 %v1158_v55  ;;  %v1197_v55 = vld [vmem:[%s6087_s9 + $0x1e8] sm:$0x7f] }
 0x436   :  { %1802 = vmatprep.subr.mxu0 %v1151_v58  ;;  %v1189_v58 = vld [vmem:[%s6087_s9 + $0x1a8] sm:$0xff] }
 0x437   :  { %981 = vperm.xlu1 %3589, %v951_v54   ;;  %1803 = vmatpush1.msra.mxu0 %v1150_v62  ;;  %v1181_v62 = vld [vmem:[%s6087_s9 + $0x168] sm:$0xff] }
 0x438   :  { %1804 = vmatprep.subr.mxu0 %v1143_v34  ;;  %v1173_v34 = vld [vmem:[%s6087_s9 + $0x128] sm:$0xff] }
 0x439   :  { %966 = vperm.xlu0 %3590, %v948_v17   ;;  %1805 = vmatpush1.msra.mxu0 %v1142_v1  ;;  %v1165_v1 = vld [vmem:[%s6087_s9 + $0xe8] sm:$0xff] }
 0x43b   :  { %986 = vperm.xlu1 %3589, %v952_v18  }
 0x43d   :  { %971 = vperm.xlu0 %3590, %v949_v20  }
 0x43f   :  { %991 = vperm.xlu1 %3589, %v953_v63  }
 0x49f   :  { %v931_v21 = vpop.permute.xlu0 %930 }
 0x4a0   :  { %v935_v59 = vsel %vm85_vm5, 0.0, %v931_v21 }
 0x4a1   :  { %3565 = vmatprep.subr.msk.mxu1 %vm3162_vm6, %v935_v59  ;;  %v929_v15 = vpop.permute.xlu1 %928 }
 0x4a2   :  { %v934_v22 = vsel %vm85_vm5, 0.0, %v929_v15  ;;  %3566 = vmatpush3.msk.msra.mxu1 %vm3162_vm6, %v935_v59 }
 0x4a3   :  { %3567 = vmatprep.subr.msk.mxu1 %vm3162_vm6, %v934_v22 }
 0x4a4   :  { %3568 = vmatpush3.msk.msra.mxu1 %vm3162_vm6, %v934_v22 }
 0x4a5   :  { %3570 = vmatmul.mubr.msk.f32.vlgmr.msra.gmra.mxu1 %vm994_vm11, %v939_v60  ;;  %3114 = vmatprep.subr.msk.mxu1 %vm1482_vm12, %v1193_v28 }
 0x4a6   :  { %3572 = vmatprep.mubr.msk.f32.mxu1 %vm994_vm11, %v940_v47  ;;  %3115 = vmatpush1.msk.msra.mxu1 %vm1482_vm12, %v1192_v30 }
 0x4a7   :  { %1525 = vmatprep.subr.mxu1 %v1185_v32  ;;  %v1194_v32 = vld [vmem:[%s6087_s9 + $0x1d0] sm:$0x7f] }
 0x4a8   :  { %1526 = vmatpush1.msra.mxu1 %v1184_v35 }
 0x4a9   :  { %3573 = vmatmul.mubr.msk.f32.gmra.mxu1 %vm994_vm11, %v941_v24  ;;  %1527 = vmatprep.subr.mxu1 %v1177_v38 }
 0x4aa   :  { %3575 = vmatprep.mubr.msk.f32.mxu1 %vm994_vm11, %v942_v25  ;;  %1528 = vmatpush1.msra.mxu1 %v1176_v40 }
 0x4ab   :  { %1529 = vmatprep.subr.mxu1 %v1169_v44  ;;  %v1178_v44 = vld [vmem:[%s6087_s9 + $0x150] sm:$0xff] }
 0x4ac   :  { %1530 = vmatpush1.msra.mxu1 %v1168_v48  ;;  %v957_v3 = vpop.permute.xlu0 %956  ;;  %v1170_v48 = vld [vmem:[%s6087_s9 + $0x110] sm:$0xff] }
 0x4ad   :  { %3576 = vmatmul.mubr.msk.f32.gmra.mxu1 %vm994_vm11, %v943_v43  ;;  %1531 = vmatprep.subr.mxu1 %v1161_v50  ;;  %v1162_v50 = vld [vmem:[%s6087_s9 + $0xd0] sm:$0xff] }
 0x4ae   :  { %3578 = vmatprep.mubr.msk.f32.mxu1 %vm994_vm11, %v944_v26  ;;  %1532 = vmatpush1.msra.mxu1 %v1160_v41  ;;  %v977_v5 = vpop.permute.xlu1 %976  ;;  %v1154_v41 = vld [vmem:[%s6087_s9 + $0x90] sm:$0xff] }
 0x4af   :  { %1533 = vmatprep.subr.mxu1 %v1153_v52  ;;  %v1146_v52 = vld [vmem:[%s6087_s9 + $0x50] sm:$0xff] }
 0x4b0   :  { %1534 = vmatpush1.msra.mxu1 %v1152_v53  ;;  %v962_v6 = vpop.permute.xlu0 %961  ;;  %v1138_v53 = vld [vmem:[%s6087_s9 + $0x10] sm:$0xff] }
 0x4b1   :  { %3579 = vmatmul.mubr.msk.f32.gmra.mxu1 %vm994_vm11, %v945_v27  ;;  %1535 = vmatprep.subr.mxu1 %v1145_v57  ;;  %v1196_v57 = vld [vmem:[%s6087_s9 + $0x1e0] sm:$0x7f] }
 0x4b2   :  { %1571 = vmatprep.mubr.f32.mxu1 %v6101_v4  ;;  %1536 = vmatpush1.msra.mxu1 %v1144_v61  ;;  %v982_v7 = vpop.permute.xlu1 %981  ;;  %v1188_v61 = vld [vmem:[%s6087_s9 + $0x1a0] sm:$0xff] }
 0x4b3   :  { %1537 = vmatprep.subr.mxu1 %v1137_v56  ;;  %v1180_v56 = vld [vmem:[%s6087_s9 + $0x160] sm:$0xff] }
 0x4b4   :  { %1538 = vmatpush1.msra.mxu1 %v1136_v0  ;;  %v967_v10 = vpop.permute.xlu0 %966  ;;  %v1172_v0 = vld [vmem:[%s6087_s9 + $0x120] sm:$0xff] }
 0x4b5   :  { %3120 = vmatprep.subr.msk.mxu1 %vm1482_vm12, %v1195_v2  ;;  %v1164_v2 = vld [vmem:[%s6087_s9 + $0xe0] sm:$0xff] }
 0x4b6   :  { %v987_v12 = vpop.permute.xlu1 %986 }
 0x4b8   :  { %v972_v18 = vpop.permute.xlu0 %971 }
 0x4ba   :  { %v992_v22 = vpop.permute.xlu1 %991 }
 0x565   :  { %v3571_v8 = vpop.f32.mrf.mxu1 }
 0x566   :  { %v1091_v14 = vadd.f32 %v3571_v8, %v962_v6  ;;  %v1149_v6 = vld [vmem:[%s6087_s9 + $0x68] sm:$0xff] }
 0x567   :  { %v1085_v9 = vpop.f32.mrf.mxu1  ;;  %v1141_v8 = vld [vmem:[%s6087_s9 + $0x28] sm:$0xff] }
 0x568   :  { %v1086_v16 = vadd.f32 %v1085_v9, %v957_v3  ;;  %v1125_v63 = vmax.f32 %v1091_v14, 0.0  ;;  %v1157_v3 = vld [vmem:[%s6087_s9 + $0xa8] sm:$0xff]  ;;  %v1140_v9 = vld [vmem:[%s6087_s9 + $0x20] sm:$0xff] }
 0x569   :  { %v3574_v11 = vpop.f32.mrf.mxu1  ;;  %v1229_v14 = vld [vmem:[%s6088_s10 + $0xe8] sm:$0xff] }
 0x56a   :  { %v1101_v21 = vadd.f32 %v3574_v11, %v972_v18  ;;  %v1124_v60 = vmax.f32 %v1086_v16, 0.0  ;;  %v1215_v11 = vld [vmem:[%s6088_s10 + $0x78] sm:$0xff]  ;;  %v1213_v16 = vld [vmem:[%s6088_s10 + $0x68] sm:$0xff] }
 0x56b   :  { %v1095_v13 = vpop.f32.mrf.mxu1  ;;  %v1227_v18 = vld [vmem:[%s6088_s10 + $0xd8] sm:$0xff] }
 0x56c   :  { %v1096_v24 = vadd.f32 %v1095_v13, %v967_v10  ;;  %v1127_v28 = vmax.f32 %v1101_v21, 0.0  ;;  %v1231_v10 = vld [vmem:[%s6088_s10 + $0xf8] sm:$0xff]  ;;  %v1214_v13 = vld [vmem:[%s6088_s10 + $0x70] sm:$0xff] }
 0x56d   :  { %v3577_v54 = vpop.f32.mrf.mxu1  ;;  %v1210_v21 = vld [vmem:[%s6088_s10 + $0x50] sm:$0xff] }
 0x56e   :  { %v1111_v17 = vadd.f32 %v3577_v54, %v982_v7  ;;  %v1126_v35 = vmax.f32 %v1096_v24, 0.0  ;;  %v1148_v7 = vld [vmem:[%s6087_s9 + $0x60] sm:$0xff]  ;;  %v1263_v24 = vld [vmem:[%s6088_s10 + $0x1f8] sm:$0xff] }
 0x56f   :  { %v1105_v20 = vpop.f32.mrf.mxu1  ;;  %v1228_v54 = vld [vmem:[%s6088_s10 + $0xe0] sm:$0xff]  ;;  %3248 = vmatprep.subr.mxu0 %v1263_v24 }
 0x570   :  { %v1129_v59 = vmax.f32 %v1111_v17, 0.0  ;;  %v1106_v15 = vadd.f32 %v1105_v20, %v977_v5  ;;  %v1156_v5 = vld [vmem:[%s6087_s9 + $0xa0] sm:$0xff]  ;;  %v1211_v20 = vld [vmem:[%s6088_s10 + $0x58] sm:$0xff] }
 0x571   :  { %v3580_v47 = vpop.f32.mrf.mxu1  ;;  %v1212_v17 = vld [vmem:[%s6088_s10 + $0x60] sm:$0xff] }
 0x572   :  { %v4495_v25 = vmax.f32 %v1125_v63, %v1129_v59  ;;  %v1128_v43 = vmax.f32 %v1106_v15, 0.0  ;;  %v1121_v26 = vadd.f32 %v3580_v47, %v992_v22  ;;  %v1226_v63 = vld [vmem:[%s6088_s10 + $0xd0] sm:$0xff]  ;;  %v1225_v59 = vld [vmem:[%s6088_s10 + $0xc8] sm:$0xff]  ;;  %v1224_v22 = vld [vmem:[%s6088_s10 + $0xc0] sm:$0xff] }
 0x573   :  { %v1115_v27 = vpop.f32.mrf.mxu1  ;;  %v1209_v15 = vld [vmem:[%s6088_s10 + $0x48] sm:$0xff]  ;;  %v1223_v47 = vld [vmem:[%s6088_s10 + $0xb8] sm:$0xff] }
 0x574   :  { %v4497_v29 = vmax.f32 %v1124_v60, %v1128_v43  ;;  %v1131_v30 = vmax.f32 %v1121_v26, 0.0  ;;  %v1116_v31 = vadd.f32 %v1115_v27, %v987_v12  ;;  %2249 = vrot.lane.b32.xlu1 %v4495_v25, %s3721_s0  ;;  %v1230_v12 = vld [vmem:[%s6088_s10 + $0xf0] sm:$0xff]  ;;  %v1208_v60 = vld [vmem:[%s6088_s10 + $0x40] sm:$0xff]  ;;  %v1247_v43 = vld [vmem:[%s6088_s10 + $0x178] sm:$0xff] }
 0x575   :  { %v1222_v26 = vld [vmem:[%s6088_s10 + $0xb0] sm:$0xff] }
 0x576   :  { %v4506_v37 = vmax.f32 %v1127_v28, %v1131_v30  ;;  %v1130_v38 = vmax.f32 %v1116_v31, 0.0  ;;  %2247 = vrot.lane.b32.xlu0 %v4497_v29, %s3721_s0  ;;  %3116 = vmatmul.mubr.msk.f32.vlgmr.msra.gmra.mxu1 %vm1469_vm13, %v4497_v29  ;;  %v1262_v27 = vld [vmem:[%s6088_s10 + $0x1f0] sm:$0xff]  ;;  %v1221_v30 = vld [vmem:[%s6088_s10 + $0xa8] sm:$0xff] }
 0x577   :  { %3134 = vmatmul.mubr.msk.f32.vlgmr.msra.gmra.mxu0 %vm1469_vm13, %v4497_v29  ;;  %3121 = vmatpush1.msk.msra.mxu1 %vm1482_vm12, %v1194_v32  ;;  %v1206_v28 = vld [vmem:[%s6088_s10 + $0x30] sm:$0xff]  ;;  %v1261_v31 = vld [vmem:[%s6088_s10 + $0x1e8] sm:$0xff] }
 0x578   :  { %v4517_v40 = vmax.f32 %v1126_v35, %v1130_v38  ;;  %1614 = vmatprep.subr.mxu1 %v1187_v33  ;;  %2253 = vrot.lane.b32.xlu1 %v4506_v37, %s3721_s0  ;;  %v1205_v32 = vld [vmem:[%s6088_s10 + $0x28] sm:$0xff]  ;;  %v1220_v35 = vld [vmem:[%s6088_s10 + $0xa0] sm:$0xff] }
 0x579   :  { %1577 = vmatprep.mubr.f32.mxu1 %v6101_v4  ;;  %1615 = vmatpush1.msra.mxu1 %v1186_v39  ;;  %v1245_v33 = vld [vmem:[%s6088_s10 + $0x168] sm:$0xff]  ;;  %v1204_v38 = vld [vmem:[%s6088_s10 + $0x20] sm:$0xff] }
 0x57a   :  { %1844 = vmatprep.mubr.f32.mxu0 %v6101_v4  ;;  %3117 = vmatmul.mubr.msk.f32.gmra.mxu1 %vm1469_vm13, %v4495_v25  ;;  %v1244_v39 = vld [vmem:[%s6088_s10 + $0x160] sm:$0xff] }
 0x57b   :  { %1616 = vmatprep.subr.mxu1 %v1179_v42  ;;  %3135 = vmatmul.mubr.msk.f32.gmra.mxu0 %vm1469_vm13, %v4495_v25  ;;  %v1259_v42 = vld [vmem:[%s6088_s10 + $0x1d8] sm:$0xff] }
 0x57c   :  { %2251 = vrot.lane.b32.xlu0 %v4517_v40, %s3721_s0  ;;  %1617 = vmatpush1.msra.mxu1 %v1178_v44  ;;  %v1203_v44 = vld [vmem:[%s6088_s10 + $0x18] sm:$0xff] }
 0x57d   :  { %1618 = vmatprep.subr.mxu1 %v1171_v45  ;;  %1583 = vmatprep.mubr.f32.mxu1 %v6101_v4  ;;  %v4757_v45 = vld [vmem:[%s6088_s10 + $0x158] sm:$0xff] }
 0x57e   :  { %1619 = vmatpush1.msra.mxu1 %v1170_v48  ;;  %1850 = vmatprep.mubr.f32.mxu0 %v6101_v4  ;;  %v1218_v48 = vld [vmem:[%s6088_s10 + $0x90] sm:$0xff] }
 0x57f   :  { %3118 = vmatmul.mubr.msk.f32.gmra.mxu1 %vm1469_vm13, %v4517_v40  ;;  %1620 = vmatprep.subr.mxu1 %v1163_v49  ;;  %v4766_v49 = vld [vmem:[%s6088_s10 + $0x1d0] sm:$0xff] }
 0x580   :  { %3136 = vmatmul.mubr.msk.f32.gmra.mxu0 %vm1469_vm13, %v4517_v40  ;;  %1621 = vmatpush1.msra.mxu1 %v1162_v50  ;;  %v1202_v50 = vld [vmem:[%s6088_s10 + $0x10] sm:$0xff] }
 0x581   :  { %1622 = vmatprep.subr.mxu1 %v1155_v46  ;;  %1589 = vmatprep.mubr.f32.mxu1 %v6101_v4  ;;  %v4775_v46 = vld [vmem:[%s6088_s10 + $0x150] sm:$0xff] }
 0x582   :  { %1623 = vmatpush1.msra.mxu1 %v1154_v41  ;;  %1856 = vmatprep.mubr.f32.mxu0 %v6101_v4  ;;  %v1217_v41 = vld [vmem:[%s6088_s10 + $0x88] sm:$0xff] }
 0x583   :  { %3119 = vmatmul.mubr.msk.f32.gmra.mxu1 %vm1469_vm13, %v4506_v37  ;;  %1624 = vmatprep.subr.mxu1 %v1147_v51  ;;  %v4784_v51 = vld [vmem:[%s6088_s10 + $0x1c8] sm:$0xff] }
 0x584   :  { %3137 = vmatmul.mubr.msk.f32.gmra.mxu0 %vm1469_vm13, %v4506_v37  ;;  %1625 = vmatpush1.msra.mxu1 %v1146_v52  ;;  %v1201_v52 = vld [vmem:[%s6088_s10 + $0x8] sm:$0xff] }
 0x585   :  { %1626 = vmatprep.subr.mxu1 %v1139_v36  ;;  %1660 = vmatprep.mubr.f32.mxu1 %v6101_v4  ;;  %v4793_v36 = vld [vmem:[%s6088_s10 + $0x148] sm:$0xff] }
 0x586   :  { %1627 = vmatpush1.msra.mxu1 %v1138_v53  ;;  %3249 = vmatpush3.msra.mxu0 %v1247_v43  ;;  %v1216_v53 = vld [vmem:[%s6088_s10 + $0x80] sm:$0xff] }
 0x587   :  { %3122 = vmatmul.mubr.msk.f32.vlgmr.msra.gmra.mxu1 %vm1469_vm13, %v4497_v29  ;;  %3126 = vmatprep.subr.msk.mxu1 %vm1482_vm12, %v1197_v55  ;;  %v4802_v55 = vld [vmem:[%s6088_s10 + $0x1c0] sm:$0xff] }
 0x588   :  { %3127 = vmatpush1.msk.msra.mxu1 %vm1482_vm12, %v1196_v57  ;;  %1666 = vmatprep.mubr.f32.mxu1 %v6101_v4  ;;  %v4808_v57 = vld [vmem:[%s6088_s10] sm:$0xff] }
 0x589   :  { %1703 = vmatprep.subr.mxu1 %v1189_v58  ;;  %3250 = vmatprep.subr.mxu0 %v1262_v27  ;;  %v4813_v58 = vld [vmem:[%s6088_s10 + $0x140] sm:$0xff] }
 0x58a   :  { %1704 = vmatpush1.msra.mxu1 %v1188_v61  ;;  %v4820_v61 = vld [vmem:[%s6088_s10 + $0x1b8] sm:$0xff] }
 0x58b   :  { %3123 = vmatmul.mubr.msk.f32.gmra.mxu1 %vm1469_vm13, %v4495_v25  ;;  %1705 = vmatprep.subr.mxu1 %v1181_v62  ;;  %v4825_v62 = vld [vmem:[%s6088_s10 + $0x2f8] sm:$0xff] }
 0x58c   :  { %1706 = vmatpush1.msra.mxu1 %v1180_v56  ;;  %1672 = vmatprep.mubr.f32.mxu1 %v6101_v4  ;;  %v4832_v56 = vld [vmem:[%s6088_s10 + $0x138] sm:$0xff] }
 0x58d   :  { %1707 = vmatprep.subr.mxu1 %v1173_v34  ;;  %v4838_v34 = vld [vmem:[%s6088_s10 + $0x1b0] sm:$0xff] }
 0x58e   :  { %1708 = vmatpush1.msra.mxu1 %v1172_v0  ;;  %v4844_v0 = vld [vmem:[%s6088_s10 + $0x130] sm:$0xff] }
 0x58f   :  { %3124 = vmatmul.mubr.msk.f32.gmra.mxu1 %vm1469_vm13, %v4517_v40  ;;  %1709 = vmatprep.subr.mxu1 %v1165_v1  ;;  %v4850_v1 = vld [vmem:[%s6088_s10 + $0x1a8] sm:$0xff] }
 0x590   :  { %1710 = vmatpush1.msra.mxu1 %v1164_v2  ;;  %1678 = vmatprep.mubr.f32.mxu1 %v6101_v4  ;;  %v4856_v2 = vld [vmem:[%s6088_s10 + $0x128] sm:$0xff] }
 0x591   :  { %1711 = vmatprep.subr.mxu1 %v1157_v3  ;;  %v4862_v3 = vld [vmem:[%s6088_s10 + $0x1a0] sm:$0xff] }
 0x592   :  { %1712 = vmatpush1.msra.mxu1 %v1156_v5  ;;  %v4868_v5 = vld [vmem:[%s6088_s10 + $0x120] sm:$0xff] }
 0x593   :  { %3125 = vmatmul.mubr.msk.f32.gmra.mxu1 %vm1469_vm13, %v4506_v37  ;;  %1713 = vmatprep.subr.mxu1 %v1149_v6  ;;  %v4874_v6 = vld [vmem:[%s6088_s10 + $0x198] sm:$0xff] }
 0x594   :  { %1714 = vmatpush1.msra.mxu1 %v1148_v7  ;;  %1749 = vmatprep.mubr.f32.mxu1 %v6101_v4  ;;  %v4880_v7 = vld [vmem:[%s6088_s10 + $0x118] sm:$0xff] }
 0x595   :  { %1715 = vmatprep.subr.mxu1 %v1141_v8  ;;  %v4886_v8 = vld [vmem:[%s6088_s10 + $0x190] sm:$0xff] }
 0x596   :  { %1716 = vmatpush1.msra.mxu1 %v1140_v9  ;;  %v4892_v9 = vld [vmem:[%s6088_s10 + $0x110] sm:$0xff] }
 0x597   :  { %3128 = vmatmul.mubr.msk.f32.vlgmr.msra.gmra.mxu1 %vm1469_vm13, %v4497_v29  ;;  %3213 = vmatprep.subr.mxu1 %v1231_v10  ;;  %v1246_v29 = vld [vmem:[%s6088_s10 + $0x170] sm:$0xff]  ;;  %v4898_v10 = vld [vmem:[%s6088_s10 + $0x188] sm:$0xff] }
 0x598   :  { %1755 = vmatprep.mubr.f32.mxu1 %v6101_v4  ;;  %3214 = vmatpush3.msra.mxu1 %v1215_v11  ;;  %v4904_v11 = vld [vmem:[%s6088_s10 + $0x108] sm:$0xff] }
 0x599   :  { %3215 = vmatprep.subr.mxu1 %v1230_v12  ;;  %3251 = vmatpush3.msra.mxu0 %v1246_v29  ;;  %v4910_v12 = vld [vmem:[%s6088_s10 + $0x180] sm:$0xff] }
 0x59a   :  { %3216 = vmatpush3.msra.mxu1 %v1214_v13  ;;  %3252 = vmatprep.subr.mxu0 %v1261_v31  ;;  %v4916_v13 = vld [vmem:[%s6088_s10 + $0x100] sm:$0xff] }
 0x59b   :  { %3129 = vmatmul.mubr.msk.f32.gmra.mxu1 %vm1469_vm13, %v4495_v25  ;;  %3217 = vmatprep.subr.mxu1 %v1229_v14  ;;  %v1207_v25 = vld [vmem:[%s6088_s10 + $0x38] sm:$0xff] }
 0x59c   :  { %1761 = vmatprep.mubr.f32.mxu1 %v6101_v4  ;;  %3218 = vmatpush3.msra.mxu1 %v1213_v16  ;;  %v4922_v14 = vld [vmem:[%s6088_s10 + $0x3f8] sm:$0xff]  ;;  %v4926_v16 = vshrl.u32 %v42_v19, 7 }
 0x59d   :  { %3219 = vmatprep.subr.mxu1 %v1228_v54  ;;  %3253 = vmatpush3.msra.mxu0 %v1245_v33 }
 0x59e   :  { %3220 = vmatpush3.msra.mxu1 %v1212_v17 }
 0x59f   :  { %3130 = vmatmul.mubr.msk.f32.gmra.mxu1 %vm1469_vm13, %v4517_v40  ;;  %3221 = vmatprep.subr.mxu1 %v1227_v18  ;;  %v1219_v40 = vld [vmem:[%s6088_s10 + $0x98] sm:$0xff]  ;;  %v1334_v18 = vadd.s32 128, %v3884_v23 }
 0x5a0   :  { %1767 = vmatprep.mubr.f32.mxu1 %v6101_v4  ;;  %3222 = vmatpush3.msra.mxu1 %v1211_v20  ;;  %v4932_v20 = vadd.s32 8, %v4926_v16  ;;  %v1339_v4 = vadd.s32 768, %v3884_v23 }
 0x5a1   :  { %3223 = vmatprep.subr.mxu1 %v1226_v63 }
 0x5a2   :  { %3224 = vmatpush3.msra.mxu1 %v1210_v21  ;;  %v4935_v21 = vand.u32 31, %v3884_v23 }
 0x5a3   :  { %3131 = vmatmul.mubr.msk.f32.gmra.mxu1 %vm1469_vm13, %v4506_v37  ;;  %3225 = vmatprep.subr.mxu1 %v1225_v59  ;;  %v1260_v37 = vld [vmem:[%s6088_s10 + $0x1e0] sm:$0xff] }
 0x5a4   :  { %3226 = vmatpush3.msra.mxu1 %v1209_v15  ;;  %3254 = vmatprep.subr.mxu0 %v1260_v37  ;;  %v4938_v15 = vadd.s32 16, %v4926_v16  ;;  %vm1445_vm14 = vcmp.eq.s32.totalorder %v4932_v20, %v4935_v21  ;;  %vm1437_vm15 = vcmp.eq.s32.totalorder %v4926_v16, %v4935_v21 }
 0x5a5   :  { %3227 = vmatprep.subr.mxu1 %v1224_v22  ;;  %3255 = vmatpush3.msra.mxu0 %v1244_v39 }
 0x5a6   :  { %3228 = vmatpush3.msra.mxu1 %v1208_v60  ;;  %3256 = vmatprep.subr.mxu0 %v1259_v42  ;;  %v4940_v60 = vand.u32 31, %v1334_v18  ;;  %vm1453_vm1 = vcmp.eq.s32.totalorder %v4938_v15, %v4935_v21 }
 0x5a7   :  { %3229 = vmatprep.subr.mxu1 %v1223_v47  ;;  %3257 = vmatpush3.msra.mxu0 %v4757_v45 }
 0x5a8   :  { %3230 = vmatpush3.msra.mxu1 %v1207_v25  ;;  %3258 = vmatprep.subr.mxu0 %v4766_v49  ;;  %vm1446_vm0 = vcmp.eq.s32.totalorder %v4932_v20, %v4940_v60  ;;  %v4953_v25 = vadd.s32 24, %v4926_v16  ;;  %vm1438_vm2 = vcmp.eq.s32.totalorder %v4926_v16, %v4940_v60  ;;  %vm1454_vm3 = vcmp.eq.s32.totalorder %v4938_v15, %v4940_v60 }
 0x5a9   :  { %3231 = vmatprep.subr.mxu1 %v1222_v26  ;;  %3259 = vmatpush3.msra.mxu0 %v4775_v46  ;;  %v1340_v26 = vadd.s32 896, %v3884_v23 }
 0x5aa   :  { %3232 = vmatpush3.msra.mxu1 %v1206_v28  ;;  %3260 = vmatprep.subr.mxu0 %v4784_v51  ;;  %vm1461_vm4 = vcmp.eq.s32.totalorder %v4953_v25, %v4935_v21  ;;  %vm1462_vm5 = vcmp.eq.s32.totalorder %v4953_v25, %v4940_v60 }
 0x5ab   :  { %3233 = vmatprep.subr.mxu1 %v1221_v30  ;;  %3261 = vmatpush3.msra.mxu0 %v4793_v36  ;;  %v4982_v39 = vand.u32 31, %v1340_v26 }
 0x5ac   :  { %3234 = vmatpush3.msra.mxu1 %v1205_v32  ;;  %3262 = vmatprep.subr.mxu0 %v4802_v55 }
 0x5ad   :  { %3235 = vmatprep.subr.mxu1 %v1220_v35  ;;  %3263 = vmatpush3.msra.mxu0 %v4813_v58  ;;  %6160 = vst [vmem:[#allocation5_spill] sm:$0xff] %v4982_v39  ;;  %vm6094_vm6 = vcmp.eq.s32.totalorder %v4932_v20, %v4982_v39  ;;  %vm6091_vm7 = vcmp.eq.s32.totalorder %v4926_v16, %v4982_v39 }
 0x5ae   :  { %3236 = vmatpush3.msra.mxu1 %v1204_v38  ;;  %3264 = vmatprep.subr.mxu0 %v4820_v61  ;;  %vm6092_vm8 = vcmp.eq.s32.totalorder %v4938_v15, %v4982_v39  ;;  %vm6093_vm9 = vcmp.eq.s32.totalorder %v4953_v25, %v4982_v39 }
 0x5af   :  { %3237 = vmatprep.subr.mxu1 %v1219_v40  ;;  %3265 = vmatpush3.msra.mxu0 %v4832_v56 }
 0x5b0   :  { %3238 = vmatpush3.msra.mxu1 %v1203_v44  ;;  %3266 = vmatprep.subr.mxu0 %v4838_v34 }
 0x5b1   :  { %3239 = vmatprep.subr.mxu1 %v1218_v48  ;;  %3267 = vmatpush3.msra.mxu0 %v4844_v0 }
 0x5b2   :  { %3240 = vmatpush3.msra.mxu1 %v1202_v50  ;;  %3268 = vmatprep.subr.mxu0 %v4850_v1  ;;  %v1335_v50 = vadd.s32 256, %v3884_v23 }
 0x5b3   :  { %3241 = vmatprep.subr.mxu1 %v1217_v41  ;;  %3269 = vmatpush3.msra.mxu0 %v4856_v2 }
 0x5b4   :  { %3242 = vmatpush3.msra.mxu1 %v1201_v52  ;;  %3270 = vmatprep.subr.mxu0 %v4862_v3 }
 0x5b5   :  { %3243 = vmatprep.subr.mxu1 %v1216_v53  ;;  %3271 = vmatpush3.msra.mxu0 %v4868_v5 }
 0x5b6   :  { %3244 = vmatpush3.msra.mxu1 %v4808_v57  ;;  %3272 = vmatprep.subr.mxu0 %v4874_v6 }
 0x5b7   :  { %3283 = vmatprep.subr.mxu1 %v4825_v62  ;;  %3273 = vmatpush3.msra.mxu0 %v4880_v7 }
 0x5b8   :  { %3274 = vmatprep.subr.mxu0 %v4886_v8 }
 0x5b9   :  { %3275 = vmatpush3.msra.mxu0 %v4892_v9 }
 0x5ba   :  { %3276 = vmatprep.subr.mxu0 %v4898_v10 }
 0x5bb   :  { %3277 = vmatpush3.msra.mxu0 %v4904_v11 }
 0x5bc   :  { %3278 = vmatprep.subr.mxu0 %v4910_v12 }
 0x5bd   :  { %3279 = vmatpush3.msra.mxu0 %v4916_v13 }
 0x5be   :  { %3318 = vmatprep.subr.mxu0 %v4922_v14 }
 0x636   :  { %v1573_v54 = vpop.f32.mrf.mxu1 }
 0x637   :  { %v4928_v17 = vpop.f32.mrf.mxu0  ;;  %v1863_v28 = vsel %vm1437_vm15, %v1573_v54, 0.0 }
 0x638   :  { %v1575_v63 = vpop.f32.mrf.mxu1 }
 0x639   :  { %v1842_v59 = vpop.f32.mrf.mxu0  ;;  %v1864_v35 = vsel %vm1438_vm2, %v1575_v63, 0.0  ;;  %v1336_v63 = vadd.s32 384, %v3884_v23 }
 0x63a   :  { %v1579_v22 = vpop.f32.mrf.mxu1 }
 0x63b   :  { %v4944_v19 = vpop.f32.mrf.mxu0  ;;  %v1871_v43 = vsel %vm1445_vm14, %v1579_v22, 0.0 }
 0x63c   :  { %v1581_v47 = vpop.f32.mrf.mxu1  ;;  %v1895_v32 = vadd.f32 %v1871_v43, %v1863_v28 }
 0x63d   :  { %v1848_v24 = vpop.f32.mrf.mxu0  ;;  %v1872_v29 = vsel %vm1446_vm0, %v1581_v47, 0.0 }
 0x63e   :  { %v1904_v40 = vadd.f32 %v1872_v29, %v1864_v35  ;;  %v1878_v26 = vsel %vm6094_vm6, %v1848_v24, 0.0 }
 0x63f   :  { %v1585_v27 = vpop.f32.mrf.mxu1 }
 0x640   :  { %v1879_v30 = vsel %vm1453_vm1, %v1585_v27, 0.0  ;;  %v4972_v31 = vpop.f32.mrf.mxu0  ;;  %v5005_v27 = vand.u32 31, %v1335_v50 }
 0x641   :  { %v1587_v33 = vpop.f32.mrf.mxu1  ;;  %v1896_v42 = vadd.f32 %v1895_v32, %v1879_v30 }
 0x642   :  { %v1880_v37 = vsel %vm1454_vm3, %v1587_v33, 0.0  ;;  %v1854_v38 = vpop.f32.mrf.mxu0  ;;  %v1870_v33 = vsel %vm6091_vm7, %v1842_v59, 0.0  ;;  %vm6095_vm10 = vcmp.eq.s32.totalorder %v4932_v20, %v5005_v27  ;;  %vm6108_vm11 = vcmp.eq.s32.totalorder %v4926_v16, %v5005_v27 }
 0x643   :  { %v1591_v44 = vpop.f32.mrf.mxu1  ;;  %v1905_v41 = vadd.f32 %v1904_v40, %v1880_v37  ;;  %v1886_v35 = vsel %vm6092_vm8, %v1854_v38, 0.0  ;;  %v5015_v37 = vand.u32 31, %v1336_v63  ;;  %v1958_v24 = vadd.f32 %v1878_v26, %v1870_v33 }
 0x644   :  { %v1887_v48 = vsel %vm1461_vm4, %v1591_v44, 0.0  ;;  %v4992_v53 = vpop.f32.mrf.mxu0  ;;  %vm6106_vm8 = vcmp.eq.s32.totalorder %v4938_v15, %v5005_v27 }
 0x645   :  { %v1897_v52 = vadd.f32 %v1896_v42, %v1887_v48  ;;  %v1593_v54 = vpop.f32.mrf.mxu1  ;;  %vm6096_vm7 = vcmp.eq.s32.totalorder %v4932_v20, %v5015_v37  ;;  %v1959_v59 = vadd.f32 %v1958_v24, %v1886_v35  ;;  %vm6099_vm6 = vcmp.eq.s32.totalorder %v4938_v15, %v5015_v37 }
 0x646   :  { %v1888_v18 = vsel %vm1462_vm5, %v1593_v54, 0.0  ;;  %v1860_v30 = vpop.f32.mrf.mxu0 }
 0x647   :  { %v1898_v22 = vrot.slane %v1897_v52, 4  ;;  %v1906_v47 = vadd.f32 %v1905_v41, %v1888_v18  ;;  %v1662_v43 = vpop.f32.mrf.mxu1  ;;  %v1894_v48 = vsel %vm6093_vm9, %v1860_v30, 0.0  ;;  %vm6100_vm9 = vcmp.eq.s32.totalorder %v4926_v16, %v5015_v37 }
 0x648   :  { %v1960_v18 = vadd.f32 %v1959_v59, %v1894_v48 }
 0x649   :  { %v1899_v28 = vadd.f32 %v1898_v22, %v1897_v52  ;;  %v1907_v29 = vrot.slane %v1906_v47, 4  ;;  %v1664_v32 = vpop.f32.mrf.mxu1 }
 0x64a   :  { %v1866_v35 = vsel %vm6100_vm9, %v1664_v32, 0.0  ;;  %v1961_v24 = vrot.slane %v1960_v18, 4  ;;  %v5060_v32 = vld [vmem:[%s6088_s10 + $0x278] sm:$0xff] }
 0x64b   :  { %v1900_v40 = vrot.slane %v1899_v28, 2  ;;  %v1908_v42 = vadd.f32 %v1907_v29, %v1906_v47  ;;  %v1668_v44 = vpop.f32.mrf.mxu1  ;;  %v1865_v47 = vsel %vm6108_vm11, %v1662_v43, 0.0 }
 0x64c   :  { %v1873_v52 = vsel %vm6095_vm10, %v1668_v44, 0.0  ;;  %vm6098_vm10 = vcmp.eq.s32.totalorder %v4953_v25, %v5005_v27 }
 0x64d   :  { %v1901_v38 = vadd.f32 %v1900_v40, %v1899_v28  ;;  %v1909_v50 = vrot.slane %v1908_v42, 2  ;;  %v1670_v41 = vpop.f32.mrf.mxu1  ;;  %v1913_v29 = vadd.f32 %v1873_v52, %v1865_v47 }
 0x64e   :  { %v1874_v26 = vsel %vm6096_vm7, %v1670_v41, 0.0  ;;  %vm6097_vm7 = vcmp.eq.s32.totalorder %v4953_v25, %v5015_v37  ;;  %v1337_v41 = vadd.s32 512, %v3884_v23 }
 0x64f   :  { %v1910_v54 = vadd.f32 %v1909_v50, %v1908_v42  ;;  %v1674_v63 = vpop.f32.mrf.mxu1  ;;  %v1902_v22 = vrot.slane %v1901_v38, 1  ;;  %v1922_v40 = vadd.f32 %v1874_v26, %v1866_v35  ;;  %v1338_v26 = vadd.s32 640, %v3884_v23  ;;  %v5081_v35 = vld [vmem:[%s6088_s10 + $0x2e8] sm:$0xff] }
 0x650   :  { %v1881_v28 = vsel %vm6106_vm8, %v1674_v63, 0.0  ;;  %6162 = vst [vmem:[#allocation7_spill] sm:$0xff] %v5081_v35  ;;  %v5149_v23 = vld [vmem:[%s6088_s10 + $0x2c8] sm:$0xff] }
 0x651   :  { %v1676_v30 = vpop.f32.mrf.mxu1  ;;  %v1911_v33 = vrot.slane %v1910_v54, 1  ;;  %v1914_v42 = vadd.f32 %v1913_v29, %v1881_v28  ;;  %v1903_v59 = vadd.f32 %v1902_v22, %v1901_v38  ;;  %v5074_v22 = vld [vmem:[%s6088_s10 + $0x270] sm:$0xff]  ;;  %v1962_v28 = vadd.f32 %v1961_v24, %v1960_v18  ;;  %6170 = vst [vmem:[#allocation15_spill] sm:$0xff] %v5149_v23 }
 0x652   :  { %v1882_v43 = vsel %vm6099_vm6, %v1676_v30, 0.0  ;;  %6161 = vst [vmem:[#allocation6_spill] sm:$0xff] %v5074_v22 }
 0x653   :  { %v1680_v44 = vpop.f32.mrf.mxu1  ;;  %v1912_v48 = vadd.f32 %v1911_v33, %v1910_v54  ;;  %v1923_v52 = vadd.f32 %v1922_v40, %v1882_v43  ;;  %v5066_v54 = vld [vmem:[%s6088_s10 + $0x2f0] sm:$0xff]  ;;  %v5083_v43 = vand.u32 31, %v1337_v41  ;;  %v5089_v40 = vld [vmem:[%s6088_s10 + $0x268] sm:$0xff] }
 0x654   :  { %v1889_v50 = vsel %vm6098_vm10, %v1680_v44, 0.0  ;;  %6163 = vst [vmem:[#allocation8_spill] sm:$0xff] %v5089_v40  ;;  %v5095_v44 = vld [vmem:[%s6088_s10 + $0x2e0] sm:$0xff] }
 0x655   :  { %v1915_v63 = vadd.f32 %v1914_v42, %v1889_v50  ;;  %v1682_v47 = vpop.f32.mrf.mxu1  ;;  %2031 = vmatprep.mubr.f32.mxu1 %v1912_v48  ;;  %6164 = vst [vmem:[#allocation9_spill] sm:$0xff] %v5095_v44  ;;  %v5097_v48 = vand.u32 31, %v1338_v26  ;;  %v1963_v50 = vrot.slane %v1962_v28, 2  ;;  %vm6111_vm10 = vcmp.eq.s32.totalorder %v4926_v16, %v5083_v43 }
 0x656   :  { %v1890_v38 = vsel %vm6097_vm7, %v1682_v47, 0.0  ;;  %2032 = vmatmul.mubr.f32.vlgmr.msra.gmra.mxu1 %v1903_v59  ;;  %v5103_v59 = vld [vmem:[%s6088_s10 + $0x260] sm:$0xff]  ;;  %vm6117_vm7 = vcmp.eq.s32.totalorder %v4932_v20, %v5083_v43  ;;  %v5111_v47 = vld [vmem:[%s6088_s10 + $0x2d8] sm:$0xff]  ;;  %vm6113_vm9 = vcmp.eq.s32.totalorder %v4938_v15, %v5083_v43 }
 0x657   :  { %v1916_v29 = vrot.slane %v1915_v63, 4  ;;  %v1924_v30 = vadd.f32 %v1923_v52, %v1890_v38  ;;  %3284 = vmatpush3.msra.mxu1 %v5060_v32  ;;  %v1751_v33 = vpop.f32.mrf.mxu1  ;;  %6165 = vst [vmem:[#allocation10_spill] sm:$0xff] %v5103_v59  ;;  %6166 = vst [vmem:[#allocation11_spill] sm:$0xff] %v5111_v47  ;;  %v5119_v38 = vld [vmem:[%s6088_s10 + $0x258] sm:$0xff]  ;;  %vm1450_vm6 = vcmp.eq.s32.totalorder %v4932_v20, %v5097_v48 }
 0x658   :  { %3285 = vmatprep.subr.mxu1 %v5066_v54  ;;  %6167 = vst [vmem:[#allocation12_spill] sm:$0xff] %v5119_v38  ;;  %v1964_v39 = vadd.f32 %v1963_v50, %v1962_v28  ;;  %vm1442_vm8 = vcmp.eq.s32.totalorder %v4926_v16, %v5097_v48  ;;  %vm6121_vm11 = vcmp.eq.s32.totalorder %v4938_v15, %v5097_v48  ;;  %v1867_v28 = vsel %vm6111_vm10, %v1751_v33, 0.0  ;;  %v5172_v33 = vld [vmem:[%s6088_s10 + $0x2c0] sm:$0xff] }
 0x659   :  { %v1917_v18 = vadd.f32 %v1916_v29, %v1915_v63  ;;  %v1925_v24 = vrot.slane %v1924_v30, 4  ;;  %3286 = vmatpush3.msra.mxu1 %v5074_v22  ;;  %v1753_v42 = vpop.f32.mrf.mxu1  ;;  %vm6120_vm10 = vcmp.eq.s32.totalorder %v4953_v25, %v5083_v43 }
 0x65a   :  { %3287 = vmatprep.subr.mxu1 %v5081_v35 }
 0x65b   :  { %v1918_v41 = vrot.slane %v1917_v18, 2  ;;  %v1926_v52 = vadd.f32 %v1925_v24, %v1924_v30  ;;  %3288 = vmatpush3.msra.mxu1 %v5089_v40  ;;  %v1757_v63 = vpop.f32.mrf.mxu1  ;;  %v5129_v24 = vld [vmem:[%s6088_s10 + $0x2d0] sm:$0xff] }
 0x65c   :  { %3289 = vmatprep.subr.mxu1 %v5095_v44  ;;  %6168 = vst [vmem:[#allocation13_spill] sm:$0xff] %v5129_v24 }
 0x65d   :  { %v1919_v26 = vadd.f32 %v1918_v41, %v1917_v18  ;;  %v1927_v29 = vrot.slane %v1926_v52, 2  ;;  %3290 = vmatpush3.msra.mxu1 %v5103_v59  ;;  %v1759_v30 = vpop.f32.mrf.mxu1  ;;  %v1875_v18 = vsel %vm6117_vm7, %v1757_v63, 0.0  ;;  %v5139_v41 = vld [vmem:[%s6088_s10 + $0x250] sm:$0xff] }
 0x65e   :  { %3291 = vmatprep.subr.mxu1 %v5111_v47  ;;  %6169 = vst [vmem:[#allocation14_spill] sm:$0xff] %v5139_v41  ;;  %v1876_v50 = vsel %vm1450_vm6, %v1759_v30, 0.0  ;;  %v5174_v30 = vand.u32 31, %v1339_v4 }
 0x65f   :  { %v1928_v59 = vadd.f32 %v1927_v29, %v1926_v52  ;;  %3292 = vmatpush3.msra.mxu1 %v5119_v38  ;;  %v1763_v44 = vpop.f32.mrf.mxu1  ;;  %v1920_v63 = vrot.slane %v1919_v26, 1  ;;  %v5164_v29 = vld [vmem:[%s6088_s10 + $0x248] sm:$0xff]  ;;  %v1931_v38 = vadd.f32 %v1875_v18, %v1867_v28  ;;  %v5186_v28 = vld [vmem:[%s6088_s10 + $0x240] sm:$0xff] }
 0x660   :  { %v1883_v52 = vsel %vm6113_vm9, %v1763_v44, 0.0  ;;  %3293 = vmatprep.subr.mxu1 %v5129_v24  ;;  %v1868_v24 = vsel %vm1442_vm8, %v1753_v42, 0.0  ;;  %vm1466_vm9 = vcmp.eq.s32.totalorder %v4953_v25, %v5097_v48  ;;  %vm6122_vm7 = vcmp.eq.s32.totalorder %v4932_v20, %v5174_v30 }
 0x661   :  { %3294 = vmatpush3.msra.mxu1 %v5139_v41  ;;  %v1765_v47 = vpop.f32.mrf.mxu1  ;;  %v1929_v44 = vrot.slane %v1928_v59, 1  ;;  %v1940_v4 = vadd.f32 %v1876_v50, %v1868_v24  ;;  %v1932_v41 = vadd.f32 %v1931_v38, %v1883_v52  ;;  %v1921_v35 = vadd.f32 %v1920_v63, %v1919_v26  ;;  %v5210_v38 = vld [vmem:[%s6088_s10 + $0x378] sm:$0xff]  ;;  %v5221_v63 = vld [vmem:[%s6088_s10 + $0x3f0] sm:$0xff] }
 0x662   :  { %v1884_v18 = vsel %vm6121_vm11, %v1765_v47, 0.0  ;;  %3295 = vmatprep.subr.mxu1 %v5149_v23  ;;  %v5194_v47 = vld [vmem:[%s6088_s10 + $0x2b8] sm:$0xff]  ;;  %v1965_v23 = vrot.slane %v1964_v39, 1  ;;  %6171 = vst [vmem:[#allocation16_spill] sm:$0xff] %v5210_v38  ;;  %6172 = vst [vmem:[#allocation17_spill] sm:$0xff] %v5221_v63  ;;  %vm1459_vm11 = vcmp.eq.s32.totalorder %v4938_v15, %v5174_v30  ;;  %v1877_v52 = vsel %vm6122_vm7, %v4944_v19, 0.0 }
 0x663   :  { %3296 = vmatpush3.msra.mxu1 %v5164_v29  ;;  %v1769_v40 = vpop.f32.mrf.mxu1  ;;  %v1930_v42 = vadd.f32 %v1929_v44, %v1928_v59  ;;  %v5205_v59 = vld [vmem:[%s6088_s10 + $0x238] sm:$0xff]  ;;  %v1941_v24 = vadd.f32 %v1940_v4, %v1884_v18  ;;  %vm1467_vm7 = vcmp.eq.s32.totalorder %v4953_v25, %v5174_v30  ;;  %v5259_v19 = vld [vmem:[%s6088_s10 + $0x3e8] sm:$0xff] }
 0x664   :  { %v1891_v22 = vsel %vm6120_vm10, %v1769_v40, 0.0  ;;  %3297 = vmatprep.subr.mxu1 %v5172_v33  ;;  %v5216_v40 = vld [vmem:[%s6088_s10 + $0x2b0] sm:$0xff]  ;;  %vm1443_vm10 = vcmp.eq.s32.totalorder %v4926_v16, %v5174_v30  ;;  %v1966_v4 = vadd.f32 %v1965_v23, %v1964_v39  ;;  %6175 = vst [vmem:[#allocation20_spill] sm:$0xff] %v5259_v19  ;;  %v5264_v39 = vld [vmem:[%s6088_s10 + $0x228] sm:$0xff] }
 0x665   :  { %v1933_v50 = vadd.f32 %v1932_v41, %v1891_v22  ;;  %3298 = vmatpush3.msra.mxu1 %v5186_v28  ;;  %v1771_v26 = vpop.f32.mrf.mxu1  ;;  %2101 = vmatprep.mubr.f32.mxu0 %v1930_v42  ;;  %v5234_v41 = vld [vmem:[%s6088_s10 + $0x230] sm:$0xff]  ;;  %v5250_v42 = vld [vmem:[%s6088_s10 + $0x2a8] sm:$0xff]  ;;  %v1869_v23 = vsel %vm1443_vm10, %v4928_v17, 0.0 }
 0x666   :  { %v1892_v22 = vsel %vm1466_vm9, %v1771_v26, 0.0  ;;  %3299 = vmatprep.subr.mxu1 %v5194_v47  ;;  %2102 = vmatmul.mubr.f32.vlgmr.msra.gmra.mxu0 %v1921_v35  ;;  %v5245_v35 = vld [vmem:[%s6088_s10 + $0x370] sm:$0xff]  ;;  %6174 = vst [vmem:[#allocation19_spill] sm:$0xff] %v5250_v42  ;;  %v1949_v17 = vadd.f32 %v1877_v52, %v1869_v23  ;;  %v5306_v23 = vld [vmem:[%s6088_s10 + $0x360] sm:$0xff] }
 0x667   :  { %v1934_v44 = vrot.slane %v1933_v50, 4  ;;  %v1942_v18 = vadd.f32 %v1941_v24, %v1892_v22  ;;  %3300 = vmatpush3.msra.mxu1 %v5205_v59  ;;  %3319 = vmatpush3.msra.mxu0 %v5210_v38  ;;  %6173 = vst [vmem:[#allocation18_spill] sm:$0xff] %v5245_v35  ;;  %v1885_v24 = vsel %vm1459_vm11, %v4972_v31, 0.0  ;;  %v5283_v38 = vld [vmem:[%s6088_s10 + $0x2a0] sm:$0xff] }
 0x668   :  { %3301 = vmatprep.subr.mxu1 %v5216_v40  ;;  %3320 = vmatprep.subr.mxu0 %v5221_v63  ;;  %v5278_v63 = vld [vmem:[%s6088_s10 + $0x368] sm:$0xff]  ;;  %6177 = vst [vmem:[#allocation22_spill] sm:$0xff] %v5283_v38  ;;  %v5290_v31 = vld [vmem:[%s6088_s10 + $0x3e0] sm:$0xff] }
 0x669   :  { %v1935_v26 = vadd.f32 %v1934_v44, %v1933_v50  ;;  %v1943_v22 = vrot.slane %v1942_v18, 4  ;;  %2241 = vmatprep.mubr.f32.mxu0 %v1966_v4  ;;  %3302 = vmatpush3.msra.mxu1 %v5234_v41  ;;  %6176 = vst [vmem:[#allocation21_spill] sm:$0xff] %v5278_v63  ;;  %6178 = vst [vmem:[#allocation23_spill] sm:$0xff] %v5290_v31  ;;  %v5295_v50 = vld [vmem:[%s6088_s10 + $0x220] sm:$0xff]  ;;  %v1893_v44 = vsel %vm1467_vm7, %v4992_v53, 0.0  ;;  %v5318_v53 = vld [vmem:[%s6088_s10 + $0x3d8] sm:$0xff] }
 0x66a   :  { %3321 = vmatpush3.msra.mxu0 %v5245_v35  ;;  %3303 = vmatprep.subr.mxu1 %v5250_v42  ;;  %6179 = vst [vmem:[#allocation24_spill] sm:$0xff] %v5295_v50  ;;  %v5311_v35 = vld [vmem:[%s6088_s10 + $0x298] sm:$0xff]  ;;  %v1950_v42 = vadd.f32 %v1949_v17, %v1885_v24  ;;  %6180 = vst [vmem:[#allocation25_spill] sm:$0xff] %v5318_v53  ;;  %v5335_v17 = vld [vmem:[%s6088_s10 + $0x290] sm:$0xff] }
 0x66b   :  { %v1936_v52 = vrot.slane %v1935_v26, 2  ;;  %v1944_v4 = vadd.f32 %v1943_v22, %v1942_v18  ;;  %3322 = vmatprep.subr.mxu0 %v5259_v19  ;;  %3304 = vmatpush3.msra.mxu1 %v5264_v39  ;;  %v5323_v18 = vld [vmem:[%s6088_s10 + $0x218] sm:$0xff]  ;;  %6183 = vst [vmem:[#allocation28_spill] sm:$0xff] %v5335_v17 }
 0x66c   :  { %3323 = vmatpush3.msra.mxu0 %v5278_v63  ;;  %3305 = vmatprep.subr.mxu1 %v5283_v38  ;;  %6181 = vst [vmem:[#allocation26_spill] sm:$0xff] %v5323_v18  ;;  %v5330_v24 = vld [vmem:[%s6088_s10 + $0x358] sm:$0xff]  ;;  %v1951_v63 = vadd.f32 %v1950_v42, %v1893_v44  ;;  %v5354_v42 = vld [vmem:[%s6088_s10 + $0x350] sm:$0xff]  ;;  %v5366_v44 = vld [vmem:[%s6088_s10 + $0x3c8] sm:$0xff] }
 0x66d   :  { %v1945_v22 = vrot.slane %v1944_v4, 2  ;;  %3324 = vmatprep.subr.mxu0 %v5290_v31  ;;  %3306 = vmatpush3.msra.mxu1 %v5295_v50  ;;  %6182 = vst [vmem:[#allocation27_spill] sm:$0xff] %v5330_v24  ;;  %v1937_v38 = vadd.f32 %v1936_v52, %v1935_v26  ;;  %v5342_v31 = vld [vmem:[%s6088_s10 + $0x3d0] sm:$0xff]  ;;  %6186 = vst [vmem:[#allocation31_spill] sm:$0xff] %v5354_v42  ;;  %v5359_v26 = vld [vmem:[%s6088_s10 + $0x288] sm:$0xff] }
 0x66e   :  { %3325 = vmatpush3.msra.mxu0 %v5306_v23  ;;  %3307 = vmatprep.subr.mxu1 %v5311_v35  ;;  %6184 = vst [vmem:[#allocation29_spill] sm:$0xff] %v5342_v31  ;;  %v5347_v50 = vld [vmem:[%s6088_s10 + $0x210] sm:$0xff]  ;;  %6187 = vst [vmem:[#allocation32_spill] sm:$0xff] %v5359_v26  ;;  %v5371_v52 = vld [vmem:[%s6088_s10 + $0x208] sm:$0xff] }
 0x66f   :  { %6185 = vst [vmem:[#allocation30_spill] sm:$0xff] %v5347_v50  ;;  %v1946_v19 = vadd.f32 %v1945_v22, %v1944_v4  ;;  %3326 = vmatprep.subr.mxu0 %v5318_v53  ;;  %3308 = vmatpush3.msra.mxu1 %v5323_v18  ;;  %6188 = vst [vmem:[#allocation33_spill] sm:$0xff] %v5366_v44  ;;  %v5378_v4 = vld [vmem:[%s6088_s10 + $0x348] sm:$0xff]  ;;  %v5383_v22 = vld [vmem:[%s6088_s10 + $0x280] sm:$0xff]  ;;  %v1938_v53 = vrot.slane %v1937_v38, 1 }
 0x670   :  { %3327 = vmatpush3.msra.mxu0 %v5330_v24  ;;  %3309 = vmatprep.subr.mxu1 %v5335_v17  ;;  %6189 = vst [vmem:[#allocation34_spill] sm:$0xff] %v5371_v52  ;;  %v1952_v17 = vrot.slane %v1951_v63, 4  ;;  %v5409_v18 = vld [vmem:[%s6088_s10 + $0x3b8] sm:$0xff] }
 0x671   :  { %3328 = vmatprep.subr.mxu0 %v5342_v31  ;;  %3310 = vmatpush3.msra.mxu1 %v5347_v50  ;;  %v1947_v24 = vrot.slane %v1946_v19, 1  ;;  %v5390_v31 = vld [vmem:[%s6088_s10 + $0x3c0] sm:$0xff] }
 0x672   :  { %3329 = vmatpush3.msra.mxu0 %v5354_v42  ;;  %3311 = vmatprep.subr.mxu1 %v5359_v26  ;;  %6190 = vst [vmem:[#allocation35_spill] sm:$0xff] %v5390_v31  ;;  %v5395_v50 = vld [vmem:[%s6088_s10 + $0x200] sm:$0xff] }
 0x673   :  { %3330 = vmatprep.subr.mxu0 %v5366_v44  ;;  %3312 = vmatpush3.msra.mxu1 %v5371_v52  ;;  %v5402_v42 = vld [vmem:[%s6088_s10 + $0x340] sm:$0xff]  ;;  %v1948_v26 = vadd.f32 %v1947_v24, %v1946_v19  ;;  %v5416_v44 = vld [vmem:[%s6088_s10 + $0x338] sm:$0xff]  ;;  %v1953_v52 = vadd.f32 %v1952_v17, %v1951_v63  ;;  %v1939_v19 = vadd.f32 %v1938_v53, %v1937_v38  ;;  %v5422_v24 = vld [vmem:[%s6088_s10 + $0x3b0] sm:$0xff] }
 0x674   :  { %3331 = vmatpush3.msra.mxu0 %v5378_v4  ;;  %3313 = vmatprep.subr.mxu1 %v5383_v22  ;;  %6191 = vst [vmem:[#allocation36_spill] sm:$0xff] %v5416_v44  ;;  %6192 = vst [vmem:[#allocation37_spill] sm:$0xff] %v5422_v24  ;;  %v5432_v63 = vld [vmem:[%s6088_s10 + $0x330] sm:$0xff]  ;;  %v5438_v38 = vld [vmem:[%s6088_s10 + $0x3a8] sm:$0xff] }
 0x675   :  { %3332 = vmatprep.subr.mxu0 %v5390_v31  ;;  %3314 = vmatpush3.msra.mxu1 %v5395_v50  ;;  %v3591_v31 = vld [vmem:[%s6087_s9 + $0x1c8] sm:$0x7f]  ;;  %6193 = vst [vmem:[#allocation38_spill] sm:$0xff] %v5432_v63  ;;  %6194 = vst [vmem:[#allocation39_spill] sm:$0xff] %v5438_v38  ;;  %v3592_v53 = vld [vmem:[%s6087_s9 + $0x1c0] sm:$0x7f] }
 0x676   :  { %3333 = vmatpush3.msra.mxu0 %v5402_v42  ;;  %2171 = vmatprep.mubr.f32.mxu1 %v1948_v26  ;;  %v1954_v17 = vrot.slane %v1953_v52, 2  ;;  %v3593_v26 = vld [vmem:[%s6087_s9 + $0x188] sm:$0xff] }
 0x677   :  { %3334 = vmatprep.subr.mxu0 %v5409_v18  ;;  %3138 = vmatprep.subr.msk.mxu1 %vm1482_vm12, %v3591_v31  ;;  %v5448_v31 = vld [vmem:[%s6088_s10 + $0x328] sm:$0xff] }
 0x678   :  { %2172 = vmatmul.mubr.f32.vlgmr.msra.gmra.mxu1 %v1939_v19  ;;  %3335 = vmatpush3.msra.mxu0 %v5416_v44  ;;  %6195 = vst [vmem:[#allocation40_spill] sm:$0xff] %v5448_v31  ;;  %v5457_v19 = vld [vmem:[%s6088_s10 + $0x3a0] sm:$0xff]  ;;  %v5493_v44 = vld [vmem:[%s6088_s10 + $0x390] sm:$0xff] }
 0x679   :  { %3139 = vmatpush1.msk.msra.mxu1 %vm1482_vm12, %v3592_v53  ;;  %3336 = vmatprep.subr.mxu0 %v5422_v24  ;;  %6196 = vst [vmem:[#allocation41_spill] sm:$0xff] %v5457_v19  ;;  %v3594_v53 = vld [vmem:[%s6087_s9 + $0x180] sm:$0xff]  ;;  %6200 = vst [vmem:[#allocation45_spill] sm:$0xff] %v5493_v44 }
 0x67a   :  { %2281 = vmatprep.subr.mxu1 %v3593_v26  ;;  %3337 = vmatpush3.msra.mxu0 %v5432_v63  ;;  %v5466_v24 = vld [vmem:[%s6088_s10 + $0x320] sm:$0xff]  ;;  %v3595_v26 = vld [vmem:[%s6087_s9 + $0x148] sm:$0xff]  ;;  %v5475_v63 = vld [vmem:[%s6088_s10 + $0x398] sm:$0xff] }
 0x67b   :  { %2282 = vmatpush1.msra.mxu1 %v3594_v53  ;;  %3338 = vmatprep.subr.mxu0 %v5438_v38  ;;  %6197 = vst [vmem:[#allocation42_spill] sm:$0xff] %v5466_v24  ;;  %6198 = vst [vmem:[#allocation43_spill] sm:$0xff] %v5475_v63  ;;  %v3596_v53 = vld [vmem:[%s6087_s9 + $0x140] sm:$0xff]  ;;  %v5484_v38 = vld [vmem:[%s6088_s10 + $0x318] sm:$0xff] }
 0x67c   :  { %2283 = vmatprep.subr.mxu1 %v3595_v26  ;;  %3339 = vmatpush3.msra.mxu0 %v5448_v31  ;;  %6199 = vst [vmem:[#allocation44_spill] sm:$0xff] %v5484_v38  ;;  %v1955_v26 = vadd.f32 %v1954_v17, %v1953_v52  ;;  %v3597_v31 = vld [vmem:[%s6087_s9 + $0x108] sm:$0xff]  ;;  %v5502_v52 = vld [vmem:[%s6088_s10 + $0x310] sm:$0xff] }
 0x67d   :  { %2284 = vmatpush1.msra.mxu1 %v3596_v53  ;;  %3340 = vmatprep.subr.mxu0 %v5457_v19  ;;  %v3598_v53 = vld [vmem:[%s6087_s9 + $0x100] sm:$0xff]  ;;  %6201 = vst [vmem:[#allocation46_spill] sm:$0xff] %v5502_v52  ;;  %v5511_v17 = vld [vmem:[%s6088_s10 + $0x388] sm:$0xff]  ;;  %v5552_v19 = vpop.permute.xlu0 %2247 }
 0x67e   :  { %2285 = vmatprep.subr.mxu1 %v3597_v31  ;;  %3341 = vmatpush3.msra.mxu0 %v5466_v24  ;;  %v3599_v31 = vld [vmem:[%s6087_s9 + $0xc8] sm:$0xff]  ;;  %6202 = vst [vmem:[#allocation47_spill] sm:$0xff] %v5511_v17  ;;  %v5529_v24 = vld [vmem:[%s6088_s10 + $0x380] sm:$0xff] }
 0x67f   :  { %2286 = vmatpush1.msra.mxu1 %v3598_v53  ;;  %3342 = vmatprep.subr.mxu0 %v5475_v63  ;;  %v3600_v53 = vld [vmem:[%s6087_s9 + $0xc0] sm:$0xff]  ;;  %v5520_v63 = vld [vmem:[%s6088_s10 + $0x308] sm:$0xff]  ;;  %6204 = vst [vmem:[#allocation49_spill] sm:$0xff] %v5529_v24 }
 0x680   :  { %2287 = vmatprep.subr.mxu1 %v3599_v31  ;;  %3343 = vmatpush3.msra.mxu0 %v5484_v38  ;;  %6203 = vst [vmem:[#allocation48_spill] sm:$0xff] %v5520_v63  ;;  %v1956_v31 = vrot.slane %v1955_v26, 1  ;;  %v3601_v38 = vld [vmem:[%s6087_s9 + $0x88] sm:$0xff] }
 0x681   :  { %2288 = vmatpush1.msra.mxu1 %v3600_v53  ;;  %3344 = vmatprep.subr.mxu0 %v5493_v44  ;;  %v3602_v53 = vld [vmem:[%s6087_s9 + $0x80] sm:$0xff] }
 0x682   :  { %2289 = vmatprep.subr.mxu1 %v3601_v38  ;;  %3345 = vmatpush3.msra.mxu0 %v5502_v52  ;;  %v5538_v44 = vld [vmem:[%s6088_s10 + $0x300] sm:$0xff]  ;;  %v3603_v38 = vld [vmem:[%s6087_s9 + $0x48] sm:$0xff] }
 0x683   :  { %2290 = vmatpush1.msra.mxu1 %v3602_v53  ;;  %3346 = vmatprep.subr.mxu0 %v5511_v17  ;;  %6205 = vst [vmem:[#allocation50_spill] sm:$0xff] %v5538_v44  ;;  %v3604_v52 = vld [vmem:[%s6087_s9 + $0x40] sm:$0xff]  ;;  %v3605_v53 = vld [vmem:[%s6087_s9 + $0x8] sm:$0xff]  ;;  %v1957_v17 = vadd.f32 %v1956_v31, %v1955_v26  ;;  %v3609_v31 = vld [vmem:[%s6087_s9 + $0x1d0] sm:$0x7f] }
 0x684   :  { %2291 = vmatprep.subr.mxu1 %v3603_v38  ;;  %3347 = vmatpush3.msra.mxu0 %v5520_v63  ;;  %v3606_v38 = vld [vmem:[%s6087_s9] sm:$0xff]  ;;  %v6206_v63 = vmov 0.0   ;;  %v3608_v26 = vld [vmem:[%s6087_s9 + $0x1e8] sm:$0x7f] }
 0x685   :  { %2292 = vmatpush1.msra.mxu1 %v3604_v52  ;;  %3348 = vmatprep.subr.mxu0 %v5529_v24  ;;  %v3607_v52 = vld [vmem:[%s6087_s9 + $0x1d8] sm:$0x7f]  ;;  %v3636_v24 = vld [vmem:[%s6087_s9 + $0x28] sm:$0xff] }
 0x686   :  { %2293 = vmatprep.subr.mxu1 %v3605_v53  ;;  %3349 = vmatpush3.msra.mxu0 %v5538_v44  ;;  %v3611_v53 = vld [vmem:[%s6087_s9 + $0x198] sm:$0xff]  ;;  %v3628_v44 = vld [vmem:[%s6087_s9 + $0xa8] sm:$0xff] }
 0x687   :  { %2294 = vmatpush1.msra.mxu1 %v3606_v38  ;;  %2327 = vmatprep.mubr.f32.mxu1 %v6206_v63  ;;  %v3612_v38 = vld [vmem:[%s6087_s9 + $0x1a8] sm:$0xff] }
 0x688   :  { %2242 = vmatmul.mubr.f32.vlgmr.msra.gmra.mxu0 %v1957_v17  ;;  %3140 = vmatmul.mubr.msk.f32.vlgmr.msra.gmra.mxu1 %vm1469_vm13, %v5552_v19  ;;  %v3610_v17 = vld [vmem:[%s6087_s9 + $0x1e0] sm:$0x7f] }
 0x689   :  { %3144 = vmatprep.subr.msk.mxu0 %vm1482_vm12, %v3607_v52  ;;  %3150 = vmatprep.subr.msk.mxu1 %vm1482_vm12, %v3608_v26  ;;  %v3613_v52 = vld [vmem:[%s6087_s9 + $0x190] sm:$0xff]  ;;  %v5586_v26 = vpop.permute.xlu1 %2249 }
 0x68a   :  { %3145 = vmatpush1.msk.msra.mxu0 %vm1482_vm12, %v3609_v31  ;;  %3151 = vmatpush1.msk.msra.mxu1 %vm1482_vm12, %v3610_v17  ;;  %v3614_v31 = vld [vmem:[%s6087_s9 + $0x1a0] sm:$0xff]  ;;  %v3615_v17 = vld [vmem:[%s6087_s9 + $0x158] sm:$0xff] }
 0x68b   :  { %2370 = vmatprep.subr.mxu0 %v3611_v53  ;;  %2459 = vmatprep.subr.mxu1 %v3612_v38  ;;  %v3616_v53 = vld [vmem:[%s6087_s9 + $0x168] sm:$0xff]  ;;  %v3617_v38 = vld [vmem:[%s6087_s9 + $0x150] sm:$0xff] }
 0x68c   :  { %2333 = vmatprep.mubr.f32.mxu1 %v6206_v63  ;;  %2371 = vmatpush1.msra.mxu0 %v3613_v52  ;;  %v3618_v52 = vld [vmem:[%s6087_s9 + $0x160] sm:$0xff] }
 0x68d   :  { %2460 = vmatpush1.msra.mxu1 %v3614_v31  ;;  %2372 = vmatprep.subr.mxu0 %v3615_v17  ;;  %v3619_v31 = vld [vmem:[%s6087_s9 + $0x118] sm:$0xff]  ;;  %v3620_v17 = vld [vmem:[%s6087_s9 + $0x128] sm:$0xff] }
 0x68e   :  { %3141 = vmatmul.mubr.msk.f32.gmra.mxu1 %vm1469_vm13, %v5586_v26  ;;  %2461 = vmatprep.subr.mxu1 %v3616_v53  ;;  %v3621_v53 = vld [vmem:[%s6087_s9 + $0x110] sm:$0xff] }
 0x68f   :  { %2373 = vmatpush1.msra.mxu0 %v3617_v38  ;;  %2462 = vmatpush1.msra.mxu1 %v3618_v52  ;;  %v5615_v38 = vpop.permute.xlu0 %2251  ;;  %v3622_v52 = vld [vmem:[%s6087_s9 + $0x120] sm:$0xff] }
 0x690   :  { %2374 = vmatprep.subr.mxu0 %v3619_v31  ;;  %2463 = vmatprep.subr.mxu1 %v3620_v17  ;;  %v3623_v31 = vld [vmem:[%s6087_s9 + $0xd8] sm:$0xff]  ;;  %v3624_v17 = vld [vmem:[%s6087_s9 + $0xe8] sm:$0xff] }
 0x691   :  { %2339 = vmatprep.mubr.f32.mxu1 %v6206_v63  ;;  %2375 = vmatpush1.msra.mxu0 %v3621_v53  ;;  %v3625_v53 = vld [vmem:[%s6087_s9 + $0xd0] sm:$0xff] }
 0x692   :  { %2464 = vmatpush1.msra.mxu1 %v3622_v52  ;;  %2376 = vmatprep.subr.mxu0 %v3623_v31  ;;  %v3626_v52 = vld [vmem:[%s6087_s9 + $0xe0] sm:$0xff]  ;;  %v3627_v31 = vld [vmem:[%s6087_s9 + $0x98] sm:$0xff] }
 0x693   :  { %3142 = vmatmul.mubr.msk.f32.gmra.mxu1 %vm1469_vm13, %v5615_v38  ;;  %2465 = vmatprep.subr.mxu1 %v3624_v17  ;;  %v3629_v17 = vld [vmem:[%s6087_s9 + $0x90] sm:$0xff] }
 0x694   :  { %2377 = vmatpush1.msra.mxu0 %v3625_v53  ;;  %2466 = vmatpush1.msra.mxu1 %v3626_v52  ;;  %v5644_v53 = vpop.permute.xlu1 %2253  ;;  %v3630_v52 = vld [vmem:[%s6087_s9 + $0xa0] sm:$0xff] }
 0x695   :  { %2378 = vmatprep.subr.mxu0 %v3627_v31  ;;  %2467 = vmatprep.subr.mxu1 %v3628_v44  ;;  %v3631_v31 = vld [vmem:[%s6087_s9 + $0x58] sm:$0xff]  ;;  %v3632_v44 = vld [vmem:[%s6087_s9 + $0x68] sm:$0xff] }
 0x696   :  { %2345 = vmatprep.mubr.f32.mxu1 %v6206_v63  ;;  %2379 = vmatpush1.msra.mxu0 %v3629_v17  ;;  %v3633_v17 = vld [vmem:[%s6087_s9 + $0x50] sm:$0xff] }
 0x697   :  { %2468 = vmatpush1.msra.mxu1 %v3630_v52  ;;  %2380 = vmatprep.subr.mxu0 %v3631_v31  ;;  %v3634_v52 = vld [vmem:[%s6087_s9 + $0x60] sm:$0xff]  ;;  %v3635_v31 = vld [vmem:[%s6087_s9 + $0x18] sm:$0xff] }
 0x698   :  { %3143 = vmatmul.mubr.msk.f32.gmra.mxu1 %vm1469_vm13, %v5644_v53  ;;  %2469 = vmatprep.subr.mxu1 %v3632_v44  ;;  %v3637_v44 = vld [vmem:[%s6087_s9 + $0x10] sm:$0xff] }
 0x699   :  { %2381 = vmatpush1.msra.mxu0 %v3633_v17  ;;  %2470 = vmatpush1.msra.mxu1 %v3634_v52  ;;  %v3638_v17 = vld [vmem:[%s6087_s9 + $0x20] sm:$0xff]  ;;  %v3640_v52 = vld [vmem:[%s6087_s9 + $0x1f0] sm:$0x7f] }
 0x69a   :  { %2382 = vmatprep.subr.mxu0 %v3635_v31  ;;  %2471 = vmatprep.subr.mxu1 %v3636_v24  ;;  %v3639_v24 = vld [vmem:[%s6087_s9 + $0x1f8] sm:$0x7f] }
 0x69b   :  { %2383 = vmatpush1.msra.mxu0 %v3637_v44  ;;  %2416 = vmatprep.mubr.f32.mxu0 %v6206_v63  ;;  %v3641_v31 = vld [vmem:[%s6087_s9 + $0x1b8] sm:$0xff] }
 0x69c   :  { %2472 = vmatpush1.msra.mxu1 %v3638_v17  ;;  %2505 = vmatprep.mubr.f32.mxu1 %v6206_v63  ;;  %v3642_v44 = vld [vmem:[%s6088_s10 + $0xf8] sm:$0xff]  ;;  %v3643_v17 = vld [vmem:[%s6087_s9 + $0x1b0] sm:$0xff] }
 0x69d   :  { %3146 = vmatmul.mubr.msk.f32.vlgmr.msra.gmra.mxu0 %vm1469_vm13, %v5552_v19  ;;  %3152 = vmatmul.mubr.msk.f32.vlgmr.msra.gmra.mxu1 %vm1469_vm13, %v5552_v19 }
 0x69e   :  { %3156 = vmatprep.subr.msk.mxu0 %vm1482_vm12, %v3639_v24  ;;  %2422 = vmatprep.mubr.f32.mxu0 %v6206_v63  ;;  %v3644_v24 = vld [vmem:[%s6087_s9 + $0x178] sm:$0xff] }
 0x69f   :  { %3157 = vmatpush1.msk.msra.mxu0 %vm1482_vm12, %v3640_v52  ;;  %2511 = vmatprep.mubr.f32.mxu1 %v6206_v63  ;;  %v3645_v52 = vld [vmem:[%s6087_s9 + $0x170] sm:$0xff]  ;;  %vm6207_vm12 = vcmp.eq.s32.totalorder %v4932_v20, %v5005_v27 }
 0x6a0   :  { %2548 = vmatprep.subr.mxu0 %v3641_v31  ;;  %3353 = vmatprep.subr.mxu1 %v3642_v44  ;;  %v3646_v31 = vld [vmem:[%s6087_s9 + $0x138] sm:$0xff]  ;;  %v3647_v44 = vld [vmem:[%s6087_s9 + $0x130] sm:$0xff] }
 0x6a1   :  { %2549 = vmatpush1.msra.mxu0 %v3643_v17  ;;  %3153 = vmatmul.mubr.msk.f32.gmra.mxu1 %vm1469_vm13, %v5586_v26  ;;  %v3648_v17 = vld [vmem:[%s6087_s9 + $0xf8] sm:$0xff] }
 0x6a2   :  { %3147 = vmatmul.mubr.msk.f32.gmra.mxu0 %vm1469_vm13, %v5586_v26  ;;  %2550 = vmatprep.subr.mxu0 %v3644_v24  ;;  %v3649_v24 = vld [vmem:[%s6087_s9 + $0xf0] sm:$0xff] }
 0x6a3   :  { %2551 = vmatpush1.msra.mxu0 %v3645_v52  ;;  %2428 = vmatprep.mubr.f32.mxu0 %v6206_v63  ;;  %v3650_v52 = vld [vmem:[%s6087_s9 + $0xb8] sm:$0xff] }
 0x6a4   :  { %2552 = vmatprep.subr.mxu0 %v3646_v31  ;;  %2517 = vmatprep.mubr.f32.mxu1 %v6206_v63  ;;  %v3651_v31 = vld [vmem:[%s6087_s9 + $0xb0] sm:$0xff] }
 0x6a5   :  { %2553 = vmatpush1.msra.mxu0 %v3647_v44  ;;  %3154 = vmatmul.mubr.msk.f32.gmra.mxu1 %vm1469_vm13, %v5615_v38  ;;  %v3652_v44 = vld [vmem:[%s6087_s9 + $0x78] sm:$0xff] }
 0x6a6   :  { %3148 = vmatmul.mubr.msk.f32.gmra.mxu0 %vm1469_vm13, %v5615_v38  ;;  %2554 = vmatprep.subr.mxu0 %v3648_v17  ;;  %v3653_v17 = vld [vmem:[%s6087_s9 + $0x70] sm:$0xff] }
 0x6a7   :  { %2555 = vmatpush1.msra.mxu0 %v3649_v24  ;;  %2434 = vmatprep.mubr.f32.mxu0 %v6206_v63  ;;  %v3654_v24 = vld [vmem:[%s6087_s9 + $0x38] sm:$0xff] }
 0x6a8   :  { %2556 = vmatprep.subr.mxu0 %v3650_v52  ;;  %2523 = vmatprep.mubr.f32.mxu1 %v6206_v63  ;;  %v3655_v52 = vld [vmem:[%s6088_s10 + $0x78] sm:$0xff] }
 0x6a9   :  { %2557 = vmatpush1.msra.mxu0 %v3651_v31  ;;  %3155 = vmatmul.mubr.msk.f32.gmra.mxu1 %vm1469_vm13, %v5644_v53  ;;  %v3656_v31 = vld [vmem:[%s6087_s9 + $0x30] sm:$0xff] }
 0x6aa   :  { %3149 = vmatmul.mubr.msk.f32.gmra.mxu0 %vm1469_vm13, %v5644_v53  ;;  %2558 = vmatprep.subr.mxu0 %v3652_v44  ;;  %v3657_v44 = vld [vmem:[%s6088_s10 + $0xf0] sm:$0xff] }
 0x6ab   :  { %2559 = vmatpush1.msra.mxu0 %v3653_v17  ;;  %2594 = vmatprep.mubr.f32.mxu0 %v6206_v63  ;;  %v3658_v17 = vld [vmem:[%s6088_s10 + $0x70] sm:$0xff] }
 0x6ac   :  { %2560 = vmatprep.subr.mxu0 %v3654_v24  ;;  %3354 = vmatpush3.msra.mxu1 %v3655_v52  ;;  %v3659_v24 = vld [vmem:[%s6088_s10 + $0xe8] sm:$0xff] }
 0x6ad   :  { %2561 = vmatpush1.msra.mxu0 %v3656_v31  ;;  %3355 = vmatprep.subr.mxu1 %v3657_v44  ;;  %v3660_v52 = vld [vmem:[%s6088_s10 + $0x68] sm:$0xff]  ;;  %v3662_v31 = vld [vmem:[%s6088_s10 + $0xe0] sm:$0xff]  ;;  %v3663_v44 = vld [vmem:[%s6088_s10 + $0x178] sm:$0xff] }
 0x6ae   :  { %3158 = vmatmul.mubr.msk.f32.vlgmr.msra.gmra.mxu0 %vm1469_vm13, %v5552_v19  ;;  %3356 = vmatpush3.msra.mxu1 %v3658_v17  ;;  %v3661_v19 = vld [vmem:[%s6088_s10 + $0x1f8] sm:$0xff]  ;;  %v3664_v17 = vld [vmem:[%s6088_s10 + $0x60] sm:$0xff] }
 0x6af   :  { %2600 = vmatprep.mubr.f32.mxu0 %v6206_v63  ;;  %3357 = vmatprep.subr.mxu1 %v3659_v24  ;;  %v3665_v24 = vld [vmem:[%s6088_s10 + $0xd8] sm:$0xff] }
 0x6b0   :  { %3358 = vmatpush3.msra.mxu1 %v3660_v52  ;;  %3388 = vmatprep.subr.mxu0 %v3661_v19  ;;  %v3666_v52 = vld [vmem:[%s6088_s10 + $0x58] sm:$0xff]  ;;  %v3668_v19 = vld [vmem:[%s6088_s10 + $0xd0] sm:$0xff] }
 0x6b1   :  { %3359 = vmatprep.subr.mxu1 %v3662_v31  ;;  %3389 = vmatpush3.msra.mxu0 %v3663_v44  ;;  %v3669_v31 = vld [vmem:[%s6088_s10 + $0x170] sm:$0xff] }
 0x6b2   :  { %3159 = vmatmul.mubr.msk.f32.gmra.mxu0 %vm1469_vm13, %v5586_v26  ;;  %3360 = vmatpush3.msra.mxu1 %v3664_v17  ;;  %v3667_v26 = vld [vmem:[%s6088_s10 + $0x1f0] sm:$0xff]  ;;  %v3671_v17 = vld [vmem:[%s6088_s10 + $0xc8] sm:$0xff] }
 0x6b3   :  { %2606 = vmatprep.mubr.f32.mxu0 %v6206_v63  ;;  %3361 = vmatprep.subr.mxu1 %v3665_v24  ;;  %v3670_v44 = vld [vmem:[%s6088_s10 + $0x50] sm:$0xff]  ;;  %v3672_v24 = vld [vmem:[%s6088_s10 + $0x48] sm:$0xff] }
 0x6b4   :  { %3362 = vmatpush3.msra.mxu1 %v3666_v52  ;;  %3390 = vmatprep.subr.mxu0 %v3667_v26  ;;  %v3674_v52 = vld [vmem:[%s6088_s10 + $0xc0] sm:$0xff] }
 0x6b5   :  { %3363 = vmatprep.subr.mxu1 %v3668_v19  ;;  %3391 = vmatpush3.msra.mxu0 %v3669_v31  ;;  %v3676_v26 = vld [vmem:[%s6088_s10 + $0x40] sm:$0xff]  ;;  %v3677_v19 = vld [vmem:[%s6088_s10 + $0xb8] sm:$0xff] }
 0x6b6   :  { %3160 = vmatmul.mubr.msk.f32.gmra.mxu0 %vm1469_vm13, %v5615_v38  ;;  %3364 = vmatpush3.msra.mxu1 %v3670_v44  ;;  %v3673_v38 = vld [vmem:[%s6088_s10 + $0x1e8] sm:$0xff]  ;;  %v3678_v31 = vld [vmem:[%s6088_s10 + $0x1e0] sm:$0xff]  ;;  %v3679_v44 = vld [vmem:[%s6088_s10 + $0x38] sm:$0xff] }
 0x6b7   :  { %2612 = vmatprep.mubr.f32.mxu0 %v6206_v63  ;;  %3365 = vmatprep.subr.mxu1 %v3671_v17  ;;  %v3675_v63 = vld [vmem:[%s6088_s10 + $0x168] sm:$0xff]  ;;  %v3681_v17 = vld [vmem:[%s6088_s10 + $0xb0] sm:$0xff] }
 0x6b8   :  { %3366 = vmatpush3.msra.mxu1 %v3672_v24  ;;  %3392 = vmatprep.subr.mxu0 %v3673_v38  ;;  %v3682_v24 = vld [vmem:[%s6088_s10 + $0x1d8] sm:$0xff]  ;;  %v3683_v38 = vld [vmem:[%s6088_s10 + $0x30] sm:$0xff] }
 0x6b9   :  { %3367 = vmatprep.subr.mxu1 %v3674_v52  ;;  %3393 = vmatpush3.msra.mxu0 %v3675_v63  ;;  %v3684_v52 = vld [vmem:[%s6088_s10 + $0xa8] sm:$0xff] }
 0x6ba   :  { %3161 = vmatmul.mubr.msk.f32.gmra.mxu0 %vm1469_vm13, %v5644_v53  ;;  %3368 = vmatpush3.msra.mxu1 %v3676_v26  ;;  %v3680_v53 = vld [vmem:[%s6088_s10 + $0x160] sm:$0xff]  ;;  %v3685_v63 = vld [vmem:[%s6088_s10 + $0x28] sm:$0xff]  ;;  %vm6208_vm13 = vcmp.eq.s32.totalorder %v4926_v16, %v5005_v27 }
 0x6bb   :  { %3369 = vmatprep.subr.mxu1 %v3677_v19  ;;  %3394 = vmatprep.subr.mxu0 %v3678_v31  ;;  %v3686_v26 = vld [vmem:[%s6088_s10 + $0xa0] sm:$0xff] }
 0x6bc   :  { %3370 = vmatpush3.msra.mxu1 %v3679_v44  ;;  %3395 = vmatpush3.msra.mxu0 %v3680_v53 }
 0x6bd   :  { %3371 = vmatprep.subr.mxu1 %v3681_v17  ;;  %3396 = vmatprep.subr.mxu0 %v3682_v24 }
 0x6be   :  { %3372 = vmatpush3.msra.mxu1 %v3683_v38  ;;  %3397 = vmatpush3.msra.mxu0 %v4757_v45  ;;  %v3687_v45 = vld [vmem:[%s6088_s10 + $0x20] sm:$0xff] }
 0x6bf   :  { %3373 = vmatprep.subr.mxu1 %v3684_v52  ;;  %3398 = vmatprep.subr.mxu0 %v4766_v49  ;;  %v3688_v49 = vld [vmem:[%s6088_s10 + $0x98] sm:$0xff] }
 0x6c0   :  { %3374 = vmatpush3.msra.mxu1 %v3685_v63  ;;  %3399 = vmatpush3.msra.mxu0 %v4775_v46  ;;  %v3689_v46 = vld [vmem:[%s6088_s10 + $0x18] sm:$0xff] }
 0x6c1   :  { %3375 = vmatprep.subr.mxu1 %v3686_v26  ;;  %3400 = vmatprep.subr.mxu0 %v4784_v51  ;;  %v3690_v51 = vld [vmem:[%s6088_s10 + $0x90] sm:$0xff] }
 0x6c2   :  { %3376 = vmatpush3.msra.mxu1 %v3687_v45  ;;  %3401 = vmatpush3.msra.mxu0 %v4793_v36  ;;  %v3691_v36 = vld [vmem:[%s6088_s10 + $0x10] sm:$0xff] }
 0x6c3   :  { %3377 = vmatprep.subr.mxu1 %v3688_v49  ;;  %3402 = vmatprep.subr.mxu0 %v4802_v55  ;;  %v3692_v55 = vld [vmem:[%s6088_s10 + $0x88] sm:$0xff] }
 0x6c4   :  { %3378 = vmatpush3.msra.mxu1 %v3689_v46  ;;  %3403 = vmatpush3.msra.mxu0 %v4813_v58  ;;  %v3693_v58 = vld [vmem:[%s6088_s10 + $0x8] sm:$0xff] }
 0x6c5   :  { %3379 = vmatprep.subr.mxu1 %v3690_v51  ;;  %3404 = vmatprep.subr.mxu0 %v4820_v61  ;;  %v3694_v61 = vld [vmem:[%s6088_s10 + $0x80] sm:$0xff] }
 0x6c6   :  { %3380 = vmatpush3.msra.mxu1 %v3691_v36  ;;  %3405 = vmatpush3.msra.mxu0 %v4832_v56 }
 0x6c7   :  { %3381 = vmatprep.subr.mxu1 %v3692_v55  ;;  %3406 = vmatprep.subr.mxu0 %v4838_v34  ;;  %v5910_v34 = vld [vmem:[%s6089_s11] sm:$0x1]  ;;  %s3722_s11 = smov [#allocation2]  }
 0x6c8   :  { %3382 = vmatpush3.msra.mxu1 %v3693_v58  ;;  %3407 = vmatpush3.msra.mxu0 %v4844_v0  ;;  %s3016_s13 = sshll.u32 %s3722_s11, 4  ;;  %s3017_s13 = int_to_ptr.vmem [resolvable:$true] %s3016_s13 }
 0x6c9   :  { %3383 = vmatprep.subr.mxu1 %v3694_v61  ;;  %3408 = vmatprep.subr.mxu0 %v4850_v1  ;;  %s3695_s14 = scalar_lea.vmem %s3017_s13, 32  ;;  %p3700_p1 = scmp.lt.s32.totalorder %s3017_s13, %s3017_s13 }
 0x6ca   :  { %3384 = vmatpush3.msra.mxu1 %v4808_v57  ;;  %3409 = vmatpush3.msra.mxu0 %v4856_v2  ;;  %p3696_p0 = scmp.ne.s32.totalorder %s3017_s13, %s3695_s14  ;;  %p3701_p2 = scmp.lt.s32.totalorder %s3695_s14, %s3695_s14 }
 0x6cb   :  { %3423 = vmatprep.subr.mxu1 %v4825_v62  ;;  %3410 = vmatprep.subr.mxu0 %v4862_v3 }
 0x6cc   :  { %3411 = vmatpush3.msra.mxu0 %v4868_v5  ;;  %p3702_p3 = por %p3701_p2, %p3700_p1 }
 0x6cd   :  { %3412 = vmatprep.subr.mxu0 %v4874_v6 }
 0x6ce   :  { %3413 = vmatpush3.msra.mxu0 %v4880_v7  ;;  %p3703_p4 = pnand %p3702_p3, %p3696_p0 }
 0x6cf   :  { %3414 = vmatprep.subr.mxu0 %v4886_v8 }
 0x6d0   :  { %3415 = vmatpush3.msra.mxu0 %v4892_v9 }
 0x6d1   :  { %3416 = vmatprep.subr.mxu0 %v4898_v10 }
 0x6d2   :  { %3417 = vmatpush3.msra.mxu0 %v4904_v11 }
 0x6d3   :  { %3418 = vmatprep.subr.mxu0 %v4910_v12 }
 0x6d4   :  { %3419 = vmatpush3.msra.mxu0 %v4916_v13 }
 0x6d5   :  { %3458 = vmatprep.subr.mxu0 %v4922_v14 }
 0x716   :  { %v3245_v57 = vpop.f32.mrf.mxu1 }
 0x718   :  { %v3246_v62 = vpop.f32.mrf.mxu1 }
 0x719   :  { %v3247_v56 = vadd.f32 %v3246_v62, %v3245_v57 }
 0x71b   :  { %v2034_v2 = vadd.f32 %v3247_v56, %v5910_v34 }
 0x726   :  { %v3280_v0 = vpop.f32.mrf.mxu0 }
 0x728   :  { %v3281_v1 = vpop.f32.mrf.mxu0 }
 0x729   :  { %v3282_v3 = vadd.f32 %v3281_v1, %v3280_v0 }
 0x72b   :  { %v2104_v5 = vadd.f32 %v3282_v3, %v2034_v2 }
 0x738   :  { %v3315_v6 = vpop.f32.mrf.mxu1 }
 0x73a   :  { %v3316_v7 = vpop.f32.mrf.mxu1 }
 0x73b   :  { %v3317_v8 = vadd.f32 %v3316_v7, %v3315_v6 }
 0x73d   :  { %v2174_v9 = vadd.f32 %v3317_v8, %v2104_v5 }
 0x748   :  { %v3350_v10 = vpop.f32.mrf.mxu0  ;;  %v2329_v11 = vpop.f32.mrf.mxu1 }
 0x749   :  { %v2619_v24 = vsel %vm1437_vm15, %v2329_v11, 0.0  ;;  %vm6210_vm15 = vcmp.eq.s32.totalorder %v4938_v15, %v5005_v27 }
 0x74a   :  { %v3351_v12 = vpop.f32.mrf.mxu0  ;;  %v2331_v13 = vpop.f32.mrf.mxu1 }
 0x74b   :  { %v3352_v14 = vadd.f32 %v3351_v12, %v3350_v10  ;;  %v2620_v45 = vsel %vm1438_vm2, %v2331_v13, 0.0  ;;  %vm6213_vm2 = vcmp.eq.s32.totalorder %v4938_v15, %v5015_v37 }
 0x74d   :  { %v5913_v19 = vadd.f32 %v3352_v14, %v2174_v9 }
 0x74e   :  { %v2335_v31 = vpop.f32.mrf.mxu1 }
 0x74f   :  { %v2627_v53 = vsel %vm1445_vm14, %v2335_v31, 0.0  ;;  %vm6209_vm14 = vcmp.eq.s32.totalorder %v4932_v20, %v5015_v37 }
 0x750   :  { %v2337_v44 = vpop.f32.mrf.mxu1  ;;  %v2651_v26 = vadd.f32 %v2627_v53, %v2619_v24 }
 0x751   :  { %v2628_v38 = vsel %vm1446_vm0, %v2337_v44, 0.0  ;;  %vm6211_vm0 = vcmp.eq.s32.totalorder %v4938_v15, %v5097_v48 }
 0x752   :  { %v2660_v46 = vadd.f32 %v2628_v38, %v2620_v45 }
 0x753   :  { %v2341_v17 = vpop.f32.mrf.mxu1 }
 0x754   :  { %v2635_v52 = vsel %vm1453_vm1, %v2341_v17, 0.0  ;;  %vm6212_vm1 = vcmp.eq.s32.totalorder %v4926_v16, %v5015_v37 }
 0x755   :  { %v2343_v63 = vpop.f32.mrf.mxu1  ;;  %v2652_v51 = vadd.f32 %v2651_v26, %v2635_v52 }
 0x756   :  { %v2636_v49 = vsel %vm1454_vm3, %v2343_v63, 0.0  ;;  %vm6214_vm3 = vcmp.eq.s32.totalorder %v4932_v20, %v5083_v43 }
 0x757   :  { %v2661_v58 = vadd.f32 %v2660_v46, %v2636_v49 }
 0x758   :  { %v2347_v36 = vpop.f32.mrf.mxu1 }
 0x759   :  { %v2643_v55 = vsel %vm1461_vm4, %v2347_v36, 0.0  ;;  %vm6215_vm4 = vcmp.eq.s32.totalorder %v4926_v16, %v5083_v43 }
 0x75a   :  { %v2653_v61 = vadd.f32 %v2652_v51, %v2643_v55  ;;  %v2349_v57 = vpop.f32.mrf.mxu1 }
 0x75b   :  { %v2644_v62 = vsel %vm1462_vm5, %v2349_v57, 0.0  ;;  %vm6216_vm5 = vcmp.eq.s32.totalorder %v4953_v25, %v5005_v27 }
 0x75c   :  { %v2654_v56 = vrot.slane %v2653_v61, 4  ;;  %v2662_v0 = vadd.f32 %v2661_v58, %v2644_v62 }
 0x75d   :  { %v2418_v1 = vpop.f32.mrf.mxu0  ;;  %v2507_v2 = vpop.f32.mrf.mxu1 }
 0x75e   :  { %v2655_v3 = vadd.f32 %v2654_v56, %v2653_v61  ;;  %v2663_v5 = vrot.slane %v2662_v0, 4  ;;  %v2621_v52 = vsel %vm6208_vm13, %v2418_v1, 0.0 }
 0x75f   :  { %v2420_v6 = vpop.f32.mrf.mxu0  ;;  %v2509_v7 = vpop.f32.mrf.mxu1 }
 0x760   :  { %v2656_v8 = vrot.slane %v2655_v3, 2  ;;  %v2664_v9 = vadd.f32 %v2663_v5, %v2662_v0  ;;  %v2624_v49 = vsel %vm1442_vm8, %v2509_v7, 0.0  ;;  %v2622_v61 = vsel %vm6212_vm1, %v2420_v6, 0.0 }
 0x761   :  { %v2513_v10 = vpop.f32.mrf.mxu1  ;;  %v2623_v7 = vsel %vm6215_vm4, %v2507_v2, 0.0  ;;  %vm6218_vm8 = vcmp.eq.s32.totalorder %v4953_v25, %v5015_v37 }
 0x762   :  { %v2657_v21 = vadd.f32 %v2656_v8, %v2655_v3  ;;  %v2665_v11 = vrot.slane %v2664_v9, 2  ;;  %v2424_v12 = vpop.f32.mrf.mxu0  ;;  %v2631_v0 = vsel %vm6214_vm3, %v2513_v10, 0.0 }
 0x763   :  { %v2515_v13 = vpop.f32.mrf.mxu1  ;;  %v2629_v60 = vsel %vm6207_vm12, %v2424_v12, 0.0  ;;  %v2687_v2 = vadd.f32 %v2631_v0, %v2623_v7  ;;  %vm6219_vm12 = vcmp.eq.s32.totalorder %v4953_v25, %v5083_v43  ;;  %v6228_v7 = vld [vmem:[#allocation14_spill] sm:$0xff] }
 0x764   :  { %v2666_v14 = vadd.f32 %v2665_v11, %v2664_v9  ;;  %v2426_v31 = vpop.f32.mrf.mxu0  ;;  %v2658_v44 = vrot.slane %v2657_v21, 1  ;;  %v2632_v17 = vsel %vm1450_vm6, %v2515_v13, 0.0  ;;  %v2669_v46 = vadd.f32 %v2629_v60, %v2621_v52 }
 0x765   :  { %v2519_v53 = vpop.f32.mrf.mxu1  ;;  %v2630_v63 = vsel %vm6209_vm14, %v2426_v31, 0.0  ;;  %v2696_v57 = vadd.f32 %v2632_v17, %v2624_v49  ;;  %vm6217_vm6 = vcmp.eq.s32.totalorder %v4938_v15, %v5083_v43  ;;  %v6220_v17 = vld [vmem:[#allocation6_spill] sm:$0xff] }
 0x766   :  { %v2430_v24 = vpop.f32.mrf.mxu0  ;;  %v2667_v38 = vrot.slane %v2666_v14, 1  ;;  %v2659_v58 = vadd.f32 %v2658_v44, %v2657_v21  ;;  %v2678_v1 = vadd.f32 %v2630_v63, %v2622_v61  ;;  %v2639_v21 = vsel %vm6217_vm6, %v2519_v53, 0.0  ;;  %v6222_v63 = vld [vmem:[#allocation8_spill] sm:$0xff] }
 0x767   :  { %v2637_v26 = vsel %vm6210_vm15, %v2430_v24, 0.0  ;;  %v2521_v45 = vpop.f32.mrf.mxu1  ;;  %v2688_v48 = vadd.f32 %v2687_v2, %v2639_v21  ;;  %v6231_v21 = vld [vmem:[#allocation15_spill] sm:$0xff]  ;;  %vm6234_vm15 = vcmp.eq.s32.totalorder %v4932_v20, %v5174_v30  ;;  %v6245_v30 = vld [vmem:[#allocation26_spill] sm:$0xff] }
 0x768   :  { %v2432_v51 = vpop.f32.mrf.mxu0  ;;  %v2640_v36 = vsel %vm6211_vm0, %v2521_v45, 0.0  ;;  %v2668_v55 = vadd.f32 %v2667_v38, %v2666_v14  ;;  %v2670_v3 = vadd.f32 %v2669_v46, %v2637_v26  ;;  %v6223_v45 = vld [vmem:[#allocation9_spill] sm:$0xff] }
 0x769   :  { %v2638_v62 = vsel %vm6213_vm2, %v2432_v51, 0.0  ;;  %v2525_v56 = vpop.f32.mrf.mxu1  ;;  %v2697_v8 = vadd.f32 %v2696_v57, %v2640_v36  ;;  %v6224_v51 = vld [vmem:[#allocation10_spill] sm:$0xff] }
 0x76a   :  { %v2436_v5 = vpop.f32.mrf.mxu0  ;;  %2787 = vmatprep.mubr.f32.mxu1 %v2668_v55  ;;  %v2679_v10 = vadd.f32 %v2678_v1, %v2638_v62  ;;  %v2647_v44 = vsel %vm6219_vm12, %v2525_v56, 0.0  ;;  %v6225_v55 = vld [vmem:[#allocation11_spill] sm:$0xff]  ;;  %v6226_v62 = vld [vmem:[#allocation12_spill] sm:$0xff]  ;;  %v6227_v1 = vld [vmem:[#allocation13_spill] sm:$0xff] }
 0x76b   :  { %v2645_v6 = vsel %vm6216_vm5, %v2436_v5, 0.0  ;;  %v2527_v9 = vpop.f32.mrf.mxu1  ;;  %2788 = vmatmul.mubr.f32.vlgmr.msra.gmra.mxu1 %v2659_v58  ;;  %v2689_v26 = vadd.f32 %v2688_v48, %v2647_v44 }
 0x76c   :  { %v2671_v11 = vadd.f32 %v2670_v3, %v2645_v6  ;;  %v2438_v12 = vpop.f32.mrf.mxu0  ;;  %v2648_v13 = vsel %vm1466_vm9, %v2527_v9, 0.0  ;;  %3424 = vmatpush3.msra.mxu1 %v5060_v32  ;;  %v6221_v32 = vld [vmem:[#allocation7_spill] sm:$0xff]  ;;  %v6229_v6 = vld [vmem:[#allocation5_spill] sm:$0xff] }
 0x76d   :  { %v2646_v27 = vsel %vm6218_vm8, %v2438_v12, 0.0  ;;  %v2698_v14 = vadd.f32 %v2697_v8, %v2648_v13  ;;  %3425 = vmatprep.subr.mxu1 %v5066_v54  ;;  %v2690_v56 = vrot.slane %v2689_v26, 4  ;;  %vm6230_vm9 = vcmp.eq.s32.totalorder %v4932_v20, %v6229_v6 }
 0x76e   :  { %v2672_v31 = vrot.slane %v2671_v11, 4  ;;  %v2680_v60 = vadd.f32 %v2679_v10, %v2646_v27  ;;  %v2596_v53 = vpop.f32.mrf.mxu0  ;;  %3426 = vmatpush3.msra.mxu1 %v6220_v17  ;;  %vm6232_vm13 = vcmp.eq.s32.totalorder %v4926_v16, %v6229_v6  ;;  %vm6233_vm14 = vcmp.eq.s32.totalorder %v4938_v15, %v6229_v6 }
 0x76f   :  { %v2699_v24 = vrot.slane %v2698_v14, 4  ;;  %3427 = vmatprep.subr.mxu1 %v6221_v32  ;;  %v2691_v13 = vadd.f32 %v2690_v56, %v2689_v26  ;;  %vm6235_vm0 = vcmp.eq.s32.totalorder %v4953_v25, %v6229_v6  ;;  %v6240_v26 = vld [vmem:[#allocation20_spill] sm:$0xff] }
 0x770   :  { %v2673_v38 = vadd.f32 %v2672_v31, %v2671_v11  ;;  %v2681_v52 = vrot.slane %v2680_v60, 4  ;;  %v2598_v37 = vpop.f32.mrf.mxu0  ;;  %3428 = vmatpush3.msra.mxu1 %v6222_v63  ;;  %v6251_v56 = vld [vmem:[#allocation32_spill] sm:$0xff] }
 0x771   :  { %v2700_v54 = vadd.f32 %v2699_v24, %v2698_v14  ;;  %3429 = vmatprep.subr.mxu1 %v6223_v45  ;;  %v2626_v2 = vsel %vm6232_vm13, %v2598_v37, 0.0  ;;  %v6238_v37 = vld [vmem:[#allocation19_spill] sm:$0xff]  ;;  %v6242_v45 = vld [vmem:[#allocation21_spill] sm:$0xff]  ;;  %v6256_v6 = vld [vmem:[#allocation36_spill] sm:$0xff] }
 0x772   :  { %v2674_v49 = vrot.slane %v2673_v38, 2  ;;  %v2682_v43 = vadd.f32 %v2681_v52, %v2680_v60  ;;  %v2602_v46 = vpop.f32.mrf.mxu0  ;;  %3430 = vmatpush3.msra.mxu1 %v6224_v51  ;;  %v6237_v52 = vld [vmem:[#allocation17_spill] sm:$0xff] }
 0x773   :  { %v2701_v36 = vrot.slane %v2700_v54, 2  ;;  %3431 = vmatprep.subr.mxu1 %v6225_v55  ;;  %v6246_v51 = vld [vmem:[#allocation25_spill] sm:$0xff] }
 0x774   :  { %v2675_v58 = vadd.f32 %v2674_v49, %v2673_v38  ;;  %v2683_v61 = vrot.slane %v2682_v43, 2  ;;  %v2604_v57 = vpop.f32.mrf.mxu0  ;;  %3432 = vmatpush3.msra.mxu1 %v6226_v62  ;;  %v6236_v38 = vld [vmem:[#allocation16_spill] sm:$0xff]  ;;  %v6250_v62 = vld [vmem:[#allocation29_spill] sm:$0xff] }
 0x775   :  { %v2702_v0 = vadd.f32 %v2701_v36, %v2700_v54  ;;  %3433 = vmatprep.subr.mxu1 %v6227_v1  ;;  %v2634_v9 = vsel %vm6230_vm9, %v2604_v57, 0.0  ;;  %v6241_v54 = vld [vmem:[#allocation22_spill] sm:$0xff]  ;;  %v6243_v49 = vld [vmem:[#allocation24_spill] sm:$0xff]  ;;  %v6254_v1 = vld [vmem:[#allocation33_spill] sm:$0xff] }
 0x776   :  { %v2684_v3 = vadd.f32 %v2683_v61, %v2682_v43  ;;  %v2608_v5 = vpop.f32.mrf.mxu0  ;;  %3434 = vmatpush3.msra.mxu1 %v6228_v7  ;;  %v2676_v8 = vrot.slane %v2675_v58, 1  ;;  %v2714_v31 = vadd.f32 %v2634_v9, %v2626_v2  ;;  %v6247_v36 = vld [vmem:[#allocation28_spill] sm:$0xff]  ;;  %v6249_v61 = vld [vmem:[#allocation30_spill] sm:$0xff]  ;;  %v6265_v2 = vld [vmem:[#allocation45_spill] sm:$0xff] }
 0x777   :  { %3435 = vmatprep.subr.mxu1 %v6231_v21  ;;  %v2703_v10 = vrot.slane %v2702_v0, 1  ;;  %v2641_v20 = vsel %vm1459_vm11, %v2608_v5, 0.0  ;;  %v6257_v21 = vld [vmem:[#allocation37_spill] sm:$0xff] }
 0x778   :  { %v2610_v11 = vpop.f32.mrf.mxu0  ;;  %3436 = vmatpush3.msra.mxu1 %v5164_v29  ;;  %v2685_v12 = vrot.slane %v2684_v3, 1  ;;  %v2677_v17 = vadd.f32 %v2676_v8, %v2675_v58  ;;  %v2633_v29 = vsel %vm6234_vm15, %v2602_v46, 0.0  ;;  %v6244_v46 = vld [vmem:[#allocation23_spill] sm:$0xff] }
 0x779   :  { %v2642_v27 = vsel %vm6233_vm14, %v2610_v11, 0.0  ;;  %3437 = vmatprep.subr.mxu1 %v5172_v33  ;;  %v2704_v14 = vadd.f32 %v2703_v10, %v2702_v0  ;;  %v2692_v33 = vrot.slane %v2691_v13, 2  ;;  %v6248_v58 = vld [vmem:[#allocation27_spill] sm:$0xff]  ;;  %v6261_v11 = vld [vmem:[#allocation41_spill] sm:$0xff] }
 0x77a   :  { %v2614_v44 = vpop.f32.mrf.mxu0  ;;  %3438 = vmatpush3.msra.mxu1 %v5186_v28  ;;  %v2686_v60 = vadd.f32 %v2685_v12, %v2684_v3  ;;  %v2715_v48 = vadd.f32 %v2714_v31, %v2642_v27  ;;  %v2625_v28 = vsel %vm1443_vm10, %v2596_v53, 0.0  ;;  %v6239_v53 = vld [vmem:[#allocation18_spill] sm:$0xff]  ;;  %v6255_v8 = vld [vmem:[#allocation35_spill] sm:$0xff]  ;;  %v6268_v31 = vld [vmem:[#allocation48_spill] sm:$0xff]  ;;  %vm3008_vm10 = vcmask 254976  }
 0x77b   :  { %3439 = vmatprep.subr.mxu1 %v5194_v47  ;;  %2927 = vmatprep.mubr.f32.mxu1 %v2704_v14  ;;  %v2693_v15 = vadd.f32 %v2692_v33, %v2691_v13  ;;  %v6262_v12 = vld [vmem:[#allocation42_spill] sm:$0xff]  ;;  %v6264_v13 = vld [vmem:[#allocation44_spill] sm:$0xff]  ;;  %v6267_v14 = vld [vmem:[#allocation47_spill] sm:$0xff] }
 0x77c   :  { %v2616_v24 = vpop.f32.mrf.mxu0  ;;  %2857 = vmatprep.mubr.f32.mxu0 %v2686_v60  ;;  %3440 = vmatpush3.msra.mxu1 %v5205_v59  ;;  %v2705_v59 = vadd.f32 %v2633_v29, %v2625_v28  ;;  %v6266_v27 = vld [vmem:[#allocation46_spill] sm:$0xff] }
 0x77d   :  { %v2650_v32 = vsel %vm6235_vm0, %v2616_v24, 0.0  ;;  %2858 = vmatmul.mubr.f32.vlgmr.msra.gmra.mxu0 %v2677_v17  ;;  %3441 = vmatprep.subr.mxu1 %v5216_v40  ;;  %v2649_v40 = vsel %vm1467_vm7, %v2614_v44, 0.0  ;;  %v6269_v44 = vld [vmem:[#allocation49_spill] sm:$0xff]  ;;  %v6270_v17 = vld [vmem:[#allocation50_spill] sm:$0xff]  ;;  %vm3006_vm7 = vcmask 1040384  }
 0x77e   :  { %v2716_v47 = vadd.f32 %v2715_v48, %v2650_v32  ;;  %3459 = vmatpush3.msra.mxu0 %v6236_v38  ;;  %3442 = vmatpush3.msra.mxu1 %v5234_v41  ;;  %v2706_v63 = vadd.f32 %v2705_v59, %v2641_v20 }
 0x77f   :  { %3460 = vmatprep.subr.mxu0 %v6237_v52  ;;  %3443 = vmatprep.subr.mxu1 %v6238_v37 }
 0x780   :  { %v2717_v16 = vrot.slane %v2716_v47, 4  ;;  %3461 = vmatpush3.msra.mxu0 %v6239_v53  ;;  %3444 = vmatpush3.msra.mxu1 %v5264_v39  ;;  %v2707_v43 = vadd.f32 %v2706_v63, %v2649_v40  ;;  %v2694_v39 = vrot.slane %v2693_v15, 1 }
 0x781   :  { %3462 = vmatprep.subr.mxu0 %v6240_v26  ;;  %3445 = vmatprep.subr.mxu1 %v6241_v54 }
 0x782   :  { %v2718_v41 = vadd.f32 %v2717_v16, %v2716_v47  ;;  %3463 = vmatpush3.msra.mxu0 %v6242_v45  ;;  %3446 = vmatpush3.msra.mxu1 %v6243_v49  ;;  %v2708_v57 = vrot.slane %v2707_v43, 4  ;;  %v2695_v3 = vadd.f32 %v2694_v39, %v2693_v15 }
 0x783   :  { %3464 = vmatprep.subr.mxu0 %v6244_v46  ;;  %3447 = vmatprep.subr.mxu1 %v5311_v35  ;;  %v6252_v35 = vld [vmem:[#allocation31_spill] sm:$0xff] }
 0x784   :  { %v2719_v25 = vrot.slane %v2718_v41, 2  ;;  %3465 = vmatpush3.msra.mxu0 %v5306_v23  ;;  %3448 = vmatpush3.msra.mxu1 %v6245_v30  ;;  %v6253_v23 = vld [vmem:[#allocation34_spill] sm:$0xff]  ;;  %v2709_v7 = vadd.f32 %v2708_v57, %v2707_v43 }
 0x785   :  { %3466 = vmatprep.subr.mxu0 %v6246_v51  ;;  %3449 = vmatprep.subr.mxu1 %v6247_v36 }
 0x786   :  { %v2720_v55 = vadd.f32 %v2719_v25, %v2718_v41  ;;  %3467 = vmatpush3.msra.mxu0 %v6248_v58  ;;  %3450 = vmatpush3.msra.mxu1 %v6249_v61  ;;  %v2710_v9 = vrot.slane %v2709_v7, 2 }
 0x787   :  { %3468 = vmatprep.subr.mxu0 %v6250_v62  ;;  %3451 = vmatprep.subr.mxu1 %v6251_v56 }
 0x788   :  { %3469 = vmatpush3.msra.mxu0 %v6252_v35  ;;  %3452 = vmatpush3.msra.mxu1 %v6253_v23  ;;  %v2721_v0 = vrot.slane %v2720_v55, 1  ;;  %v2711_v10 = vadd.f32 %v2710_v9, %v2709_v7 }
 0x789   :  { %3470 = vmatprep.subr.mxu0 %v6254_v1  ;;  %3453 = vmatprep.subr.mxu1 %v5383_v22  ;;  %v6258_v22 = vld [vmem:[#allocation38_spill] sm:$0xff] }
 0x78a   :  { %3471 = vmatpush3.msra.mxu0 %v5378_v4  ;;  %3454 = vmatpush3.msra.mxu1 %v5395_v50  ;;  %v2722_v5 = vadd.f32 %v2721_v0, %v2720_v55  ;;  %v6259_v4 = vld [vmem:[#allocation39_spill] sm:$0xff]  ;;  %v6260_v50 = vld [vmem:[#allocation40_spill] sm:$0xff] }
 0x78b   :  { %3472 = vmatprep.subr.mxu0 %v6255_v8  ;;  %2928 = vmatmul.mubr.f32.vlgmr.msra.gmra.mxu1 %v2695_v3 }
 0x78c   :  { %3473 = vmatpush3.msra.mxu0 %v5402_v42  ;;  %2997 = vmatprep.mubr.f32.mxu0 %v2722_v5  ;;  %v6263_v42 = vld [vmem:[#allocation43_spill] sm:$0xff] }
 0x78d   :  { %3474 = vmatprep.subr.mxu0 %v5409_v18  ;;  %v2712_v18 = vrot.slane %v2711_v10, 1 }
 0x78e   :  { %3475 = vmatpush3.msra.mxu0 %v6256_v6 }
 0x78f   :  { %3476 = vmatprep.subr.mxu0 %v6257_v21  ;;  %v2713_v60 = vadd.f32 %v2712_v18, %v2711_v10 }
 0x790   :  { %3477 = vmatpush3.msra.mxu0 %v6258_v22 }
 0x791   :  { %3478 = vmatprep.subr.mxu0 %v6259_v4 }
 0x792   :  { %3479 = vmatpush3.msra.mxu0 %v6260_v50 }
 0x793   :  { %3480 = vmatprep.subr.mxu0 %v6261_v11 }
 0x794   :  { %3481 = vmatpush3.msra.mxu0 %v6262_v12 }
 0x795   :  { %3482 = vmatprep.subr.mxu0 %v6263_v42 }
 0x796   :  { %3483 = vmatpush3.msra.mxu0 %v6264_v13 }
 0x797   :  { %3484 = vmatprep.subr.mxu0 %v6265_v2 }
 0x798   :  { %3485 = vmatpush3.msra.mxu0 %v6266_v27 }
 0x799   :  { %3486 = vmatprep.subr.mxu0 %v6267_v14 }
 0x79a   :  { %3487 = vmatpush3.msra.mxu0 %v6268_v31 }
 0x79b   :  { %3488 = vmatprep.subr.mxu0 %v6269_v44 }
 0x79c   :  { %3489 = vmatpush3.msra.mxu0 %v6270_v17 }
 0x79d   :  { %2998 = vmatmul.mubr.f32.vlgmr.msra.gmra.mxu0 %v2713_v60 }
 0x82b   :  { %v3385_v29 = vpop.f32.mrf.mxu1 }
 0x82d   :  { %v3386_v48 = vpop.f32.mrf.mxu1 }
 0x82e   :  { %v3387_v28 = vadd.f32 %v3386_v48, %v3385_v29 }
 0x830   :  { %v2790_v38 = vadd.f32 %v3387_v28, %v5910_v34 }
 0x83d   :  { %v3420_v24 = vpop.f32.mrf.mxu0 }
 0x83f   :  { %v3421_v32 = vpop.f32.mrf.mxu0 }
 0x840   :  { %v3422_v47 = vadd.f32 %v3421_v32, %v3420_v24 }
 0x842   :  { %v2860_v37 = vadd.f32 %v3422_v47, %v2790_v38 }
 0x84b   :  { %v3455_v33 = vpop.f32.mrf.mxu1 }
 0x84d   :  { %v3456_v20 = vpop.f32.mrf.mxu1 }
 0x84e   :  { %v3457_v59 = vadd.f32 %v3456_v20, %v3455_v33 }
 0x850   :  { %v2930_v16 = vadd.f32 %v3457_v59, %v2860_v37 }
 0x85d   :  { %v3490_v52 = vpop.f32.mrf.mxu0 }
 0x85f   :  { %v3491_v40 = vpop.f32.mrf.mxu0 }
 0x860   :  { %v3492_v53 = vadd.f32 %v3491_v40, %v3490_v52 }
 0x862   :  { %v3000_v15 = vadd.f32 %v3492_v53, %v2930_v16 }
 0x864   :  { %v3004_v63 = vrot.slane %v3000_v15, 7 }
 0x866   :  { %v3007_v26 = vsel %vm3006_vm7, %v5913_v19, %v3004_v63 }
 0x867   :  { %3009 = vst.msk [vmem:[#allocation2] sm:$0x3] %vm3008_vm10, %v3007_v26 }
 0x868   :  { %3706 = shalt.err (!%p3703_p4)
}
 0x869   :  { %3019 = dma.vmem_to_hbm [thread:$0]  %s3017_s13, 32, %s6090_s12, [#allocation3]  }
 0x86a   :  { %3715 = dma.done.wait [#allocation3], 32  }
 0x86b   :  { %3716 = vsyncadd [#allocation3], 4294967264 }
 0x86c   :  { %3023 = vsyncpa [#allocation3], 1 }

</bundles_post_ra>
